<compile_context>
chip_gen: v7x
topology: tpu7x:2x2x1
jax: 0.10.0
libtpu: 0.0.40
codegen_flags: <defaults>
</compile_context>

<pallas_src>
import functools
import math

import jax
import jax.numpy as jnp
from jax import lax
from jax.experimental import pallas as pl
from jax.experimental.pallas import tpu as pltpu


# ---------------------------------------------------------------------------
# In-kernel helpers
# ---------------------------------------------------------------------------
def _depthwise3x3(inp, dwv, d):
    """Valid 3x3 (dilated) depthwise conv on a halo'd tile.

    inp : (R + 2d, Cc + 2d, Cp)  (Ref or value, f32)
    dwv : (3, 3, Cp) f32
    out : (R, Cc, Cp) f32
    """
    R = inp.shape[0] - 2 * d
    Cc = inp.shape[1] - 2 * d
    acc = None
    for kh in range(3):
        for kw in range(3):
            tap = dwv[kh, kw]                                     # (Cp,) lane vector
            t = inp[kh * d:kh * d + R, kw * d:kw * d + Cc, :] * tap
            acc = t if acc is None else acc + t
    return acc


def _pointwise_mxu(acc, pw_bf16):
    """1x1 conv as one lane-dense MXU matmul (bf16 operands, f32 accumulation)."""
    R, Cc, Cp = acc.shape
    pad = (-Cc) % 8                     # keep the collapse-reshape relayout free
    if pad:
        acc = jnp.concatenate([acc, jnp.zeros((R, pad, Cp), acc.dtype)], axis=1)
    Cc2 = Cc + pad
    y = jnp.dot(acc.reshape(R * Cc2, Cp).astype(jnp.bfloat16), pw_bf16,
                preferred_element_type=jnp.float32).reshape(R, Cc2, Cp)
    return y[:, :Cc, :] if pad else y


def _mask_out_of_image(h, pad, row0, H, W):
    """Zero every position lying outside the original image.

    Reproduces the per-layer zero padding of the 'same' conv:
    h[a, c] corresponds to original row (row0 - pad + a), col (c - pad).
    """
    R, Cc, _ = h.shape
    row = lax.broadcasted_iota(jnp.int32, (R, Cc, 1), 0) + (row0 - pad)
    col = lax.broadcasted_iota(jnp.int32, (R, Cc, 1), 1) - pad
    ok = (row >= 0) & (row < H) & (col >= 0) & (col < W)
    return jnp.where(ok, h, 0.0)


# ---------------------------------------------------------------------------
# Fused Block_2 kernel: one (batch, row-tile) per grid step
# ---------------------------------------------------------------------------
def block2_kernel(x_hbm,
                  dw1, pw1, b1, dw2, pw2, b2, dw3, pw3, b3,
                  o_ref, xbuf, sem, *, dilation, H, W, tile_h):
    d = dilation
    b = pl.program_id(0)
    i = pl.program_id(1)
    ext = tile_h + 6 * d                         # rows of the halo'd input window

    # Manual async DMA of the overlapping (halo'd) row window from the host-padded
    # HBM array; always in-bounds thanks to the 3d-row host halo.
    row_start = pl.multiple_of(i * tile_h, tile_h)
    cp = pltpu.make_async_copy(x_hbm.at[b, pl.ds(row_start, ext)], xbuf, sem.at[0])
    cp.start()

    # Load the small per-layer weights while the activation DMA is in flight.
    dw1v, dw2v, dw3v = dw1[...], dw2[...], dw3[...]      # (3, 3, Cp) f32
    pw1v, pw2v, pw3v = pw1[...], pw2[...], pw3[...]      # (Cp, Cp) bf16, BN scale folded
    b1v, b2v, b3v = b1[...], b2[...], b3[...]            # (1, Cp) f32

    cp.wait()
    row0 = i * tile_h                                    # first output row of this tile

    def sep_conv_bn(inp, dwv, pwv, biasv):
        acc = _depthwise3x3(inp, dwv, d)
        return _pointwise_mxu(acc, pwv) + biasv          # folded BN: only bias left

    # xbuf covers original rows [row0-3d, row0+tile_h+3d), cols [-3d, W+3d).
    h1 = jnp.maximum(sep_conv_bn(xbuf, dw1v, pw1v, b1v), 0.0)   # (tile_h+4d, W+4d, Cp)
    h1 = _mask_out_of_image(h1, 2 * d, row0, H, W)
    h2 = jnp.maximum(sep_conv_bn(h1, dw2v, pw2v, b2v), 0.0)     # (tile_h+2d, W+2d, Cp)
    h2 = _mask_out_of_image(h2, d, row0, H, W)
    h3 = sep_conv_bn(h2, dw3v, pw3v, b3v)                       # (tile_h,    W,    Cp)

    xc = xbuf[3 * d:3 * d + tile_h, 3 * d:3 * d + W, :]         # residual input slice
    o_ref[0] = jnp.maximum(xc + h3, 0.0).astype(o_ref.dtype)


# ---------------------------------------------------------------------------
# Host-side wrapper
# ---------------------------------------------------------------------------
def fold_and_pad_params(params, c_pad):
    """Fold BN scale into the pointwise weights (bf16 MXU operands) and zero-pad
    all per-channel parameters to the lane-dense channel count."""
    out = []
    for p in params:
        dw, pw, scale, bias = p["dw"], p["pw"], p["scale"], p["bias"]
        C = pw.shape[0]
        pw_folded = (pw * scale.reshape(1, C)).astype(jnp.bfloat16)
        dw_p = jnp.zeros((3, 3, c_pad), jnp.float32).at[:, :, :C].set(dw)
        pw_p = jnp.zeros((c_pad, c_pad), jnp.bfloat16).at[:C, :C].set(pw_folded)
        b_p = jnp.zeros((1, c_pad), jnp.float32).at[:, :C].set(bias.reshape(1, C))
        out.append(dict(dw=dw_p, pw=pw_p, bias=b_p))
    return out


def block2_forward(x, params, dilation=1, tile_h=8):
    B, H, W, C = x.shape
    d = dilation
    assert H % tile_h == 0, "tile_h must divide H"
    c_pad = ((C + 127) // 128) * 128          # lane-dense channels
    halo = 3 * d                              # receptive-field halo of 3 stacked 3x3 convs
    ext = tile_h + 6 * d
    wext = W + 2 * halo

    prepped = fold_and_pad_params(params, c_pad)
    # One-time host-side zero pad: 3d spatial halo + channel pad to a 128 multiple.
    x_pad = jnp.pad(x.astype(jnp.float32),
                    ((0, 0), (halo, halo), (halo, halo), (0, c_pad - C)))

    inputs = [x_pad]
    in_specs = [pl.BlockSpec(memory_space=pl.ANY)]     # raw HBM; manual halo'd DMA
    for p in prepped:
        inputs += [p["dw"], p["pw"], p["bias"]]
        in_specs += [
            pl.BlockSpec((3, 3, c_pad), lambda b, i: (0, 0, 0)),
            pl.BlockSpec((c_pad, c_pad), lambda b, i: (0, 0)),
            pl.BlockSpec((1, c_pad), lambda b, i: (0, 0)),
        ]

    out_padded = pl.pallas_call(
        functools.partial(block2_kernel, dilation=d, H=H, W=W, tile_h=tile_h),
        out_shape=jax.ShapeDtypeStruct((B, H, W, c_pad), x.dtype),
        grid_spec=pltpu.PrefetchScalarGridSpec(
            num_scalar_prefetch=0,
            grid=(B, H // tile_h),
            in_specs=in_specs,
            out_specs=pl.BlockSpec((1, tile_h, W, c_pad), lambda b, i: (b, i, 0, 0)),
            scratch_shapes=[
                pltpu.VMEM((ext, wext, c_pad), jnp.float32),   # halo'd input tile
                pltpu.SemaphoreType.DMA((1,)),
            ],
        ),
        compiler_params=pltpu.CompilerParams(
            # Both axes are independent -> megacore-shardable on v7x even when B == 1.
            dimension_semantics=("parallel", "parallel"),
            # TODO(synk): for production Xception shapes derive tile_h from
            # pltpu.get_tpu_info().vmem_capacity_bytes (64 MiB/TC on v7x vs 128 MiB v5e/v6e).
            vmem_limit_bytes=32 * 1024 * 1024,
        ),
    )(*inputs)
    return out_padded[..., :C]


# ---------------------------------------------------------------------------
# Pure-JAX references
# ---------------------------------------------------------------------------
def ref_block2_f32(x, params, dilation=1):
    """Pure-f32 reference mirroring the PyTorch forward (BN in eval mode)."""
    d = dilation

    def sep_conv(inp, dw, pw):
        C = inp.shape[-1]
        y = lax.conv_general_dilated(
            inp, dw.reshape(3, 3, 1, C), window_strides=(1, 1),
            padding=[(d, d), (d, d)], rhs_dilation=(d, d),
            dimension_numbers=("NHWC", "HWIO", "NHWC"),
            feature_group_count=C, precision=lax.Precision.HIGHEST)
        return jnp.einsum("nhwc,cd->nhwd", y, pw, precision=lax.Precision.HIGHEST)

    def bn(y, scale, bias):
        return y * scale.reshape(1, 1, 1, -1) + bias.reshape(1, 1, 1, -1)

    p1, p2, p3 = params
    h1 = jax.nn.relu(bn(sep_conv(x, p1["dw"], p1["pw"]), p1["scale"], p1["bias"]))
    h2 = jax.nn.relu(bn(sep_conv(h1, p2["dw"], p2["pw"]), p2["scale"], p2["bias"]))
    h3 = bn(sep_conv(h2, p3["dw"], p3["pw"]), p3["scale"], p3["bias"])
    return jax.nn.relu(x + h3)


def ref_block2_matched(x, prepped, dilation=1):
    """Reference reproducing the kernel's numerics (bf16 MXU operands, folded BN scale)."""
    d = dilation
    C = x.shape[-1]

    def sep_conv_bn(inp, dw_p, pw_p, b_p):
        dw = dw_p[:, :, :C]
        pw = pw_p[:C, :C]                       # bf16, BN scale already folded in
        bias = b_p[0, :C]
        acc = lax.conv_general_dilated(
            inp, dw.reshape(3, 3, 1, C), window_strides=(1, 1),
            padding=[(d, d), (d, d)], rhs_dilation=(d, d),
            dimension_numbers=("NHWC", "HWIO", "NHWC"),
            feature_group_count=C, precision=lax.Precision.HIGHEST)
        y = jnp.einsum("nhwc,cd->nhwd", acc.astype(jnp.bfloat16), pw,
                       preferred_element_type=jnp.float32,
                       precision=lax.Precision.HIGHEST)
        return y + bias.reshape(1, 1, 1, C)

    p1, p2, p3 = prepped
    h1 = jax.nn.relu(sep_conv_bn(x, p1["dw"], p1["pw"], p1["bias"]))
    h2 = jax.nn.relu(sep_conv_bn(h1, p2["dw"], p2["pw"], p2["bias"]))
    h3 = sep_conv_bn(h2, p3["dw"], p3["pw"], p3["bias"])
    return jax.nn.relu(x + h3)


if __name__ == "__main__":
    # TODO(synk): SynchronizedBatchNorm2d in train mode uses batch statistics; BN here
    # is applied in inference mode (running stats folded into scale/bias, and the scale
    # further folded into the pointwise weights).
    B, H, W, C = 2, 16, 16, 8        # inplanes == planes (required by the residual add)
    dilation = 1
    eps = 1e-5

    key = jax.random.PRNGKey(0)
    keys = jax.random.split(key, 20)
    x = jax.random.normal(keys[0], (B, H, W, C), jnp.float32)

    params = []
    ki = 1
    for _ in range(3):
        dw = 0.2 * jax.random.normal(keys[ki], (3, 3, C), jnp.float32); ki += 1
        pw = (1.0 / math.sqrt(C)) * jax.random.normal(keys[ki], (C, C), jnp.float32); ki += 1
        gamma = 1.0 + 0.1 * jax.random.normal(keys[ki], (C,), jnp.float32); ki += 1
        beta = 0.1 * jax.random.normal(keys[ki], (C,), jnp.float32); ki += 1
        mean = 0.1 * jax.random.normal(keys[ki], (C,), jnp.float32); ki += 1
        var = jax.random.uniform(keys[ki], (C,), jnp.float32, 0.5, 1.5); ki += 1
        scale = gamma / jnp.sqrt(var + eps)
        bias = beta - mean * scale
        params.append(dict(dw=dw, pw=pw, scale=scale, bias=bias))

    out = block2_forward(x, params, dilation=dilation, tile_h=8)
    jax.block_until_ready(out)

    # (1) strict check against a reference that mirrors the kernel's numerics
    #     (bf16 MXU operands for the pointwise convs, f32 everywhere else).
    c_pad = ((C + 127) // 128) * 128
    ref_m = ref_block2_matched(x, fold_and_pad_params(params, c_pad), dilation)
    err_m = float(jnp.max(jnp.abs(out - ref_m)))
    assert jnp.allclose(out, ref_m, atol=1e-2, rtol=1e-2), err_m

    # (2) sanity check against the pure-f32 PyTorch-faithful reference
    #     (bf16 MXU operands give ~1e-2-level deviations).
    ref_f = ref_block2_f32(x, params, dilation=dilation)
    err_f = float(jnp.max(jnp.abs(out - ref_f)))
    assert jnp.allclose(out, ref_f, atol=1e-1, rtol=1e-1), err_f

    print("KERNEL_OK")
</pallas_src>

<mosaic_0001>
module attributes {stable_mosaic.version = 11 : i64} {
  func.func @block2_kernel(%arg0: i32, %arg1: i32, %arg2: memref<2x22x22x128xf32, #tpu.memory_space<any>>, %arg3: memref<3x3x128xf32, #tpu.memory_space<vmem>>, %arg4: memref<128x128xbf16, #tpu.memory_space<vmem>>, %arg5: memref<1x128xf32, #tpu.memory_space<vmem>>, %arg6: memref<3x3x128xf32, #tpu.memory_space<vmem>>, %arg7: memref<128x128xbf16, #tpu.memory_space<vmem>>, %arg8: memref<1x128xf32, #tpu.memory_space<vmem>>, %arg9: memref<3x3x128xf32, #tpu.memory_space<vmem>>, %arg10: memref<128x128xbf16, #tpu.memory_space<vmem>>, %arg11: memref<1x128xf32, #tpu.memory_space<vmem>>, %arg12: memref<1x8x16x128xf32, #tpu.memory_space<vmem>>, %arg13: memref<14x22x128xf32, #tpu.memory_space<vmem>>, %arg14: memref<1x!tpu.dma_semaphore, #tpu.memory_space<semaphore_mem>>) attributes {dimension_semantics = [#tpu.dimension_semantics<parallel>, #tpu.dimension_semantics<parallel>], iteration_bounds = array<i64: 2, 2>, scalar_prefetch = 0 : i64, scratch_operands = 2 : i64, tpu.core_type = #tpu.core_type<tc>, window_params = [{}, {pipeline_mode = #tpu.pipeline_mode<synchronous>, transform_indices = @transform_1, window_bounds = array<i64: 3, 3, 128>}, {pipeline_mode = #tpu.pipeline_mode<synchronous>, transform_indices = @transform_2, window_bounds = array<i64: 128, 128>}, {pipeline_mode = #tpu.pipeline_mode<synchronous>, transform_indices = @transform_3, window_bounds = array<i64: 1, 128>}, {pipeline_mode = #tpu.pipeline_mode<synchronous>, transform_indices = @transform_4, window_bounds = array<i64: 3, 3, 128>}, {pipeline_mode = #tpu.pipeline_mode<synchronous>, transform_indices = @transform_5, window_bounds = array<i64: 128, 128>}, {pipeline_mode = #tpu.pipeline_mode<synchronous>, transform_indices = @transform_6, window_bounds = array<i64: 1, 128>}, {pipeline_mode = #tpu.pipeline_mode<synchronous>, transform_indices = @transform_7, window_bounds = array<i64: 3, 3, 128>}, {pipeline_mode = #tpu.pipeline_mode<synchronous>, transform_indices = @transform_8, window_bounds = array<i64: 128, 128>}, {pipeline_mode = #tpu.pipeline_mode<synchronous>, transform_indices = @transform_9, window_bounds = array<i64: 1, 128>}, {transform_indices = @transform_10, window_bounds = array<i64: 1, 8, 16, 128>}]} {
    %c8_i32 = arith.constant 8 : i32
    %0 = arith.muli %arg1, %c8_i32 : i32
    %1 = tpu.assume_multiple %0, 8 : i32
    %c0_i32 = arith.constant 0 : i32
    %c0_i32_0 = arith.constant 0 : i32
    %c0_i32_1 = arith.constant 0 : i32
    %2 = tpu.memref_slice %arg2[%arg0, %1, %c0_i32_0, %c0_i32_1] : memref<2x22x22x128xf32, #tpu.memory_space<any>> -> memref<1x14x22x128xf32, #tpu.memory_space<any>>
    %3 = tpu.memref_squeeze %2 : memref<1x14x22x128xf32, #tpu.memory_space<any>> -> memref<14x22x128xf32, #tpu.memory_space<any>>
    %4 = tpu.memref_slice %arg14[%c0_i32] : memref<1x!tpu.dma_semaphore, #tpu.memory_space<semaphore_mem>> -> memref<1x!tpu.dma_semaphore, #tpu.memory_space<semaphore_mem>>
    %5 = tpu.memref_squeeze %4 : memref<1x!tpu.dma_semaphore, #tpu.memory_space<semaphore_mem>> -> memref<!tpu.dma_semaphore, #tpu.memory_space<semaphore_mem>>
    tpu.enqueue_dma source(%3 : memref<14x22x128xf32, #tpu.memory_space<any>>) target(%arg13 : memref<14x22x128xf32, #tpu.memory_space<vmem>>) target_semaphore(%5 : memref<!tpu.dma_semaphore, #tpu.memory_space<semaphore_mem>>)
    %c0 = arith.constant 0 : index
    %c0_2 = arith.constant 0 : index
    %c0_3 = arith.constant 0 : index
    %6 = vector.load %arg3[%c0, %c0_2, %c0_3] : memref<3x3x128xf32, #tpu.memory_space<vmem>>, vector<3x3x128xf32>
    %c0_4 = arith.constant 0 : index
    %c0_5 = arith.constant 0 : index
    %c0_6 = arith.constant 0 : index
    %7 = vector.load %arg6[%c0_4, %c0_5, %c0_6] : memref<3x3x128xf32, #tpu.memory_space<vmem>>, vector<3x3x128xf32>
    %c0_7 = arith.constant 0 : index
    %c0_8 = arith.constant 0 : index
    %c0_9 = arith.constant 0 : index
    %8 = vector.load %arg9[%c0_7, %c0_8, %c0_9] : memref<3x3x128xf32, #tpu.memory_space<vmem>>, vector<3x3x128xf32>
    %c0_10 = arith.constant 0 : index
    %c0_11 = arith.constant 0 : index
    %9 = vector.load %arg4[%c0_10, %c0_11] : memref<128x128xbf16, #tpu.memory_space<vmem>>, vector<128x128xbf16>
    %c0_12 = arith.constant 0 : index
    %c0_13 = arith.constant 0 : index
    %10 = vector.load %arg7[%c0_12, %c0_13] : memref<128x128xbf16, #tpu.memory_space<vmem>>, vector<128x128xbf16>
    %c0_14 = arith.constant 0 : index
    %c0_15 = arith.constant 0 : index
    %11 = vector.load %arg10[%c0_14, %c0_15] : memref<128x128xbf16, #tpu.memory_space<vmem>>, vector<128x128xbf16>
    %c0_16 = arith.constant 0 : index
    %c0_17 = arith.constant 0 : index
    %12 = vector.load %arg5[%c0_16, %c0_17] : memref<1x128xf32, #tpu.memory_space<vmem>>, vector<1x128xf32>
    %c0_18 = arith.constant 0 : index
    %c0_19 = arith.constant 0 : index
    %13 = vector.load %arg8[%c0_18, %c0_19] : memref<1x128xf32, #tpu.memory_space<vmem>>, vector<1x128xf32>
    %c0_20 = arith.constant 0 : index
    %c0_21 = arith.constant 0 : index
    %14 = vector.load %arg11[%c0_20, %c0_21] : memref<1x128xf32, #tpu.memory_space<vmem>>, vector<1x128xf32>
    %c0_i32_22 = arith.constant 0 : i32
    %c0_i32_23 = arith.constant 0 : i32
    %c0_i32_24 = arith.constant 0 : i32
    %15 = tpu.memref_slice %arg2[%arg0, %1, %c0_i32_23, %c0_i32_24] : memref<2x22x22x128xf32, #tpu.memory_space<any>> -> memref<1x14x22x128xf32, #tpu.memory_space<any>>
    %16 = tpu.memref_squeeze %15 : memref<1x14x22x128xf32, #tpu.memory_space<any>> -> memref<14x22x128xf32, #tpu.memory_space<any>>
    %17 = tpu.memref_slice %arg14[%c0_i32_22] : memref<1x!tpu.dma_semaphore, #tpu.memory_space<semaphore_mem>> -> memref<1x!tpu.dma_semaphore, #tpu.memory_space<semaphore_mem>>
    %18 = tpu.memref_squeeze %17 : memref<1x!tpu.dma_semaphore, #tpu.memory_space<semaphore_mem>> -> memref<!tpu.dma_semaphore, #tpu.memory_space<semaphore_mem>>
    tpu.wait_dma2 semaphore(%18 : memref<!tpu.dma_semaphore, #tpu.memory_space<semaphore_mem>>) src(%16 : memref<14x22x128xf32, #tpu.memory_space<any>>) dst(%arg13 : memref<14x22x128xf32, #tpu.memory_space<vmem>>)
    %c8_i32_25 = arith.constant 8 : i32
    %19 = arith.muli %arg1, %c8_i32_25 : i32
    %20 = vector.extract_strided_slice %6 {offsets = [0, 0, 0], sizes = [1, 1, 128], strides = [1, 1, 1]} : vector<3x3x128xf32> to vector<1x1x128xf32>
    %21 = vector.shape_cast %20 : vector<1x1x128xf32> to vector<128xf32>
    %c0_26 = arith.constant 0 : index
    %c0_27 = arith.constant 0 : index
    %c0_28 = arith.constant 0 : index
    %22 = vector.load %arg13[%c0_26, %c0_27, %c0_28] : memref<14x22x128xf32, #tpu.memory_space<vmem>>, vector<12x20x128xf32>
    %23 = vector.shape_cast %21 : vector<128xf32> to vector<1x1x128xf32>
    %24 = vector.broadcast %23 : vector<1x1x128xf32> to vector<12x20x128xf32>
    %25 = arith.mulf %22, %24 : vector<12x20x128xf32>
    %26 = vector.extract_strided_slice %6 {offsets = [0, 1, 0], sizes = [1, 1, 128], strides = [1, 1, 1]} : vector<3x3x128xf32> to vector<1x1x128xf32>
    %27 = vector.shape_cast %26 : vector<1x1x128xf32> to vector<128xf32>
    %c0_29 = arith.constant 0 : index
    %c1 = arith.constant 1 : index
    %c0_30 = arith.constant 0 : index
    %28 = vector.load %arg13[%c0_29, %c1, %c0_30] : memref<14x22x128xf32, #tpu.memory_space<vmem>>, vector<12x20x128xf32>
    %29 = vector.shape_cast %27 : vector<128xf32> to vector<1x1x128xf32>
    %30 = vector.broadcast %29 : vector<1x1x128xf32> to vector<12x20x128xf32>
    %31 = arith.mulf %28, %30 : vector<12x20x128xf32>
    %32 = arith.addf %25, %31 : vector<12x20x128xf32>
    %33 = vector.extract_strided_slice %6 {offsets = [0, 2, 0], sizes = [1, 1, 128], strides = [1, 1, 1]} : vector<3x3x128xf32> to vector<1x1x128xf32>
    %34 = vector.shape_cast %33 : vector<1x1x128xf32> to vector<128xf32>
    %c0_31 = arith.constant 0 : index
    %c2 = arith.constant 2 : index
    %c0_32 = arith.constant 0 : index
    %35 = vector.load %arg13[%c0_31, %c2, %c0_32] : memref<14x22x128xf32, #tpu.memory_space<vmem>>, vector<12x20x128xf32>
    %36 = vector.shape_cast %34 : vector<128xf32> to vector<1x1x128xf32>
    %37 = vector.broadcast %36 : vector<1x1x128xf32> to vector<12x20x128xf32>
    %38 = arith.mulf %35, %37 : vector<12x20x128xf32>
    %39 = arith.addf %32, %38 : vector<12x20x128xf32>
    %40 = vector.extract_strided_slice %6 {offsets = [1, 0, 0], sizes = [1, 1, 128], strides = [1, 1, 1]} : vector<3x3x128xf32> to vector<1x1x128xf32>
    %41 = vector.shape_cast %40 : vector<1x1x128xf32> to vector<128xf32>
    %c1_33 = arith.constant 1 : index
    %c0_34 = arith.constant 0 : index
    %c0_35 = arith.constant 0 : index
    %42 = vector.load %arg13[%c1_33, %c0_34, %c0_35] : memref<14x22x128xf32, #tpu.memory_space<vmem>>, vector<12x20x128xf32>
    %43 = vector.shape_cast %41 : vector<128xf32> to vector<1x1x128xf32>
    %44 = vector.broadcast %43 : vector<1x1x128xf32> to vector<12x20x128xf32>
    %45 = arith.mulf %42, %44 : vector<12x20x128xf32>
    %46 = arith.addf %39, %45 : vector<12x20x128xf32>
    %47 = vector.extract_strided_slice %6 {offsets = [1, 1, 0], sizes = [1, 1, 128], strides = [1, 1, 1]} : vector<3x3x128xf32> to vector<1x1x128xf32>
    %48 = vector.shape_cast %47 : vector<1x1x128xf32> to vector<128xf32>
    %c1_36 = arith.constant 1 : index
    %c1_37 = arith.constant 1 : index
    %c0_38 = arith.constant 0 : index
    %49 = vector.load %arg13[%c1_36, %c1_37, %c0_38] : memref<14x22x128xf32, #tpu.memory_space<vmem>>, vector<12x20x128xf32>
    %50 = vector.shape_cast %48 : vector<128xf32> to vector<1x1x128xf32>
    %51 = vector.broadcast %50 : vector<1x1x128xf32> to vector<12x20x128xf32>
    %52 = arith.mulf %49, %51 : vector<12x20x128xf32>
    %53 = arith.addf %46, %52 : vector<12x20x128xf32>
    %54 = vector.extract_strided_slice %6 {offsets = [1, 2, 0], sizes = [1, 1, 128], strides = [1, 1, 1]} : vector<3x3x128xf32> to vector<1x1x128xf32>
    %55 = vector.shape_cast %54 : vector<1x1x128xf32> to vector<128xf32>
    %c1_39 = arith.constant 1 : index
    %c2_40 = arith.constant 2 : index
    %c0_41 = arith.constant 0 : index
    %56 = vector.load %arg13[%c1_39, %c2_40, %c0_41] : memref<14x22x128xf32, #tpu.memory_space<vmem>>, vector<12x20x128xf32>
    %57 = vector.shape_cast %55 : vector<128xf32> to vector<1x1x128xf32>
    %58 = vector.broadcast %57 : vector<1x1x128xf32> to vector<12x20x128xf32>
    %59 = arith.mulf %56, %58 : vector<12x20x128xf32>
    %60 = arith.addf %53, %59 : vector<12x20x128xf32>
    %61 = vector.extract_strided_slice %6 {offsets = [2, 0, 0], sizes = [1, 1, 128], strides = [1, 1, 1]} : vector<3x3x128xf32> to vector<1x1x128xf32>
    %62 = vector.shape_cast %61 : vector<1x1x128xf32> to vector<128xf32>
    %c2_42 = arith.constant 2 : index
    %c0_43 = arith.constant 0 : index
    %c0_44 = arith.constant 0 : index
    %63 = vector.load %arg13[%c2_42, %c0_43, %c0_44] : memref<14x22x128xf32, #tpu.memory_space<vmem>>, vector<12x20x128xf32>
    %64 = vector.shape_cast %62 : vector<128xf32> to vector<1x1x128xf32>
    %65 = vector.broadcast %64 : vector<1x1x128xf32> to vector<12x20x128xf32>
    %66 = arith.mulf %63, %65 : vector<12x20x128xf32>
    %67 = arith.addf %60, %66 : vector<12x20x128xf32>
    %68 = vector.extract_strided_slice %6 {offsets = [2, 1, 0], sizes = [1, 1, 128], strides = [1, 1, 1]} : vector<3x3x128xf32> to vector<1x1x128xf32>
    %69 = vector.shape_cast %68 : vector<1x1x128xf32> to vector<128xf32>
    %c2_45 = arith.constant 2 : index
    %c1_46 = arith.constant 1 : index
    %c0_47 = arith.constant 0 : index
    %70 = vector.load %arg13[%c2_45, %c1_46, %c0_47] : memref<14x22x128xf32, #tpu.memory_space<vmem>>, vector<12x20x128xf32>
    %71 = vector.shape_cast %69 : vector<128xf32> to vector<1x1x128xf32>
    %72 = vector.broadcast %71 : vector<1x1x128xf32> to vector<12x20x128xf32>
    %73 = arith.mulf %70, %72 : vector<12x20x128xf32>
    %74 = arith.addf %67, %73 : vector<12x20x128xf32>
    %75 = vector.extract_strided_slice %6 {offsets = [2, 2, 0], sizes = [1, 1, 128], strides = [1, 1, 1]} : vector<3x3x128xf32> to vector<1x1x128xf32>
    %76 = vector.shape_cast %75 : vector<1x1x128xf32> to vector<128xf32>
    %c2_48 = arith.constant 2 : index
    %c2_49 = arith.constant 2 : index
    %c0_50 = arith.constant 0 : index
    %77 = vector.load %arg13[%c2_48, %c2_49, %c0_50] : memref<14x22x128xf32, #tpu.memory_space<vmem>>, vector<12x20x128xf32>
    %78 = vector.shape_cast %76 : vector<128xf32> to vector<1x1x128xf32>
    %79 = vector.broadcast %78 : vector<1x1x128xf32> to vector<12x20x128xf32>
    %80 = arith.mulf %77, %79 : vector<12x20x128xf32>
    %81 = arith.addf %74, %80 : vector<12x20x128xf32>
    %cst = arith.constant 0.000000e+00 : f32
    %82 = vector.broadcast %cst : f32 to vector<12x4x128xf32>
    %83 = tpu.concatenate %81, %82 in 1 : vector<12x20x128xf32>, vector<12x4x128xf32> -> vector<12x24x128xf32>
    %84 = vector.shape_cast %83 : vector<12x24x128xf32> to vector<288x128xf32>
    %85 = arith.truncf %84 : vector<288x128xf32> to vector<288x128xbf16>
    %cst_51 = arith.constant dense<0.000000e+00> : vector<288x128xf32>
    %86 = tpu.matmul %85, %9, %cst_51 {dimension_numbers = #tpu.dot_dimension_numbers<[1], [0], [0], [1], [0, 0, 1, 1], [], []>} : vector<288x128xbf16>, vector<128x128xbf16>, vector<288x128xf32> -> vector<288x128xf32>
    %87 = vector.shape_cast %86 : vector<288x128xf32> to vector<12x24x128xf32>
    %88 = vector.extract_strided_slice %87 {offsets = [0, 0, 0], sizes = [12, 20, 128], strides = [1, 1, 1]} : vector<12x24x128xf32> to vector<12x20x128xf32>
    %89 = vector.shape_cast %12 : vector<1x128xf32> to vector<1x1x128xf32>
    %90 = vector.broadcast %89 : vector<1x1x128xf32> to vector<12x20x128xf32>
    %91 = arith.addf %88, %90 : vector<12x20x128xf32>
    %cst_52 = arith.constant 0.000000e+00 : f32
    %92 = vector.broadcast %cst_52 : f32 to vector<12x20x128xf32>
    %93 = arith.maximumf %91, %92 : vector<12x20x128xf32>
    %94 = tpu.iota {dimensions = array<i32: 0>} : vector<12x20x1xi32>
    %c2_i32 = arith.constant 2 : i32
    %95 = arith.subi %19, %c2_i32 : i32
    %96 = vector.broadcast %95 : i32 to vector<12x20x1xi32>
    %97 = arith.addi %94, %96 : vector<12x20x1xi32>
    %98 = tpu.iota {dimensions = array<i32: 1>} : vector<12x20x1xi32>
    %c2_i32_53 = arith.constant 2 : i32
    %99 = vector.broadcast %c2_i32_53 : i32 to vector<12x20x1xi32>
    %100 = arith.subi %98, %99 : vector<12x20x1xi32>
    %c0_i32_54 = arith.constant 0 : i32
    %101 = vector.broadcast %c0_i32_54 : i32 to vector<12x20x1xi32>
    %102 = arith.cmpi sge, %97, %101 : vector<12x20x1xi32>
    %c16_i32 = arith.constant 16 : i32
    %103 = vector.broadcast %c16_i32 : i32 to vector<12x20x1xi32>
    %104 = arith.cmpi slt, %97, %103 : vector<12x20x1xi32>
    %105 = arith.andi %102, %104 : vector<12x20x1xi1>
    %c0_i32_55 = arith.constant 0 : i32
    %106 = vector.broadcast %c0_i32_55 : i32 to vector<12x20x1xi32>
    %107 = arith.cmpi sge, %100, %106 : vector<12x20x1xi32>
    %108 = arith.andi %105, %107 : vector<12x20x1xi1>
    %c16_i32_56 = arith.constant 16 : i32
    %109 = vector.broadcast %c16_i32_56 : i32 to vector<12x20x1xi32>
    %110 = arith.cmpi slt, %100, %109 : vector<12x20x1xi32>
    %111 = arith.andi %108, %110 : vector<12x20x1xi1>
    %cst_57 = arith.constant 0.000000e+00 : f32
    %112 = vector.shape_cast %111 : vector<12x20x1xi1> to vector<12x20x1xi1>
    %113 = vector.broadcast %112 : vector<12x20x1xi1> to vector<12x20x128xi1>
    %114 = vector.broadcast %cst_57 : f32 to vector<12x20x128xf32>
    %115 = arith.select %113, %93, %114 : vector<12x20x128xi1>, vector<12x20x128xf32>
    %116 = vector.extract_strided_slice %7 {offsets = [0, 0, 0], sizes = [1, 1, 128], strides = [1, 1, 1]} : vector<3x3x128xf32> to vector<1x1x128xf32>
    %117 = vector.shape_cast %116 : vector<1x1x128xf32> to vector<128xf32>
    %118 = vector.extract_strided_slice %115 {offsets = [0, 0, 0], sizes = [10, 18, 128], strides = [1, 1, 1]} : vector<12x20x128xf32> to vector<10x18x128xf32>
    %119 = vector.shape_cast %117 : vector<128xf32> to vector<1x1x128xf32>
    %120 = vector.broadcast %119 : vector<1x1x128xf32> to vector<10x18x128xf32>
    %121 = arith.mulf %118, %120 : vector<10x18x128xf32>
    %122 = vector.extract_strided_slice %7 {offsets = [0, 1, 0], sizes = [1, 1, 128], strides = [1, 1, 1]} : vector<3x3x128xf32> to vector<1x1x128xf32>
    %123 = vector.shape_cast %122 : vector<1x1x128xf32> to vector<128xf32>
    %124 = vector.extract_strided_slice %115 {offsets = [0, 1, 0], sizes = [10, 18, 128], strides = [1, 1, 1]} : vector<12x20x128xf32> to vector<10x18x128xf32>
    %125 = vector.shape_cast %123 : vector<128xf32> to vector<1x1x128xf32>
    %126 = vector.broadcast %125 : vector<1x1x128xf32> to vector<10x18x128xf32>
    %127 = arith.mulf %124, %126 : vector<10x18x128xf32>
    %128 = arith.addf %121, %127 : vector<10x18x128xf32>
    %129 = vector.extract_strided_slice %7 {offsets = [0, 2, 0], sizes = [1, 1, 128], strides = [1, 1, 1]} : vector<3x3x128xf32> to vector<1x1x128xf32>
    %130 = vector.shape_cast %129 : vector<1x1x128xf32> to vector<128xf32>
    %131 = vector.extract_strided_slice %115 {offsets = [0, 2, 0], sizes = [10, 18, 128], strides = [1, 1, 1]} : vector<12x20x128xf32> to vector<10x18x128xf32>
    %132 = vector.shape_cast %130 : vector<128xf32> to vector<1x1x128xf32>
    %133 = vector.broadcast %132 : vector<1x1x128xf32> to vector<10x18x128xf32>
    %134 = arith.mulf %131, %133 : vector<10x18x128xf32>
    %135 = arith.addf %128, %134 : vector<10x18x128xf32>
    %136 = vector.extract_strided_slice %7 {offsets = [1, 0, 0], sizes = [1, 1, 128], strides = [1, 1, 1]} : vector<3x3x128xf32> to vector<1x1x128xf32>
    %137 = vector.shape_cast %136 : vector<1x1x128xf32> to vector<128xf32>
    %138 = vector.extract_strided_slice %115 {offsets = [1, 0, 0], sizes = [10, 18, 128], strides = [1, 1, 1]} : vector<12x20x128xf32> to vector<10x18x128xf32>
    %139 = vector.shape_cast %137 : vector<128xf32> to vector<1x1x128xf32>
    %140 = vector.broadcast %139 : vector<1x1x128xf32> to vector<10x18x128xf32>
    %141 = arith.mulf %138, %140 : vector<10x18x128xf32>
    %142 = arith.addf %135, %141 : vector<10x18x128xf32>
    %143 = vector.extract_strided_slice %7 {offsets = [1, 1, 0], sizes = [1, 1, 128], strides = [1, 1, 1]} : vector<3x3x128xf32> to vector<1x1x128xf32>
    %144 = vector.shape_cast %143 : vector<1x1x128xf32> to vector<128xf32>
    %145 = vector.extract_strided_slice %115 {offsets = [1, 1, 0], sizes = [10, 18, 128], strides = [1, 1, 1]} : vector<12x20x128xf32> to vector<10x18x128xf32>
    %146 = vector.shape_cast %144 : vector<128xf32> to vector<1x1x128xf32>
    %147 = vector.broadcast %146 : vector<1x1x128xf32> to vector<10x18x128xf32>
    %148 = arith.mulf %145, %147 : vector<10x18x128xf32>
    %149 = arith.addf %142, %148 : vector<10x18x128xf32>
    %150 = vector.extract_strided_slice %7 {offsets = [1, 2, 0], sizes = [1, 1, 128], strides = [1, 1, 1]} : vector<3x3x128xf32> to vector<1x1x128xf32>
    %151 = vector.shape_cast %150 : vector<1x1x128xf32> to vector<128xf32>
    %152 = vector.extract_strided_slice %115 {offsets = [1, 2, 0], sizes = [10, 18, 128], strides = [1, 1, 1]} : vector<12x20x128xf32> to vector<10x18x128xf32>
    %153 = vector.shape_cast %151 : vector<128xf32> to vector<1x1x128xf32>
    %154 = vector.broadcast %153 : vector<1x1x128xf32> to vector<10x18x128xf32>
    %155 = arith.mulf %152, %154 : vector<10x18x128xf32>
    %156 = arith.addf %149, %155 : vector<10x18x128xf32>
    %157 = vector.extract_strided_slice %7 {offsets = [2, 0, 0], sizes = [1, 1, 128], strides = [1, 1, 1]} : vector<3x3x128xf32> to vector<1x1x128xf32>
    %158 = vector.shape_cast %157 : vector<1x1x128xf32> to vector<128xf32>
    %159 = vector.extract_strided_slice %115 {offsets = [2, 0, 0], sizes = [10, 18, 128], strides = [1, 1, 1]} : vector<12x20x128xf32> to vector<10x18x128xf32>
    %160 = vector.shape_cast %158 : vector<128xf32> to vector<1x1x128xf32>
    %161 = vector.broadcast %160 : vector<1x1x128xf32> to vector<10x18x128xf32>
    %162 = arith.mulf %159, %161 : vector<10x18x128xf32>
    %163 = arith.addf %156, %162 : vector<10x18x128xf32>
    %164 = vector.extract_strided_slice %7 {offsets = [2, 1, 0], sizes = [1, 1, 128], strides = [1, 1, 1]} : vector<3x3x128xf32> to vector<1x1x128xf32>
    %165 = vector.shape_cast %164 : vector<1x1x128xf32> to vector<128xf32>
    %166 = vector.extract_strided_slice %115 {offsets = [2, 1, 0], sizes = [10, 18, 128], strides = [1, 1, 1]} : vector<12x20x128xf32> to vector<10x18x128xf32>
    %167 = vector.shape_cast %165 : vector<128xf32> to vector<1x1x128xf32>
    %168 = vector.broadcast %167 : vector<1x1x128xf32> to vector<10x18x128xf32>
    %169 = arith.mulf %166, %168 : vector<10x18x128xf32>
    %170 = arith.addf %163, %169 : vector<10x18x128xf32>
    %171 = vector.extract_strided_slice %7 {offsets = [2, 2, 0], sizes = [1, 1, 128], strides = [1, 1, 1]} : vector<3x3x128xf32> to vector<1x1x128xf32>
    %172 = vector.shape_cast %171 : vector<1x1x128xf32> to vector<128xf32>
    %173 = vector.extract_strided_slice %115 {offsets = [2, 2, 0], sizes = [10, 18, 128], strides = [1, 1, 1]} : vector<12x20x128xf32> to vector<10x18x128xf32>
    %174 = vector.shape_cast %172 : vector<128xf32> to vector<1x1x128xf32>
    %175 = vector.broadcast %174 : vector<1x1x128xf32> to vector<10x18x128xf32>
    %176 = arith.mulf %173, %175 : vector<10x18x128xf32>
    %177 = arith.addf %170, %176 : vector<10x18x128xf32>
    %cst_58 = arith.constant 0.000000e+00 : f32
    %178 = vector.broadcast %cst_58 : f32 to vector<10x6x128xf32>
    %179 = tpu.concatenate %177, %178 in 1 : vector<10x18x128xf32>, vector<10x6x128xf32> -> vector<10x24x128xf32>
    %180 = vector.shape_cast %179 : vector<10x24x128xf32> to vector<240x128xf32>
    %181 = arith.truncf %180 : vector<240x128xf32> to vector<240x128xbf16>
    %cst_59 = arith.constant dense<0.000000e+00> : vector<240x128xf32>
    %182 = tpu.matmul %181, %10, %cst_59 {dimension_numbers = #tpu.dot_dimension_numbers<[1], [0], [0], [1], [0, 0, 1, 1], [], []>} : vector<240x128xbf16>, vector<128x128xbf16>, vector<240x128xf32> -> vector<240x128xf32>
    %183 = vector.shape_cast %182 : vector<240x128xf32> to vector<10x24x128xf32>
    %184 = vector.extract_strided_slice %183 {offsets = [0, 0, 0], sizes = [10, 18, 128], strides = [1, 1, 1]} : vector<10x24x128xf32> to vector<10x18x128xf32>
    %185 = vector.shape_cast %13 : vector<1x128xf32> to vector<1x1x128xf32>
    %186 = vector.broadcast %185 : vector<1x1x128xf32> to vector<10x18x128xf32>
    %187 = arith.addf %184, %186 : vector<10x18x128xf32>
    %cst_60 = arith.constant 0.000000e+00 : f32
    %188 = vector.broadcast %cst_60 : f32 to vector<10x18x128xf32>
    %189 = arith.maximumf %187, %188 : vector<10x18x128xf32>
    %190 = tpu.iota {dimensions = array<i32: 0>} : vector<10x18x1xi32>
    %c1_i32 = arith.constant 1 : i32
    %191 = arith.subi %19, %c1_i32 : i32
    %192 = vector.broadcast %191 : i32 to vector<10x18x1xi32>
    %193 = arith.addi %190, %192 : vector<10x18x1xi32>
    %194 = tpu.iota {dimensions = array<i32: 1>} : vector<10x18x1xi32>
    %c1_i32_61 = arith.constant 1 : i32
    %195 = vector.broadcast %c1_i32_61 : i32 to vector<10x18x1xi32>
    %196 = arith.subi %194, %195 : vector<10x18x1xi32>
    %c0_i32_62 = arith.constant 0 : i32
    %197 = vector.broadcast %c0_i32_62 : i32 to vector<10x18x1xi32>
    %198 = arith.cmpi sge, %193, %197 : vector<10x18x1xi32>
    %c16_i32_63 = arith.constant 16 : i32
    %199 = vector.broadcast %c16_i32_63 : i32 to vector<10x18x1xi32>
    %200 = arith.cmpi slt, %193, %199 : vector<10x18x1xi32>
    %201 = arith.andi %198, %200 : vector<10x18x1xi1>
    %c0_i32_64 = arith.constant 0 : i32
    %202 = vector.broadcast %c0_i32_64 : i32 to vector<10x18x1xi32>
    %203 = arith.cmpi sge, %196, %202 : vector<10x18x1xi32>
    %204 = arith.andi %201, %203 : vector<10x18x1xi1>
    %c16_i32_65 = arith.constant 16 : i32
    %205 = vector.broadcast %c16_i32_65 : i32 to vector<10x18x1xi32>
    %206 = arith.cmpi slt, %196, %205 : vector<10x18x1xi32>
    %207 = arith.andi %204, %206 : vector<10x18x1xi1>
    %cst_66 = arith.constant 0.000000e+00 : f32
    %208 = vector.shape_cast %207 : vector<10x18x1xi1> to vector<10x18x1xi1>
    %209 = vector.broadcast %208 : vector<10x18x1xi1> to vector<10x18x128xi1>
    %210 = vector.broadcast %cst_66 : f32 to vector<10x18x128xf32>
    %211 = arith.select %209, %189, %210 : vector<10x18x128xi1>, vector<10x18x128xf32>
    %212 = vector.extract_strided_slice %8 {offsets = [0, 0, 0], sizes = [1, 1, 128], strides = [1, 1, 1]} : vector<3x3x128xf32> to vector<1x1x128xf32>
    %213 = vector.shape_cast %212 : vector<1x1x128xf32> to vector<128xf32>
    %214 = vector.extract_strided_slice %211 {offsets = [0, 0, 0], sizes = [8, 16, 128], strides = [1, 1, 1]} : vector<10x18x128xf32> to vector<8x16x128xf32>
    %215 = vector.shape_cast %213 : vector<128xf32> to vector<1x1x128xf32>
    %216 = vector.broadcast %215 : vector<1x1x128xf32> to vector<8x16x128xf32>
    %217 = arith.mulf %214, %216 : vector<8x16x128xf32>
    %218 = vector.extract_strided_slice %8 {offsets = [0, 1, 0], sizes = [1, 1, 128], strides = [1, 1, 1]} : vector<3x3x128xf32> to vector<1x1x128xf32>
    %219 = vector.shape_cast %218 : vector<1x1x128xf32> to vector<128xf32>
    %220 = vector.extract_strided_slice %211 {offsets = [0, 1, 0], sizes = [8, 16, 128], strides = [1, 1, 1]} : vector<10x18x128xf32> to vector<8x16x128xf32>
    %221 = vector.shape_cast %219 : vector<128xf32> to vector<1x1x128xf32>
    %222 = vector.broadcast %221 : vector<1x1x128xf32> to vector<8x16x128xf32>
    %223 = arith.mulf %220, %222 : vector<8x16x128xf32>
    %224 = arith.addf %217, %223 : vector<8x16x128xf32>
    %225 = vector.extract_strided_slice %8 {offsets = [0, 2, 0], sizes = [1, 1, 128], strides = [1, 1, 1]} : vector<3x3x128xf32> to vector<1x1x128xf32>
    %226 = vector.shape_cast %225 : vector<1x1x128xf32> to vector<128xf32>
    %227 = vector.extract_strided_slice %211 {offsets = [0, 2, 0], sizes = [8, 16, 128], strides = [1, 1, 1]} : vector<10x18x128xf32> to vector<8x16x128xf32>
    %228 = vector.shape_cast %226 : vector<128xf32> to vector<1x1x128xf32>
    %229 = vector.broadcast %228 : vector<1x1x128xf32> to vector<8x16x128xf32>
    %230 = arith.mulf %227, %229 : vector<8x16x128xf32>
    %231 = arith.addf %224, %230 : vector<8x16x128xf32>
    %232 = vector.extract_strided_slice %8 {offsets = [1, 0, 0], sizes = [1, 1, 128], strides = [1, 1, 1]} : vector<3x3x128xf32> to vector<1x1x128xf32>
    %233 = vector.shape_cast %232 : vector<1x1x128xf32> to vector<128xf32>
    %234 = vector.extract_strided_slice %211 {offsets = [1, 0, 0], sizes = [8, 16, 128], strides = [1, 1, 1]} : vector<10x18x128xf32> to vector<8x16x128xf32>
    %235 = vector.shape_cast %233 : vector<128xf32> to vector<1x1x128xf32>
    %236 = vector.broadcast %235 : vector<1x1x128xf32> to vector<8x16x128xf32>
    %237 = arith.mulf %234, %236 : vector<8x16x128xf32>
    %238 = arith.addf %231, %237 : vector<8x16x128xf32>
    %239 = vector.extract_strided_slice %8 {offsets = [1, 1, 0], sizes = [1, 1, 128], strides = [1, 1, 1]} : vector<3x3x128xf32> to vector<1x1x128xf32>
    %240 = vector.shape_cast %239 : vector<1x1x128xf32> to vector<128xf32>
    %241 = vector.extract_strided_slice %211 {offsets = [1, 1, 0], sizes = [8, 16, 128], strides = [1, 1, 1]} : vector<10x18x128xf32> to vector<8x16x128xf32>
    %242 = vector.shape_cast %240 : vector<128xf32> to vector<1x1x128xf32>
    %243 = vector.broadcast %242 : vector<1x1x128xf32> to vector<8x16x128xf32>
    %244 = arith.mulf %241, %243 : vector<8x16x128xf32>
    %245 = arith.addf %238, %244 : vector<8x16x128xf32>
    %246 = vector.extract_strided_slice %8 {offsets = [1, 2, 0], sizes = [1, 1, 128], strides = [1, 1, 1]} : vector<3x3x128xf32> to vector<1x1x128xf32>
    %247 = vector.shape_cast %246 : vector<1x1x128xf32> to vector<128xf32>
    %248 = vector.extract_strided_slice %211 {offsets = [1, 2, 0], sizes = [8, 16, 128], strides = [1, 1, 1]} : vector<10x18x128xf32> to vector<8x16x128xf32>
    %249 = vector.shape_cast %247 : vector<128xf32> to vector<1x1x128xf32>
    %250 = vector.broadcast %249 : vector<1x1x128xf32> to vector<8x16x128xf32>
    %251 = arith.mulf %248, %250 : vector<8x16x128xf32>
    %252 = arith.addf %245, %251 : vector<8x16x128xf32>
    %253 = vector.extract_strided_slice %8 {offsets = [2, 0, 0], sizes = [1, 1, 128], strides = [1, 1, 1]} : vector<3x3x128xf32> to vector<1x1x128xf32>
    %254 = vector.shape_cast %253 : vector<1x1x128xf32> to vector<128xf32>
    %255 = vector.extract_strided_slice %211 {offsets = [2, 0, 0], sizes = [8, 16, 128], strides = [1, 1, 1]} : vector<10x18x128xf32> to vector<8x16x128xf32>
    %256 = vector.shape_cast %254 : vector<128xf32> to vector<1x1x128xf32>
    %257 = vector.broadcast %256 : vector<1x1x128xf32> to vector<8x16x128xf32>
    %258 = arith.mulf %255, %257 : vector<8x16x128xf32>
    %259 = arith.addf %252, %258 : vector<8x16x128xf32>
    %260 = vector.extract_strided_slice %8 {offsets = [2, 1, 0], sizes = [1, 1, 128], strides = [1, 1, 1]} : vector<3x3x128xf32> to vector<1x1x128xf32>
    %261 = vector.shape_cast %260 : vector<1x1x128xf32> to vector<128xf32>
    %262 = vector.extract_strided_slice %211 {offsets = [2, 1, 0], sizes = [8, 16, 128], strides = [1, 1, 1]} : vector<10x18x128xf32> to vector<8x16x128xf32>
    %263 = vector.shape_cast %261 : vector<128xf32> to vector<1x1x128xf32>
    %264 = vector.broadcast %263 : vector<1x1x128xf32> to vector<8x16x128xf32>
    %265 = arith.mulf %262, %264 : vector<8x16x128xf32>
    %266 = arith.addf %259, %265 : vector<8x16x128xf32>
    %267 = vector.extract_strided_slice %8 {offsets = [2, 2, 0], sizes = [1, 1, 128], strides = [1, 1, 1]} : vector<3x3x128xf32> to vector<1x1x128xf32>
    %268 = vector.shape_cast %267 : vector<1x1x128xf32> to vector<128xf32>
    %269 = vector.extract_strided_slice %211 {offsets = [2, 2, 0], sizes = [8, 16, 128], strides = [1, 1, 1]} : vector<10x18x128xf32> to vector<8x16x128xf32>
    %270 = vector.shape_cast %268 : vector<128xf32> to vector<1x1x128xf32>
    %271 = vector.broadcast %270 : vector<1x1x128xf32> to vector<8x16x128xf32>
    %272 = arith.mulf %269, %271 : vector<8x16x128xf32>
    %273 = arith.addf %266, %272 : vector<8x16x128xf32>
    %274 = vector.shape_cast %273 : vector<8x16x128xf32> to vector<128x128xf32>
    %275 = arith.truncf %274 : vector<128x128xf32> to vector<128x128xbf16>
    %cst_67 = arith.constant dense<0.000000e+00> : vector<128x128xf32>
    %276 = tpu.matmul %275, %11, %cst_67 {dimension_numbers = #tpu.dot_dimension_numbers<[1], [0], [0], [1], [0, 0, 1, 1], [], []>} : vector<128x128xbf16>, vector<128x128xbf16>, vector<128x128xf32> -> vector<128x128xf32>
    %277 = vector.shape_cast %276 : vector<128x128xf32> to vector<8x16x128xf32>
    %278 = vector.shape_cast %14 : vector<1x128xf32> to vector<1x1x128xf32>
    %279 = vector.broadcast %278 : vector<1x1x128xf32> to vector<8x16x128xf32>
    %280 = arith.addf %277, %279 : vector<8x16x128xf32>
    %c3 = arith.constant 3 : index
    %c3_68 = arith.constant 3 : index
    %c0_69 = arith.constant 0 : index
    %281 = vector.load %arg13[%c3, %c3_68, %c0_69] : memref<14x22x128xf32, #tpu.memory_space<vmem>>, vector<8x16x128xf32>
    %282 = arith.addf %281, %280 : vector<8x16x128xf32>
    %cst_70 = arith.constant 0.000000e+00 : f32
    %283 = vector.broadcast %cst_70 : f32 to vector<8x16x128xf32>
    %284 = arith.maximumf %282, %283 : vector<8x16x128xf32>
    %c0_71 = arith.constant 0 : index
    %c0_72 = arith.constant 0 : index
    %c0_73 = arith.constant 0 : index
    %c0_74 = arith.constant 0 : index
    %285 = vector.load %arg12[%c0_71, %c0_72, %c0_73, %c0_74] : memref<1x8x16x128xf32, #tpu.memory_space<vmem>>, vector<1x8x16x128xf32>
    %286 = vector.shape_cast %285 : vector<1x8x16x128xf32> to vector<8x16x128xf32>
    %287 = vector.shape_cast %284 : vector<8x16x128xf32> to vector<1x8x16x128xf32>
    tpu.vector_store %arg12[%c0_71, %c0_72, %c0_73, %c0_74], %287 {strides = array<i32>} : memref<1x8x16x128xf32, #tpu.memory_space<vmem>>, vector<1x8x16x128xf32>,
    return
  }
  func.func @transform_1(%arg0: i32, %arg1: i32) -> (i32, i32, i32) {
    %c0_i32 = arith.constant 0 : i32
    %c0_i32_0 = arith.constant 0 : i32
    %c0_i32_1 = arith.constant 0 : i32
    %c0_i32_2 = arith.constant 0 : i32
    return %c0_i32, %c0_i32_0, %c0_i32_1 : i32, i32, i32
  }
  func.func @transform_2(%arg0: i32, %arg1: i32) -> (i32, i32) {
    %c0_i32 = arith.constant 0 : i32
    %c0_i32_0 = arith.constant 0 : i32
    %c0_i32_1 = arith.constant 0 : i32
    return %c0_i32, %c0_i32_0 : i32, i32
  }
  func.func @transform_3(%arg0: i32, %arg1: i32) -> (i32, i32) {
    %c0_i32 = arith.constant 0 : i32
    %c0_i32_0 = arith.constant 0 : i32
    %c0_i32_1 = arith.constant 0 : i32
    return %c0_i32, %c0_i32_0 : i32, i32
  }
  func.func @transform_4(%arg0: i32, %arg1: i32) -> (i32, i32, i32) {
    %c0_i32 = arith.constant 0 : i32
    %c0_i32_0 = arith.constant 0 : i32
    %c0_i32_1 = arith.constant 0 : i32
    %c0_i32_2 = arith.constant 0 : i32
    return %c0_i32, %c0_i32_0, %c0_i32_1 : i32, i32, i32
  }
  func.func @transform_5(%arg0: i32, %arg1: i32) -> (i32, i32) {
    %c0_i32 = arith.constant 0 : i32
    %c0_i32_0 = arith.constant 0 : i32
    %c0_i32_1 = arith.constant 0 : i32
    return %c0_i32, %c0_i32_0 : i32, i32
  }
  func.func @transform_6(%arg0: i32, %arg1: i32) -> (i32, i32) {
    %c0_i32 = arith.constant 0 : i32
    %c0_i32_0 = arith.constant 0 : i32
    %c0_i32_1 = arith.constant 0 : i32
    return %c0_i32, %c0_i32_0 : i32, i32
  }
  func.func @transform_7(%arg0: i32, %arg1: i32) -> (i32, i32, i32) {
    %c0_i32 = arith.constant 0 : i32
    %c0_i32_0 = arith.constant 0 : i32
    %c0_i32_1 = arith.constant 0 : i32
    %c0_i32_2 = arith.constant 0 : i32
    return %c0_i32, %c0_i32_0, %c0_i32_1 : i32, i32, i32
  }
  func.func @transform_8(%arg0: i32, %arg1: i32) -> (i32, i32) {
    %c0_i32 = arith.constant 0 : i32
    %c0_i32_0 = arith.constant 0 : i32
    %c0_i32_1 = arith.constant 0 : i32
    return %c0_i32, %c0_i32_0 : i32, i32
  }
  func.func @transform_9(%arg0: i32, %arg1: i32) -> (i32, i32) {
    %c0_i32 = arith.constant 0 : i32
    %c0_i32_0 = arith.constant 0 : i32
    %c0_i32_1 = arith.constant 0 : i32
    return %c0_i32, %c0_i32_0 : i32, i32
  }
  func.func @transform_10(%arg0: i32, %arg1: i32) -> (i32, i32, i32, i32) {
    %c0_i32 = arith.constant 0 : i32
    %c0_i32_0 = arith.constant 0 : i32
    %c0_i32_1 = arith.constant 0 : i32
    return %arg0, %arg1, %c0_i32, %c0_i32_0 : i32, i32, i32, i32
  }
}

</mosaic_0001>

<bundles_post_ra>
// kernel: tpu_custom_call.1
= control target key start
LH: loop header
LB: loop body
LE: loop exit
PB: predicated region body
PF: predicated region fallthrough
CT: control target
= control target key end

     0   :  { %s9338_s0 = inlined_call_operand.vmem [shape: f32[2,22,22,128], index: 0, kind: input, shape index: {}]   ;;  %s9339_s1 = inlined_call_operand.vmem [shape: f32[3,3,128], index: 1, kind: input, shape index: {}]   ;;  %s9340_s2 = inlined_call_operand.vmem [shape: bf16[128,128], index: 2, kind: input, shape index: {}]   ;;  %s9341_s3 = inlined_call_operand.vmem [shape: f32[1,128], index: 3, kind: input, shape index: {}]   ;;  %s9342_s4 = inlined_call_operand.vmem [shape: f32[3,3,128], index: 4, kind: input, shape index: {}]   ;;  %s9343_s5 = inlined_call_operand.vmem [shape: bf16[128,128], index: 5, kind: input, shape index: {}]   ;;  %s9344_s6 = inlined_call_operand.vmem [shape: f32[1,128], index: 6, kind: input, shape index: {}]   ;;  %s9345_s7 = inlined_call_operand.vmem [shape: f32[3,3,128], index: 7, kind: input, shape index: {}]   ;;  %s9346_s8 = inlined_call_operand.vmem [shape: bf16[128,128], index: 8, kind: input, shape index: {}]   ;;  %s9347_s9 = inlined_call_operand.vmem [shape: f32[1,128], index: 9, kind: input, shape index: {}]   ;;  %s9348_s10 = inlined_call_operand.hbm [shape: f32[2,16,16,128], index: 10, kind: output, shape index: {}]  }
   0x1   :  { %9457 = sst [smem:[#allocation92_spill]] %s9338_s0 }
   0x2   :  { %9458 = sst [smem:[#allocation93_spill]] %s9339_s1 }
   0x3   :  { %15 = vsyncpa [#allocation5], 0 }
   0x4   :  { %17 = vsyncpa [#allocation5 + $0x1], 0  ;;  %s5580_s13 = smov 0   ;;  %s5582_s14 = smov 0  }
   0x5   :  { %s5584_s15 = smov 0   ;;  %s5586_s16 = smov 0  }
   0x6   :  { %s5588_s17 = smov 0   ;;  %s5590_s18 = smov 0  }
   0x7   :  { %s5592_s19 = smov 0   ;;  %s5594_s20 = smov 0  }
   0x8 LB: > { %9459 = sst [smem:[#allocation9_spill]] %s5509_s18  ;;  %s4989_s21 = sadd.s32 4294967295, %s5517_s20   ;;  %s5517_s20 = sphi %s5594_s20, %s23_s20   ;;  %s5513_s19 = sphi %s5592_s19, %s9850_s19   ;;  %s5509_s18 = sphi %s5590_s18, %s9849_s18   ;;  %s5505_s17 = sphi %s5588_s17, %s9848_s17   ;;  %s5501_s16 = sphi %s5586_s16, %s9847_s16   ;;  %s5497_s15 = sphi %s5584_s15, %s9853_s15   ;;  %s5493_s14 = sphi %s5582_s14, %s9852_s14   ;;  %s5489_s13 = sphi %s5580_s13, %s9851_s13  }
   0x9   : > { %9460 = sst [smem:[#allocation10_spill]] %s5513_s19  ;;  %s4990_s22 = sadd.s32 4294967294, %s5517_s20  }
   0xa   : > { %s32_s23 = sadd.s32 1, %s5509_s18  ;;  %s35_s24 = sadd.s32 1, %s5513_s19 }
   0xb   : > { %p33_p0 = scmp.ge.s32.totalorder %s32_s23, 2  ;;  %p243_p1 = scmp.ne.s32.totalorder %s5497_s15, %s5493_s14 }
   0xc   : > { %p244_p2 = scmp.eq.s32.totalorder %s4989_s21, 3  ;;  %p249_p5 = scmp.ne.s32.totalorder %s5493_s14, %s5489_s13 }
   0xd   : > { %s9855_s23 = smov (%p33_p0, %s32_s23), 0  ;;  %s9857_s24 = smov (!%p33_p0, %s35_s24), %s5513_s19 }
   0xe   : > { %9461 = sst [smem:[#allocation11_spill]] %s9855_s23  ;;  %s229_s25 = ssub.s32 %s5509_s18, %s9855_s23 }
   0xf   : > { %p5631_p3 = por %p244_p2, %p243_p1  ;;  %p37_p4 = scmp.ge.s32.totalorder %s9857_s24, 2 }
  0x10   : > { %p250_p6 = scmp.eq.s32.totalorder %s4990_s22, 3  ;;  %p4992_p7 = scmp.ge.s32.totalorder %s5517_s20, 1 }
  0x11   : > { %s9859_s24 = smov (%p37_p4, %s9857_s24), 0  ;;  %p295_p9 = scmp.lt.s32.totalorder %s5517_s20, 5 }
  0x12   : > { %9463 = sst [smem:[#allocation12_spill]] %s9859_s24  ;;  %p5640_p8 = por %p250_p6, %p249_p5 }
  0x13   : > { %s228_s28 = ssub.s32 %s5513_s19, %s9859_s24  ;;  %s233_s29 = sadd.s32 1, %s5497_s15 }
  0x14   : > { %s230_s30 = sor.u32 %s229_s25, %s228_s28  ;;  %p296_p10 = pnand %p4992_p7, %p295_p9 }
  0x15   : > { %p231_p11 = scmp.eq.s32.totalorder %s230_s30, 0 }
  0x16   : > { %299 = sbr.rel (%p296_p10) target bundleno = 1089 (0x441), region = 56 }
  0x17   : > { %s5649_s11 = scalar_select %p231_p11, %s5497_s15, %s233_s29  }
  0x1d   : > { %s9353_s12 = sand.u32 1, %s5493_s14   ;;  %s4995_s23 = smul.u32 192, %s5501_s16 }
  0x1e   : > { %s5655_s22 = sshll.u32 %s9353_s12, 7  ;;  %s330_s18 = smul.u32 528, %s5505_s17 }
  0x1f   : > { %s9465_s0 = sld [smem:[#allocation92_spill]] }
  0x20   : > { %s331_s24 = sadd.s32 %s4995_s23, %s330_s18  ;;  %s5707_s18 = scalar_lea.vmem [#allocation4], %s5655_s22 }
  0x25   : > { %s5662_s28 = scalar_lea.vmem %s9465_s0, %s331_s24 }
  0x26   : > { %v396_v0 = vld [vmem:[%s5662_s28] sm:$0xff]  ;;  %v398_v1 = vld [vmem:[%s5662_s28 + $0x8] sm:$0xff]  ;;  %v400_v2 = vld [vmem:[%s5662_s28 + $0x18] sm:$0xff] }
  0x27   : > { %397 = vst [vmem:[#allocation2] sm:$0xff] %v396_v0  ;;  %399 = vst [vmem:[#allocation2 + $0x8] sm:$0xff] %v398_v1  ;;  %v402_v3 = vld [vmem:[%s5662_s28 + $0x20] sm:$0xff]  ;;  %v404_v4 = vld [vmem:[%s5662_s28 + $0x30] sm:$0xff] }
  0x28   : > { %401 = vst [vmem:[#allocation2 + $0x18] sm:$0xff] %v400_v2  ;;  %v406_v5 = vld [vmem:[%s5662_s28 + $0x38] sm:$0xff]  ;;  %403 = vst [vmem:[#allocation2 + $0x20] sm:$0xff] %v402_v3  ;;  %v408_v6 = vld [vmem:[%s5662_s28 + $0x48] sm:$0xff] }
  0x29   : > { %405 = vst [vmem:[#allocation2 + $0x30] sm:$0xff] %v404_v4  ;;  %407 = vst [vmem:[#allocation2 + $0x38] sm:$0xff] %v406_v5  ;;  %v410_v7 = vld [vmem:[%s5662_s28 + $0x50] sm:$0xff]  ;;  %v412_v8 = vld [vmem:[%s5662_s28 + $0x60] sm:$0xff] }
  0x2a   : > { %409 = vst [vmem:[#allocation2 + $0x48] sm:$0xff] %v408_v6  ;;  %411 = vst [vmem:[#allocation2 + $0x50] sm:$0xff] %v410_v7  ;;  %v414_v9 = vld [vmem:[%s5662_s28 + $0x68] sm:$0xff]  ;;  %v416_v10 = vld [vmem:[%s5662_s28 + $0x78] sm:$0xff] }
  0x2b   : > { %413 = vst [vmem:[#allocation2 + $0x60] sm:$0xff] %v412_v8  ;;  %v418_v11 = vld [vmem:[%s5662_s28 + $0x80] sm:$0xff]  ;;  %415 = vst [vmem:[#allocation2 + $0x68] sm:$0xff] %v414_v9  ;;  %v420_v12 = vld [vmem:[%s5662_s28 + $0x90] sm:$0xff] }
  0x2c   : > { %417 = vst [vmem:[#allocation2 + $0x78] sm:$0xff] %v416_v10  ;;  %419 = vst [vmem:[#allocation2 + $0x80] sm:$0xff] %v418_v11  ;;  %v422_v13 = vld [vmem:[%s5662_s28 + $0x98] sm:$0xff]  ;;  %v424_v14 = vld [vmem:[%s5662_s28 + $0xa8] sm:$0xff] }
  0x2d   : > { %421 = vst [vmem:[#allocation2 + $0x90] sm:$0xff] %v420_v12  ;;  %423 = vst [vmem:[#allocation2 + $0x98] sm:$0xff] %v422_v13  ;;  %v426_v15 = vld [vmem:[%s5662_s28 + $0xb0] sm:$0xff]  ;;  %v428_v16 = vld [vmem:[%s5662_s28 + $0xc0] sm:$0xff] }
  0x2e   : > { %425 = vst [vmem:[#allocation2 + $0xa8] sm:$0xff] %v424_v14  ;;  %v430_v17 = vld [vmem:[%s5662_s28 + $0xc8] sm:$0xff]  ;;  %427 = vst [vmem:[#allocation2 + $0xb0] sm:$0xff] %v426_v15  ;;  %v432_v18 = vld [vmem:[%s5662_s28 + $0xd8] sm:$0xff] }
  0x2f   : > { %429 = vst [vmem:[#allocation2 + $0xc0] sm:$0xff] %v428_v16  ;;  %431 = vst [vmem:[#allocation2 + $0xc8] sm:$0xff] %v430_v17  ;;  %v434_v19 = vld [vmem:[%s5662_s28 + $0xe0] sm:$0xff]  ;;  %v436_v20 = vld [vmem:[%s5662_s28 + $0xf0] sm:$0xff] }
  0x30   : > { %433 = vst [vmem:[#allocation2 + $0xd8] sm:$0xff] %v432_v18  ;;  %435 = vst [vmem:[#allocation2 + $0xe0] sm:$0xff] %v434_v19  ;;  %v438_v21 = vld [vmem:[%s5662_s28 + $0xf8] sm:$0xff]  ;;  %v440_v22 = vld [vmem:[%s5662_s28 + $0x108] sm:$0xff] }
  0x31   : > { %437 = vst [vmem:[#allocation2 + $0xf0] sm:$0xff] %v436_v20  ;;  %v442_v23 = vld [vmem:[%s5662_s28 + $0x110] sm:$0xff]  ;;  %439 = vst [vmem:[#allocation2 + $0xf8] sm:$0xff] %v438_v21  ;;  %v444_v24 = vld [vmem:[%s5662_s28 + $0x120] sm:$0xff] }
  0x32   : > { %441 = vst [vmem:[#allocation2 + $0x108] sm:$0xff] %v440_v22  ;;  %443 = vst [vmem:[#allocation2 + $0x110] sm:$0xff] %v442_v23  ;;  %v446_v25 = vld [vmem:[%s5662_s28 + $0x128] sm:$0xff]  ;;  %v448_v26 = vld [vmem:[%s5662_s28 + $0x138] sm:$0xff] }
  0x33   : > { %445 = vst [vmem:[#allocation2 + $0x120] sm:$0xff] %v444_v24  ;;  %447 = vst [vmem:[#allocation2 + $0x128] sm:$0xff] %v446_v25  ;;  %v450_v27 = vld [vmem:[%s5662_s28 + $0x140] sm:$0xff]  ;;  %v4996_v28 = vld [vmem:[%s5662_s28 + $0x10] sm:$0x3f] }
  0x34   : > { %449 = vst [vmem:[#allocation2 + $0x138] sm:$0xff] %v448_v26  ;;  %v4997_v29 = vld [vmem:[%s5662_s28 + $0x28] sm:$0x3f]  ;;  %451 = vst [vmem:[#allocation2 + $0x140] sm:$0xff] %v450_v27  ;;  %v4998_v30 = vld [vmem:[%s5662_s28 + $0x40] sm:$0x3f] }
  0x35   : > { %462 = vst [vmem:[#allocation2 + $0x10] sm:$0x3f] %v4996_v28  ;;  %464 = vst [vmem:[#allocation2 + $0x28] sm:$0x3f] %v4997_v29  ;;  %v4999_v31 = vld [vmem:[%s5662_s28 + $0x58] sm:$0x3f] }
  0x36   : > { %v5000_v32 = vld [vmem:[%s5662_s28 + $0x70] sm:$0x3f]  ;;  %466 = vst [vmem:[#allocation2 + $0x40] sm:$0x3f] %v4998_v30  ;;  %468 = vst [vmem:[#allocation2 + $0x58] sm:$0x3f] %v4999_v31 }
  0x37   : > { %470 = vst [vmem:[#allocation2 + $0x70] sm:$0x3f] %v5000_v32  ;;  %v5001_v33 = vld [vmem:[%s5662_s28 + $0x88] sm:$0x3f]  ;;  %v5002_v34 = vld [vmem:[%s5662_s28 + $0xa0] sm:$0x3f] }
  0x38   : > { %v5003_v35 = vld [vmem:[%s5662_s28 + $0xb8] sm:$0x3f]  ;;  %472 = vst [vmem:[#allocation2 + $0x88] sm:$0x3f] %v5001_v33  ;;  %474 = vst [vmem:[#allocation2 + $0xa0] sm:$0x3f] %v5002_v34 }
  0x39   : > { %476 = vst [vmem:[#allocation2 + $0xb8] sm:$0x3f] %v5003_v35  ;;  %v5004_v36 = vld [vmem:[%s5662_s28 + $0xd0] sm:$0x3f]  ;;  %v5005_v37 = vld [vmem:[%s5662_s28 + $0xe8] sm:$0x3f] }
  0x3a   : > { %v5006_v38 = vld [vmem:[%s5662_s28 + $0x100] sm:$0x3f]  ;;  %478 = vst [vmem:[#allocation2 + $0xd0] sm:$0x3f] %v5004_v36  ;;  %480 = vst [vmem:[#allocation2 + $0xe8] sm:$0x3f] %v5005_v37 }
  0x3b   : > { %482 = vst [vmem:[#allocation2 + $0x100] sm:$0x3f] %v5006_v38  ;;  %v5007_v39 = vld [vmem:[%s5662_s28 + $0x118] sm:$0x3f]  ;;  %v5008_v40 = vld [vmem:[%s5662_s28 + $0x130] sm:$0x3f] }
  0x3c   : > { %v5009_v41 = vld [vmem:[%s5662_s28 + $0x148] sm:$0x3f]  ;;  %484 = vst [vmem:[#allocation2 + $0x118] sm:$0x3f] %v5007_v39  ;;  %486 = vst [vmem:[#allocation2 + $0x130] sm:$0x3f] %v5008_v40 }
  0x3d   : > { %488 = vst [vmem:[#allocation2 + $0x148] sm:$0x3f] %v5009_v41 }
  0x3e   : > { %492 = vsyncadd [#allocation3], 4928  ;;  %s9466_s1 = sld [smem:[#allocation93_spill]]  ;;  %v5727_v45 = vld [vmem:[%s9342_s4] sm:$0x7] }
  0x3f   : > { %9467 = vst [vmem:[#allocation13_spill] sm:$0xff] %v5727_v45  ;;  %v5732_v46 = vld [vmem:[%s9342_s4 + $0x4] sm:$0x7]  ;;  %v5737_v47 = vld [vmem:[%s9342_s4 + $0x8] sm:$0x7] }
  0x40   : > { %9468 = vst [vmem:[#allocation14_spill] sm:$0xff] %v5732_v46  ;;  %9469 = vst [vmem:[#allocation15_spill] sm:$0xff] %v5737_v47  ;;  %v5742_v48 = vld [vmem:[%s9345_s7] sm:$0x7]  ;;  %v5747_v49 = vld [vmem:[%s9345_s7 + $0x4] sm:$0x7] }
  0x41   : > { %9470 = vst [vmem:[#allocation16_spill] sm:$0xff] %v5742_v48  ;;  %9471 = vst [vmem:[#allocation17_spill] sm:$0xff] %v5747_v49  ;;  %v5752_v50 = vld [vmem:[%s9345_s7 + $0x8] sm:$0x7]  ;;  %v502_v51 = vld [vmem:[%s9340_s2] sm:$0xf] }
  0x42   : > { %9472 = vst [vmem:[#allocation18_spill] sm:$0xff] %v5752_v50  ;;  %v503_v52 = vld [vmem:[%s9340_s2 + $0x4] sm:$0xf]  ;;  %v504_v53 = vld [vmem:[%s9340_s2 + $0x8] sm:$0xf] }
  0x43   : > { %v505_v54 = vld [vmem:[%s9340_s2 + $0xc] sm:$0xf]  ;;  %v506_v55 = vld [vmem:[%s9340_s2 + $0x10] sm:$0xf]  ;;  %v507_v56 = vld [vmem:[%s9340_s2 + $0x14] sm:$0xf]  ;;  %v5010_v38 = vcombine.low %v502_v51, %v503_v52 }
  0x44   : > { %v5712_v42 = vld [vmem:[%s9466_s1] sm:$0x7]  ;;  %v5717_v43 = vld [vmem:[%s9466_s1 + $0x4] sm:$0x7]  ;;  %v5722_v44 = vld [vmem:[%s9466_s1 + $0x8] sm:$0x7] }
  0x45   : > { %v508_v57 = vld [vmem:[%s9340_s2 + $0x18] sm:$0xf]  ;;  %v509_v58 = vld [vmem:[%s9340_s2 + $0x1c] sm:$0xf]  ;;  %v510_v59 = vld [vmem:[%s9340_s2 + $0x20] sm:$0xf] }
  0x46   : > { %v511_v60 = vld [vmem:[%s9340_s2 + $0x24] sm:$0xf]  ;;  %v512_v61 = vld [vmem:[%s9340_s2 + $0x28] sm:$0xf]  ;;  %v513_v62 = vld [vmem:[%s9340_s2 + $0x2c] sm:$0xf] }
  0x47   : > { %v514_v63 = vld [vmem:[%s9340_s2 + $0x30] sm:$0xf]  ;;  %v515_v0 = vld [vmem:[%s9340_s2 + $0x34] sm:$0xf]  ;;  %v516_v1 = vld [vmem:[%s9340_s2 + $0x38] sm:$0xf] }
  0x48   : > { %v517_v2 = vld [vmem:[%s9340_s2 + $0x3c] sm:$0xf]  ;;  %v5805_v3 = vld [vmem:[%s9343_s5] sm:$0xf]  ;;  %v5810_v4 = vld [vmem:[%s9343_s5 + $0x4] sm:$0xf] }
  0x49   : > { %v5815_v5 = vld [vmem:[%s9343_s5 + $0x8] sm:$0xf]  ;;  %v5820_v6 = vld [vmem:[%s9343_s5 + $0xc] sm:$0xf]  ;;  %v5825_v7 = vld [vmem:[%s9343_s5 + $0x10] sm:$0xf] }
  0x4a   : > { %v5830_v8 = vld [vmem:[%s9343_s5 + $0x14] sm:$0xf]  ;;  %v5835_v9 = vld [vmem:[%s9343_s5 + $0x18] sm:$0xf]  ;;  %v5840_v10 = vld [vmem:[%s9343_s5 + $0x1c] sm:$0xf] }
  0x4b   : > { %v5845_v11 = vld [vmem:[%s9343_s5 + $0x20] sm:$0xf]  ;;  %v5850_v12 = vld [vmem:[%s9343_s5 + $0x24] sm:$0xf]  ;;  %v5855_v13 = vld [vmem:[%s9343_s5 + $0x28] sm:$0xf] }
  0x4c   : > { %9473 = vst [vmem:[#allocation19_spill] sm:$0xff] %v5845_v11  ;;  %9474 = vst [vmem:[#allocation20_spill] sm:$0xff] %v5855_v13  ;;  %v5860_v14 = vld [vmem:[%s9343_s5 + $0x2c] sm:$0xf]  ;;  %v5865_v15 = vld [vmem:[%s9343_s5 + $0x30] sm:$0xf] }
  0x4d   : > { %9475 = vst [vmem:[#allocation21_spill] sm:$0xff] %v5860_v14  ;;  %9476 = vst [vmem:[#allocation22_spill] sm:$0xff] %v5865_v15  ;;  %v5870_v16 = vld [vmem:[%s9343_s5 + $0x34] sm:$0xf]  ;;  %v5875_v17 = vld [vmem:[%s9343_s5 + $0x38] sm:$0xf] }
  0x4e   : > { %9477 = vst [vmem:[#allocation23_spill] sm:$0xff] %v5870_v16  ;;  %9478 = vst [vmem:[#allocation24_spill] sm:$0xff] %v5875_v17  ;;  %v5880_v18 = vld [vmem:[%s9343_s5 + $0x3c] sm:$0xf]  ;;  %v5885_v19 = vld [vmem:[%s9346_s8] sm:$0xf] }
  0x4f   : > { %9479 = vst [vmem:[#allocation25_spill] sm:$0xff] %v5880_v18  ;;  %9480 = vst [vmem:[#allocation26_spill] sm:$0xff] %v5885_v19  ;;  %v5890_v20 = vld [vmem:[%s9346_s8 + $0x4] sm:$0xf]  ;;  %v5895_v21 = vld [vmem:[%s9346_s8 + $0x8] sm:$0xf] }
  0x50   : > { %9481 = vst [vmem:[#allocation27_spill] sm:$0xff] %v5890_v20  ;;  %9482 = vst [vmem:[#allocation28_spill] sm:$0xff] %v5895_v21  ;;  %v5900_v22 = vld [vmem:[%s9346_s8 + $0xc] sm:$0xf]  ;;  %v5905_v23 = vld [vmem:[%s9346_s8 + $0x10] sm:$0xf] }
  0x51   : > { %9483 = vst [vmem:[#allocation29_spill] sm:$0xff] %v5900_v22  ;;  %9484 = vst [vmem:[#allocation30_spill] sm:$0xff] %v5905_v23  ;;  %v5910_v24 = vld [vmem:[%s9346_s8 + $0x14] sm:$0xf]  ;;  %v5915_v25 = vld [vmem:[%s9346_s8 + $0x18] sm:$0xf] }
  0x52   : > { %9485 = vst [vmem:[#allocation31_spill] sm:$0xff] %v5910_v24  ;;  %9486 = vst [vmem:[#allocation32_spill] sm:$0xff] %v5915_v25  ;;  %v5920_v26 = vld [vmem:[%s9346_s8 + $0x1c] sm:$0xf]  ;;  %v5925_v27 = vld [vmem:[%s9346_s8 + $0x20] sm:$0xf] }
  0x53   : > { %9487 = vst [vmem:[#allocation33_spill] sm:$0xff] %v5920_v26  ;;  %9488 = vst [vmem:[#allocation34_spill] sm:$0xff] %v5925_v27  ;;  %v5930_v28 = vld [vmem:[%s9346_s8 + $0x24] sm:$0xf]  ;;  %v5935_v29 = vld [vmem:[%s9346_s8 + $0x28] sm:$0xf] }
  0x54   : > { %9489 = vst [vmem:[#allocation35_spill] sm:$0xff] %v5930_v28  ;;  %9490 = vst [vmem:[#allocation36_spill] sm:$0xff] %v5935_v29  ;;  %v5940_v30 = vld [vmem:[%s9346_s8 + $0x2c] sm:$0xf]  ;;  %v5945_v31 = vld [vmem:[%s9346_s8 + $0x30] sm:$0xf] }
  0x55   : > { %9491 = vst [vmem:[#allocation37_spill] sm:$0xff] %v5940_v30  ;;  %9492 = vst [vmem:[#allocation38_spill] sm:$0xff] %v5945_v31  ;;  %v5950_v32 = vld [vmem:[%s9346_s8 + $0x34] sm:$0xf]  ;;  %v5955_v33 = vld [vmem:[%s9346_s8 + $0x38] sm:$0xf] }
  0x56   : > { %9493 = vst [vmem:[#allocation39_spill] sm:$0xff] %v5950_v32  ;;  %9494 = vst [vmem:[#allocation40_spill] sm:$0xff] %v5955_v33  ;;  %v5960_v34 = vld [vmem:[%s9346_s8 + $0x3c] sm:$0xf]  ;;  %v5965_v35 = vld [vmem:[%s9341_s3] ss:$0 sm:$0xff] }
  0x57   : > { %9495 = vst [vmem:[#allocation41_spill] sm:$0xff] %v5960_v34  ;;  %9496 = vst [vmem:[#allocation42_spill] sm:$0xff] %v5965_v35  ;;  %v5970_v36 = vld [vmem:[%s9344_s6] ss:$0 sm:$0xff] }
  0x58   : > { %9497 = vst [vmem:[#allocation43_spill] sm:$0xff] %v5970_v36  ;;  %v5975_v37 = vld [vmem:[%s9347_s9] ss:$0 sm:$0xff] }
  0x59   : > { %9498 = vst [vmem:[#allocation44_spill] sm:$0xff] %v5975_v37 }
  0x5a   : > { %5481 = dma.done.wait [#allocation3], 4928 }
  0x5b   : > { %5482 = vsyncadd [#allocation3], 4294962368  ;;  %v5011_v39 = vcombine.low %v504_v53, %v505_v54  ;;  %5185 = vmatprep.subr.bf16.mxu0 %v5010_v38  ;;  %v593_v40 = vlaneseq  ;;  %v5012_v41 = vcombine.low %v506_v55, %v507_v56  ;;  %v5013_v49 = vcombine.low %v508_v57, %v509_v58  ;;  %v557_v55 = vld [vmem:[#allocation2] sm:$0xff]  ;;  %v558_v56 = vld [vmem:[#allocation2 + $0x8] sm:$0xff]  ;;  %s9514_s30 = sshll.u32 %s5501_s16, 3  ;;  %s5119_s1 = sshll.u32 %s5501_s16, 4 }
  0x5c   : > { %5186 = vmatpush3.bf16.msra.mxu0 %v5010_v38  ;;  %v5988_v51 = vcombine.low %v510_v59, %v511_v60  ;;  %v5990_v52 = vcombine.low %v512_v61, %v513_v62  ;;  %v5992_v53 = vcombine.low %v514_v63, %v515_v0  ;;  %v5994_v54 = vcombine.low %v516_v1, %v517_v2  ;;  %v633_v57 = vld [vmem:[#allocation2 + $0x1] sm:$0xff]  ;;  %v634_v38 = vld [vmem:[#allocation2 + $0x9] sm:$0xff]  ;;  %v858_v32 = vld [vmem:[#allocation2 + $0x18] sm:$0xff]  ;;  %s5055_s25 = sadd.s32 4294967294, %s9514_s30  ;;  %s9801_s0 = smov %s9514_s30 }
  0x5d   : > { %5187 = vmatprep.subr.bf16.mxu0 %v5011_v39  ;;  %v5977_v50 = vshrl.u32 %v593_v40, 7  ;;  %v745_v59 = vld [vmem:[#allocation2 + $0x2] sm:$0xff]  ;;  %v746_v60 = vld [vmem:[#allocation2 + $0xa] sm:$0xff]  ;;  %v1082_v25 = vld [vmem:[#allocation2 + $0x1a] sm:$0xff]  ;;  %vm1531_vm0 = vcmask 1043456   ;;  %vm5519_vm1 = vmmov 1  }
  0x5e   : > { %v6012_v63 = vld [vmem:[#allocation2 + $0x20] sm:$0xff]  ;;  %v747_v19 = vld [vmem:[#allocation2 + $0x12] sm:$0xf]  ;;  %v860_v17 = vld [vmem:[#allocation2 + $0x28] sm:$0xf]  ;;  %vm5521_vm4 = vmmov 0  }
  0x5f   : > { %9499 = vst [vmem:[#allocation45_spill] sm:$0xff] %v5977_v50  ;;  %v5980_v33 = vsub.s32 0, %v5977_v50  ;;  %v5983_v34 = vsub.s32 1, %v5977_v50  ;;  %v5986_v37 = vsub.s32 2, %v5977_v50  ;;  %v6034_v29 = vld [vmem:[#allocation2 + $0x21] sm:$0xff]  ;;  %v6052_v24 = vld [vmem:[#allocation2 + $0x39] sm:$0xff]  ;;  %vm6146_vm2 = vmpackc.low %vm5519_vm1, %vm1531_vm0 }
  0x60   : > { %5188 = vmatpush3.bf16.msra.mxu0 %v5011_v39  ;;  %v1197_v16 = vld [vmem:[#allocation2 + $0x40] sm:$0xf]  ;;  %vm6200_vm3 = vmpackc.low %vm1531_vm0, %vm5519_vm1  ;;  %vm2205_vm15 = vcmask 1046528   ;;  %vm2380_vm0 = vcmask 1045504   ;;  %s5098_s12 = sadd.s32 4294967295, %s9801_s0  ;;  %s5114_s28 = sshll.u32 %s5505_s17, 5 }
  0x61   : > { %9500 = vst [vmem:[#allocation46_spill] sm:$0xff] %v5980_v33  ;;  %9501 = vst [vmem:[#allocation47_spill] sm:$0xff] %v5983_v34  ;;  %5189 = vmatprep.subr.bf16.mxu0 %v5012_v41  ;;  %v5998_v58 = vrot.slane %v5712_v42, %v5980_v33  ;;  %v6002_v39 = vrot.slane %v5712_v42, %v5983_v34  ;;  %v6006_v61 = vrot.slane %v5712_v42, %v5986_v37  ;;  %s4898_s21 = sadd.s32 %s5119_s1, %s5114_s28  ;;  %s4901_s16 = sshll.u32 %s5707_s18, 4  ;;  %s9274_s16 = int_to_ptr.vmem [resolvable:$true] %s4901_s16 }
  0x62   : > { %9502 = vst [vmem:[#allocation48_spill] sm:$0xff] %v5986_v37  ;;  %v6010_v62 = vrot.slane %v5717_v43, %v5980_v33  ;;  %v6016_v0 = vrot.slane %v5717_v43, %v5983_v34  ;;  %v6020_v1 = vrot.slane %v5717_v43, %v5986_v37  ;;  %v6024_v2 = vrot.slane %v5722_v44, %v5980_v33  ;;  %v6036_v43 = vld [vmem:[#allocation2 + $0x22] sm:$0xff]  ;;  %s5115_s17 = sshll.u32 %s4898_s21, 7  ;;  %s9846_s24 = sand.u32 1, %s5493_s14  }
  0x63   : > { %v6028_v42 = vrot.slane %v5722_v44, %v5983_v34  ;;  %v597_v40 = vmul.f32 %v5998_v58, %v557_v55  ;;  %v598_v48 = vmul.f32 %v5998_v58, %v558_v56  ;;  %v673_v36 = vmul.f32 %v6002_v39, %v633_v57  ;;  %v970_v56 = vld [vmem:[#allocation2 + $0x19] sm:$0xff]  ;;  %s9280_s23 = scalar_lea.hbm %s9348_s10, %s5115_s17  ;;  %s9286_s29 = scalar_lea.sflag [#allocation5], %s9846_s24 }
  0x64   : > { %v674_v31 = vmul.f32 %v6002_v39, %v634_v38  ;;  %5190 = vmatpush3.bf16.msra.mxu0 %v5012_v41  ;;  %v785_v30 = vmul.f32 %v6006_v61, %v745_v59  ;;  %v786_v27 = vmul.f32 %v6006_v61, %v746_v60  ;;  %v898_v28 = vmul.f32 %v6010_v62, %v858_v32  ;;  %v6043_v57 = vld [vmem:[#allocation2 + $0x38] sm:$0xff]  ;;  %v6048_v59 = vld [vmem:[#allocation2 + $0x30] sm:$0xff]  ;;  %s5421_s30 = scalar_lea.vmem %s9274_s16, 2048 }
  0x65   : > { %v899_v55 = vmul.f32 %v6010_v62, %v6012_v63  ;;  %5191 = vmatprep.subr.bf16.mxu0 %v5013_v49  ;;  %v709_v38 = vadd.f32 %v673_v36, %v597_v40  ;;  %v1010_v23 = vmul.f32 %v6016_v0, %v970_v56  ;;  %v1011_v41 = vmul.f32 %v6016_v0, %v6034_v29  ;;  %v6050_v60 = vld [vmem:[#allocation2 + $0x31] sm:$0xff]  ;;  %p5422_p12 = scmp.ne.s32.totalorder %s9274_s16, %s5421_s30 }
  0x66   : > { %v710_v26 = vadd.f32 %v674_v31, %v598_v48  ;;  %v1122_v21 = vmul.f32 %v6020_v1, %v1082_v25  ;;  %v1123_v22 = vmul.f32 %v6020_v1, %v6036_v43  ;;  %v1235_v36 = vmul.f32 %v6024_v2, %v6048_v59  ;;  %v559_v31 = vld [vmem:[#allocation2 + $0x10] sm:$0xf] }
  0x67   : > { %v1236_v48 = vmul.f32 %v6024_v2, %v6043_v57  ;;  %v635_v40 = vld [vmem:[#allocation2 + $0x11] sm:$0xf]  ;;  %v821_v20 = vadd.f32 %v785_v30, %v709_v38  ;;  %v1347_v46 = vmul.f32 %v6028_v42, %v6050_v60  ;;  %v1348_v33 = vmul.f32 %v6028_v42, %v6052_v24  ;;  %v6075_v38 = vld [vmem:[#allocation2 + $0x3a] sm:$0xff]  ;;  %p5423_p13 = pnand %p5422_p12, %p5631_p3 }
  0x68   : > { %v822_v47 = vadd.f32 %v786_v27, %v710_v26  ;;  %5192 = vmatpush3.bf16.msra.mxu0 %v5013_v49  ;;  %v6067_v45 = vrot.slane %v5722_v44, %v5986_v37  ;;  %v599_v34 = vmul.f32 %v5998_v58, %v559_v31  ;;  %v600_v35 = vmul.f32 %v858_v32, %v5998_v58  ;;  %v6073_v30 = vld [vmem:[#allocation2 + $0x32] sm:$0xff]  ;;  %v972_v37 = vld [vmem:[#allocation2 + $0x29] sm:$0xf] }
  0x69   : > { %v675_v50 = vmul.f32 %v6002_v39, %v635_v40  ;;  %5193 = vmatprep.subr.bf16.mxu0 %v5988_v51  ;;  %v934_v26 = vadd.f32 %v898_v28, %v821_v20  ;;  %v676_v49 = vmul.f32 %v970_v56, %v6002_v39  ;;  %v787_v44 = vmul.f32 %v6006_v61, %v747_v19  ;;  %v1084_v20 = vld [vmem:[#allocation2 + $0x2a] sm:$0xf]  ;;  %p5424_p0 = pneg %p5423_p13 }
  0x6a   : > { %v935_v27 = vadd.f32 %v899_v55, %v822_v47  ;;  %v1459_v31 = vmul.f32 %v6067_v45, %v6073_v30  ;;  %v1460_v32 = vmul.f32 %v6067_v45, %v6075_v38  ;;  %v788_v18 = vmul.f32 %v1082_v25, %v6006_v61  ;;  %v6085_v56 = vld [vmem:[#allocation2 + $0x48] sm:$0xff]  ;;  %v1309_v25 = vld [vmem:[#allocation2 + $0x41] sm:$0xf] }
  0x6b   : > { %v711_v40 = vadd.f32 %v675_v50, %v599_v34  ;;  %v1046_v47 = vadd.f32 %v1010_v23, %v934_v26  ;;  %v712_v55 = vadd.f32 %v676_v49, %v600_v35  ;;  %v900_v15 = vmul.f32 %v6010_v62, %v860_v17  ;;  %v6097_v26 = vld [vmem:[#allocation2 + $0x4a] sm:$0xff] }
  0x6c   : > { %v1047_v28 = vadd.f32 %v1011_v41, %v935_v27  ;;  %5194 = vmatpush3.bf16.msra.mxu0 %v5988_v51  ;;  %v901_v13 = vmul.f32 %v6048_v59, %v6010_v62  ;;  %v1012_v14 = vmul.f32 %v6016_v0, %v972_v37  ;;  %v1013_v50 = vmul.f32 %v6050_v60, %v6016_v0  ;;  %v6095_v41 = vld [vmem:[#allocation2 + $0x49] sm:$0xff]  ;;  %v1421_v51 = vld [vmem:[#allocation2 + $0x42] sm:$0xf] }
  0x6d   : > { %v823_v19 = vadd.f32 %v787_v44, %v711_v40  ;;  %5195 = vmatprep.subr.bf16.mxu0 %v5990_v52  ;;  %v1158_v23 = vadd.f32 %v1122_v21, %v1046_v47  ;;  %v824_v17 = vadd.f32 %v788_v18, %v712_v55  ;;  %v1124_v35 = vmul.f32 %v6020_v1, %v1084_v20  ;;  %v562_v20 = vld [vmem:[#allocation2 + $0x28] sm:$0xf] }
  0x6e   : > { %v1159_v34 = vadd.f32 %v1123_v22, %v1047_v28  ;;  %v1125_v37 = vmul.f32 %v6073_v30, %v6020_v1  ;;  %v1237_v49 = vmul.f32 %v6024_v2, %v1197_v16  ;;  %v1238_v44 = vmul.f32 %v6024_v2, %v6085_v56  ;;  %v638_v47 = vld [vmem:[#allocation2 + $0x29] sm:$0xf] }
  0x6f   : > { %v936_v27 = vadd.f32 %v900_v15, %v823_v19  ;;  %v1271_v40 = vadd.f32 %v1235_v36, %v1158_v23  ;;  %v937_v22 = vadd.f32 %v901_v13, %v824_v17  ;;  %v1349_v18 = vmul.f32 %v6028_v42, %v1309_v25  ;;  %v750_v25 = vld [vmem:[#allocation2 + $0x2a] sm:$0xf]  ;;  %v863_v17 = vld [vmem:[#allocation2 + $0x40] sm:$0xf] }
  0x70   : > { %v1272_v21 = vadd.f32 %v1236_v48, %v1159_v34  ;;  %5196 = vmatpush3.bf16.msra.mxu0 %v5990_v52  ;;  %v1350_v15 = vmul.f32 %v6028_v42, %v6095_v41  ;;  %v1461_v55 = vmul.f32 %v6067_v45, %v1421_v51  ;;  %v1462_v16 = vmul.f32 %v6067_v45, %v6097_v26 }
  0x71   : > { %v1048_v28 = vadd.f32 %v1012_v14, %v936_v27  ;;  %5197 = vmatprep.subr.bf16.mxu0 %v5992_v53  ;;  %v1383_v36 = vadd.f32 %v1347_v46, %v1271_v40  ;;  %v1049_v48 = vadd.f32 %v1013_v50, %v937_v22  ;;  %v601_v19 = vmul.f32 %v6012_v63, %v5998_v58  ;;  %v975_v40 = vld [vmem:[#allocation2 + $0x41] sm:$0xf] }
  0x72   : > { %v1384_v13 = vadd.f32 %v1348_v33, %v1272_v21  ;;  %v602_v14 = vmul.f32 %v5998_v58, %v562_v20  ;;  %v677_v52 = vmul.f32 %v6034_v29, %v6002_v39  ;;  %v678_v34 = vmul.f32 %v6002_v39, %v638_v47 }
  0x73   : > { %v1160_v23 = vadd.f32 %v1124_v35, %v1048_v28  ;;  %v1495_v51 = vadd.f32 %v1459_v31, %v1383_v36  ;;  %v1161_v11 = vadd.f32 %v1125_v37, %v1049_v48  ;;  %v789_v46 = vmul.f32 %v6036_v43, %v6006_v61  ;;  %v1087_v37 = vld [vmem:[#allocation2 + $0x42] sm:$0xf] }
  0x74   : > { %v1496_v27 = vadd.f32 %v1460_v32, %v1384_v13  ;;  %5198 = vmatpush3.bf16.msra.mxu0 %v5992_v53  ;;  %v713_v63 = vadd.f32 %v677_v52, %v601_v19  ;;  %v714_v50 = vadd.f32 %v678_v34, %v602_v14  ;;  %v790_v35 = vmul.f32 %v6006_v61, %v750_v25  ;;  %v6133_v19 = vld [vmem:[#allocation2 + $0x50] sm:$0xff] }
  0x75   : > { %v1273_v33 = vadd.f32 %v1237_v49, %v1160_v23  ;;  %5199 = vmatprep.subr.bf16.mxu0 %v5994_v54  ;;  %v1274_v21 = vadd.f32 %v1238_v44, %v1161_v11  ;;  %v902_v31 = vmul.f32 %v6043_v57, %v6010_v62  ;;  %v903_v32 = vmul.f32 %v6010_v62, %v863_v17  ;;  %v1200_v49 = vld [vmem:[#allocation2 + $0x58] sm:$0xf] }
  0x76   : > { %v1544_v29 = vpack.c.bf16 %v1496_v27, %v1495_v51  ;;  %v825_v43 = vadd.f32 %v789_v46, %v713_v63  ;;  %v826_v20 = vadd.f32 %v790_v35, %v714_v50  ;;  %v1014_v53 = vmul.f32 %v6052_v24, %v6016_v0  ;;  %v1312_v44 = vld [vmem:[#allocation2 + $0x59] sm:$0xf]  ;;  %v6135_v25 = vld [vmem:[#allocation2 + $0x51] sm:$0xff] }
  0x77   : > { %v1385_v22 = vadd.f32 %v1349_v18, %v1273_v33  ;;  %v1386_v47 = vadd.f32 %v1350_v15, %v1274_v21  ;;  %v1015_v28 = vmul.f32 %v6016_v0, %v975_v40  ;;  %v1126_v11 = vmul.f32 %v6075_v38, %v6020_v1  ;;  %v6142_v34 = vld [vmem:[#allocation2 + $0x52] sm:$0xff]  ;;  %v1424_v51 = vld [vmem:[#allocation2 + $0x5a] sm:$0xf] }
  0x78   : > { %5201 = vmatprep.mubr.bf16.mxu0 %v1544_v29  ;;  %5200 = vmatpush3.bf16.msra.mxu0 %v5994_v54  ;;  %v938_v13 = vadd.f32 %v902_v31, %v825_v43  ;;  %v939_v48 = vadd.f32 %v903_v32, %v826_v20  ;;  %v1127_v18 = vmul.f32 %v6020_v1, %v1087_v37  ;;  %v6172_v43 = vld [vmem:[#allocation2 + $0x60] sm:$0xff] }
  0x79   : > { %v1497_v36 = vadd.f32 %v1461_v55, %v1385_v22  ;;  %v1498_v23 = vadd.f32 %v1462_v16, %v1386_v47  ;;  %v1239_v15 = vmul.f32 %v6024_v2, %v6133_v19  ;;  %v1240_v14 = vmul.f32 %v6024_v2, %v1200_v49  ;;  %v6176_v20 = vld [vmem:[#allocation2 + $0x61] sm:$0xff] }
  0x7a   : > { %v1351_v52 = vmul.f32 %v6028_v42, %v6135_v25  ;;  %v1050_v55 = vadd.f32 %v1014_v53, %v938_v13  ;;  %v1051_v17 = vadd.f32 %v1015_v28, %v939_v48  ;;  %v1352_v16 = vmul.f32 %v6028_v42, %v1312_v44  ;;  %v6184_v28 = vld [vmem:[#allocation2 + $0x69] sm:$0xff] }
  0x7b   : > { %v1463_v27 = vmul.f32 %v6067_v45, %v6142_v34  ;;  %v5019_v46 = vpack.c.bf16 %v1498_v23, %v1497_v36  ;;  %v603_v33 = vmul.f32 %v6048_v59, %v5998_v58  ;;  %v604_v63 = vmul.f32 %v6043_v57, %v5998_v58  ;;  %v6188_v48 = vld [vmem:[#allocation2 + $0x62] sm:$0xff] }
  0x7c   : > { %v679_v50 = vmul.f32 %v6050_v60, %v6002_v39  ;;  %v1162_v35 = vadd.f32 %v1126_v11, %v1050_v55  ;;  %v1163_v40 = vadd.f32 %v1127_v18, %v1051_v17  ;;  %v680_v29 = vmul.f32 %v6052_v24, %v6002_v39  ;;  %v565_v18 = vld [vmem:[#allocation2 + $0x40] sm:$0xf] }
  0x7d   : > { %v791_v21 = vmul.f32 %v6073_v30, %v6006_v61  ;;  %5202 = vmatmul.mubr.msk.bf16.vlgmr.msra.gmra.mrb[0].mxu0 %vm6146_vm2, %v5019_v46  ;;  %v1464_v31 = vmul.f32 %v6067_v45, %v1424_v51  ;;  %v792_v57 = vmul.f32 %v6075_v38, %v6006_v61  ;;  %v904_v60 = vmul.f32 %v6085_v56, %v6010_v62  ;;  %v6174_v30 = vld [vmem:[#allocation2 + $0x68] sm:$0xff]  ;;  %v641_v17 = vld [vmem:[#allocation2 + $0x41] sm:$0xf] }
  0x7e   : > { %v715_v59 = vadd.f32 %v679_v50, %v603_v33  ;;  %v1275_v32 = vadd.f32 %v1239_v15, %v1162_v35  ;;  %v1276_v37 = vadd.f32 %v1240_v14, %v1163_v40  ;;  %v716_v22 = vadd.f32 %v680_v29, %v604_v63  ;;  %v753_v33 = vld [vmem:[#allocation2 + $0x42] sm:$0xf]  ;;  %v866_v63 = vld [vmem:[#allocation2 + $0x58] sm:$0xf]  ;;  %v9509_v50 = vld [vmem:[#allocation20_spill] sm:$0xff] }
  0x7f   : > { %v905_v24 = vmul.f32 %v6133_v19, %v6010_v62  ;;  %v1016_v49 = vmul.f32 %v6095_v41, %v6016_v0  ;;  %v1017_v38 = vmul.f32 %v6135_v25, %v6016_v0  ;;  %v1128_v47 = vmul.f32 %v6097_v26, %v6020_v1 }
  0x80   : > { %v827_v53 = vadd.f32 %v791_v21, %v715_v59  ;;  %v1387_v11 = vadd.f32 %v1351_v52, %v1275_v32  ;;  %v1388_v44 = vadd.f32 %v1352_v16, %v1276_v37  ;;  %v828_v36 = vadd.f32 %v792_v57, %v716_v22  ;;  %v6209_v59 = vld [vmem:[#allocation2 + $0x6a] sm:$0xff]  ;;  %v978_v32 = vld [vmem:[#allocation2 + $0x59] sm:$0xf] }
  0x81   : > { %v1129_v13 = vmul.f32 %v6142_v34, %v6020_v1  ;;  %v1241_v15 = vmul.f32 %v6024_v2, %v6172_v43  ;;  %v1242_v14 = vmul.f32 %v6024_v2, %v6174_v30  ;;  %v1353_v55 = vmul.f32 %v6028_v42, %v6176_v20 }
  0x82   : > { %v940_v23 = vadd.f32 %v904_v60, %v827_v53  ;;  %v1499_v52 = vadd.f32 %v1463_v27, %v1387_v11  ;;  %v1500_v16 = vadd.f32 %v1464_v31, %v1388_v44  ;;  %v941_v51 = vadd.f32 %v905_v24, %v828_v36  ;;  %v6222_v36 = vld [vmem:[#allocation2 + $0x78] sm:$0xff] }
  0x83   : > { %v1354_v46 = vmul.f32 %v6028_v42, %v6184_v28  ;;  %v1465_v40 = vmul.f32 %v6067_v45, %v6188_v48  ;;  %v605_v29 = vmul.f32 %v5998_v58, %v565_v18  ;;  %v606_v27 = vmul.f32 %v6085_v56, %v5998_v58 }
  0x84   : > { %v1052_v35 = vadd.f32 %v1016_v49, %v940_v23  ;;  %v5022_v21 = vpack.c.bf16 %v1500_v16, %v1499_v52  ;;  %v1053_v31 = vadd.f32 %v1017_v38, %v941_v51  ;;  %v681_v57 = vmul.f32 %v6002_v39, %v641_v17  ;;  %v1090_v49 = vld [vmem:[#allocation2 + $0x5a] sm:$0xf]  ;;  %v1315_v17 = vld [vmem:[#allocation2 + $0x71] sm:$0xf] }
  0x85   : > { %v682_v60 = vmul.f32 %v6095_v41, %v6002_v39  ;;  %v793_v22 = vmul.f32 %v6006_v61, %v753_v33  ;;  %v794_v24 = vmul.f32 %v6097_v26, %v6006_v61  ;;  %v906_v53 = vmul.f32 %v6010_v62, %v866_v63  ;;  %v1203_v41 = vld [vmem:[#allocation2 + $0x70] sm:$0xf] }
  0x86   : > { %v1164_v37 = vadd.f32 %v1128_v47, %v1052_v35  ;;  %5205 = vmatprep.mubr.msk.bf16.mxu0 %vm6200_vm3, %v5022_v21  ;;  %v1165_v56 = vadd.f32 %v1129_v13, %v1053_v31  ;;  %v717_v38 = vadd.f32 %v681_v57, %v605_v29  ;;  %v907_v44 = vmul.f32 %v6172_v43, %v6010_v62  ;;  %v1427_v33 = vld [vmem:[#allocation2 + $0x72] sm:$0xf] }
  0x87   : > { %v718_v11 = vadd.f32 %v682_v60, %v606_v27  ;;  %v1466_v18 = vmul.f32 %v6067_v45, %v6209_v59  ;;  %v1018_v26 = vmul.f32 %v6016_v0, %v978_v32  ;;  %v1019_v23 = vmul.f32 %v6176_v20, %v6016_v0  ;;  %v568_v27 = vld [vmem:[#allocation2 + $0x58] sm:$0xf] }
  0x88   : > { %v1277_v47 = vadd.f32 %v1241_v15, %v1164_v37  ;;  %v1278_v52 = vadd.f32 %v1242_v14, %v1165_v56  ;;  %v829_v13 = vadd.f32 %v793_v22, %v717_v38  ;;  %v1130_v51 = vmul.f32 %v6020_v1, %v1090_v49  ;;  %v6235_v60 = vld [vmem:[#allocation2 + $0x79] sm:$0xff] }
  0x89   : > { %v830_v16 = vadd.f32 %v794_v24, %v718_v11  ;;  %v1131_v35 = vmul.f32 %v6188_v48, %v6020_v1  ;;  %v1243_v15 = vmul.f32 %v6024_v2, %v1203_v41  ;;  %v1244_v29 = vmul.f32 %v6024_v2, %v6222_v36  ;;  %v644_v32 = vld [vmem:[#allocation2 + $0x59] sm:$0xf]  ;;  %v869_v11 = vld [vmem:[#allocation2 + $0x70] sm:$0xf] }
  0x8a   : > { %v1389_v63 = vadd.f32 %v1353_v55, %v1277_v47  ;;  %v1390_v21 = vadd.f32 %v1354_v46, %v1278_v52  ;;  %v942_v31 = vadd.f32 %v906_v53, %v829_v13  ;;  %v1355_v14 = vmul.f32 %v6028_v42, %v1315_v17  ;;  %v756_v37 = vld [vmem:[#allocation2 + $0x5a] sm:$0xf]  ;;  %v981_v52 = vld [vmem:[#allocation2 + $0x71] sm:$0xf] }
  0x8b   : > { %v943_v57 = vadd.f32 %v907_v44, %v830_v16  ;;  %v1356_v55 = vmul.f32 %v6028_v42, %v6235_v60  ;;  %v1467_v24 = vmul.f32 %v6067_v45, %v1427_v33  ;;  %v607_v49 = vmul.f32 %v6133_v19, %v5998_v58  ;;  %v6244_v44 = vld [vmem:[#allocation2 + $0x7a] sm:$0xff]  ;;  %v1093_v13 = vld [vmem:[#allocation2 + $0x72] sm:$0xf] }
  0x8c   : > { %v1501_v22 = vadd.f32 %v1465_v40, %v1389_v63  ;;  %v1502_v56 = vadd.f32 %v1466_v18, %v1390_v21  ;;  %v1054_v38 = vadd.f32 %v1018_v26, %v942_v31  ;;  %v608_v53 = vmul.f32 %v5998_v58, %v568_v27  ;;  %v6257_v27 = vld [vmem:[#allocation2 + $0x80] sm:$0xff] }
  0x8d   : > { %v1055_v46 = vadd.f32 %v1019_v23, %v943_v57  ;;  %v683_v41 = vmul.f32 %v6135_v25, %v6002_v39  ;;  %v684_v40 = vmul.f32 %v6002_v39, %v644_v32  ;;  %v795_v47 = vmul.f32 %v6142_v34, %v6006_v61  ;;  %v1206_v34 = vld [vmem:[#allocation2 + $0x88] sm:$0xf] }
  0x8e   : > { %v796_v17 = vmul.f32 %v6006_v61, %v756_v37  ;;  %v1547_v19 = vpack.c.bf16 %v1502_v56, %v1501_v22  ;;  %v1166_v18 = vadd.f32 %v1130_v51, %v1054_v38  ;;  %v1468_v23 = vmul.f32 %v6067_v45, %v6244_v44  ;;  %v6262_v57 = vld [vmem:[#allocation2 + $0x81] sm:$0xff]  ;;  %v1318_v32 = vld [vmem:[#allocation2 + $0x89] sm:$0xf] }
  0x8f   : > { %v1167_v26 = vadd.f32 %v1131_v35, %v1055_v46  ;;  %v719_v16 = vadd.f32 %v683_v41, %v607_v49  ;;  %v720_v33 = vadd.f32 %v684_v40, %v608_v53  ;;  %v908_v25 = vmul.f32 %v6174_v30, %v6010_v62  ;;  %v6267_v38 = vld [vmem:[#allocation2 + $0x82] sm:$0xff] }
  0x90   : > { %v909_v63 = vmul.f32 %v6010_v62, %v869_v11  ;;  %5206 = vmatmul.mubr.bf16.gmra.mrb[4].mxu0 %v1547_v19  ;;  %v1279_v21 = vadd.f32 %v1243_v15, %v1166_v18  ;;  %v1020_v51 = vmul.f32 %v6184_v28, %v6016_v0  ;;  %v1021_v35 = vmul.f32 %v6016_v0, %v981_v52 }
  0x91   : > { %v1280_v31 = vadd.f32 %v1244_v29, %v1167_v26  ;;  %v831_v37 = vadd.f32 %v795_v47, %v719_v16  ;;  %v832_v22 = vadd.f32 %v796_v17, %v720_v33  ;;  %v1132_v49 = vmul.f32 %v6209_v59, %v6020_v1  ;;  %v1430_v26 = vld [vmem:[#allocation2 + $0x8a] sm:$0xf] }
  0x92   : > { %v1133_v56 = vmul.f32 %v6020_v1, %v1093_v13  ;;  %v1391_v46 = vadd.f32 %v1355_v14, %v1279_v21  ;;  %v1245_v29 = vmul.f32 %v6024_v2, %v6257_v27  ;;  %v1246_v53 = vmul.f32 %v6024_v2, %v1206_v34 }
  0x93   : > { %v1392_v15 = vadd.f32 %v1356_v55, %v1280_v31  ;;  %v944_v11 = vadd.f32 %v908_v25, %v831_v37  ;;  %v945_v41 = vadd.f32 %v909_v63, %v832_v22  ;;  %v1357_v40 = vmul.f32 %v6028_v42, %v6262_v57  ;;  %v6298_v31 = vld [vmem:[#allocation2 + $0x98] sm:$0xff]  ;;  %v6302_v37 = vld [vmem:[#allocation2 + $0x90] sm:$0xff] }
  0x94   : > { %v1358_v47 = vmul.f32 %v6028_v42, %v1318_v32  ;;  %v1503_v17 = vadd.f32 %v1467_v24, %v1391_v46  ;;  %v1469_v19 = vmul.f32 %v6067_v45, %v6267_v38  ;;  %v609_v14 = vmul.f32 %v6172_v43, %v5998_v58 }
  0x95   : > { %v1504_v52 = vadd.f32 %v1468_v23, %v1392_v15  ;;  %v1056_v55 = vadd.f32 %v1020_v51, %v944_v11  ;;  %v1057_v18 = vadd.f32 %v1021_v35, %v945_v41  ;;  %v610_v13 = vmul.f32 %v6174_v30, %v5998_v58  ;;  %v6310_v15 = vld [vmem:[#allocation2 + $0x91] sm:$0xff] }
  0x96   : > { %v685_v16 = vmul.f32 %v6176_v20, %v6002_v39  ;;  %v686_v24 = vmul.f32 %v6184_v28, %v6002_v39  ;;  %v797_v23 = vmul.f32 %v6188_v48, %v6006_v61  ;;  %v798_v25 = vmul.f32 %v6209_v59, %v6006_v61 }
  0x97   : > { %v5025_v33 = vpack.c.bf16 %v1504_v52, %v1503_v17  ;;  %v1168_v43 = vadd.f32 %v1132_v49, %v1056_v55  ;;  %v1169_v63 = vadd.f32 %v1133_v56, %v1057_v18  ;;  %v910_v21 = vmul.f32 %v6222_v36, %v6010_v62  ;;  %v6314_v52 = vld [vmem:[#allocation2 + $0x99] sm:$0xff]  ;;  %v647_v55 = vld [vmem:[#allocation2 + $0x71] sm:$0xf] }
  0x98   : > { %v721_v34 = vadd.f32 %v685_v16, %v609_v14  ;;  %v1470_v30 = vmul.f32 %v6067_v45, %v1430_v26  ;;  %v722_v20 = vadd.f32 %v686_v24, %v610_v13  ;;  %v911_v28 = vmul.f32 %v6257_v27, %v6010_v62  ;;  %v6316_v14 = vld [vmem:[#allocation2 + $0x92] sm:$0xff] }
  0x99   : > { %5209 = vmatprep.mubr.msk.bf16.mxu0 %vm6146_vm2, %v5025_v33  ;;  %v1022_v48 = vmul.f32 %v6235_v60, %v6016_v0  ;;  %v1281_v59 = vadd.f32 %v1245_v29, %v1168_v43  ;;  %v1282_v51 = vadd.f32 %v1246_v53, %v1169_v63  ;;  %v1023_v32 = vmul.f32 %v6262_v57, %v6016_v0  ;;  %v571_v29 = vld [vmem:[#allocation2 + $0x70] sm:$0xf] }
  0x9a   : > { %v833_v35 = vadd.f32 %v797_v23, %v721_v34  ;;  %v834_v22 = vadd.f32 %v798_v25, %v722_v20  ;;  %v1134_v49 = vmul.f32 %v6244_v44, %v6020_v1  ;;  %v1135_v56 = vmul.f32 %v6267_v38, %v6020_v1  ;;  %v872_v25 = vld [vmem:[#allocation2 + $0x88] sm:$0xf] }
  0x9b   : > { %v1247_v46 = vmul.f32 %v6024_v2, %v6302_v37  ;;  %v1393_v53 = vadd.f32 %v1357_v40, %v1281_v59  ;;  %v1394_v11 = vadd.f32 %v1358_v47, %v1282_v51  ;;  %v1248_v17 = vmul.f32 %v6024_v2, %v6298_v31  ;;  %v759_v47 = vld [vmem:[#allocation2 + $0x72] sm:$0xf]  ;;  %v984_v20 = vld [vmem:[#allocation2 + $0x89] sm:$0xf] }
  0x9c   : > { %v946_v41 = vadd.f32 %v910_v21, %v833_v35  ;;  %v947_v18 = vadd.f32 %v911_v28, %v834_v22  ;;  %v1359_v26 = vmul.f32 %v6028_v42, %v6310_v15  ;;  %v1360_v13 = vmul.f32 %v6028_v42, %v6314_v52  ;;  %v1096_v22 = vld [vmem:[#allocation2 + $0x8a] sm:$0xf] }
  0x9d   : > { %v1471_v40 = vmul.f32 %v6067_v45, %v6316_v14  ;;  %v1505_v16 = vadd.f32 %v1469_v19, %v1393_v53  ;;  %v1506_v33 = vadd.f32 %v1470_v30, %v1394_v11  ;;  %v611_v23 = vmul.f32 %v5998_v58, %v571_v29  ;;  %v1209_v29 = vld [vmem:[#allocation2 + $0xa0] sm:$0xf] }
  0x9e   : > { %v1058_v24 = vadd.f32 %v1022_v48, %v946_v41  ;;  %v1059_v43 = vadd.f32 %v1023_v32, %v947_v18  ;;  %v612_v63 = vmul.f32 %v6222_v36, %v5998_v58  ;;  %v687_v34 = vmul.f32 %v6002_v39, %v647_v55  ;;  %v6333_v48 = vld [vmem:[#allocation2 + $0x9a] sm:$0xff] }
  0x9f   : > { %v688_v21 = vmul.f32 %v6235_v60, %v6002_v39  ;;  %v5028_v28 = vpack.c.bf16 %v1506_v33, %v1505_v16  ;;  %v799_v51 = vmul.f32 %v6006_v61, %v759_v47  ;;  %v800_v19 = vmul.f32 %v6244_v44, %v6006_v61  ;;  %v1321_v47 = vld [vmem:[#allocation2 + $0xa1] sm:$0xf]  ;;  %v6347_v16 = vld [vmem:[#allocation2 + $0xa9] sm:$0xff] }
  0xa0   : > { %v1170_v59 = vadd.f32 %v1134_v49, %v1058_v24  ;;  %v1171_v30 = vadd.f32 %v1135_v56, %v1059_v43  ;;  %v723_v35 = vadd.f32 %v687_v34, %v611_v23  ;;  %v912_v36 = vmul.f32 %v6010_v62, %v872_v25  ;;  %v6343_v56 = vld [vmem:[#allocation2 + $0xa8] sm:$0xff] }
  0xa1   : > { %v724_v32 = vadd.f32 %v688_v21, %v612_v63  ;;  %5210 = vmatmul.mubr.msk.bf16.gmra.mrb[8].mxu0 %vm6200_vm3, %v5028_v28  ;;  %v1472_v49 = vmul.f32 %v6067_v45, %v6333_v48  ;;  %v913_v53 = vmul.f32 %v6302_v37, %v6010_v62  ;;  %v1024_v44 = vmul.f32 %v6016_v0, %v984_v20  ;;  %v574_v21 = vld [vmem:[#allocation2 + $0x88] sm:$0xf] }
  0xa2   : > { %v1283_v60 = vadd.f32 %v1247_v46, %v1170_v59  ;;  %v1284_v11 = vadd.f32 %v1248_v17, %v1171_v30  ;;  %v835_v41 = vadd.f32 %v799_v51, %v723_v35  ;;  %v1025_v18 = vmul.f32 %v6310_v15, %v6016_v0  ;;  %v1433_v46 = vld [vmem:[#allocation2 + $0xa2] sm:$0xf]  ;;  %v650_v20 = vld [vmem:[#allocation2 + $0x89] sm:$0xf] }
  0xa3   : > { %v836_v55 = vadd.f32 %v800_v19, %v724_v32  ;;  %v1136_v24 = vmul.f32 %v6020_v1, %v1096_v22  ;;  %v1137_v23 = vmul.f32 %v6316_v14, %v6020_v1  ;;  %v1249_v25 = vmul.f32 %v6024_v2, %v1209_v29  ;;  %v762_v19 = vld [vmem:[#allocation2 + $0x8a] sm:$0xf] }
  0xa4   : > { %v1395_v33 = vadd.f32 %v1359_v26, %v1283_v60  ;;  %v1396_v43 = vadd.f32 %v1360_v13, %v1284_v11  ;;  %v948_v63 = vadd.f32 %v912_v36, %v835_v41  ;;  %v1250_v34 = vmul.f32 %v6024_v2, %v6343_v56  ;;  %v875_v36 = vld [vmem:[#allocation2 + $0xa0] sm:$0xf]  ;;  %v6361_v22 = vld [vmem:[#allocation2 + $0xaa] sm:$0xff] }
  0xa5   : > { %v949_v17 = vadd.f32 %v913_v53, %v836_v55  ;;  %v1361_v59 = vmul.f32 %v6028_v42, %v1321_v47  ;;  %v1362_v26 = vmul.f32 %v6028_v42, %v6347_v16  ;;  %v1473_v51 = vmul.f32 %v6067_v45, %v1433_v46  ;;  %v987_v55 = vld [vmem:[#allocation2 + $0xa1] sm:$0xf] }
  0xa6   : > { %v1507_v28 = vadd.f32 %v1471_v40, %v1395_v33  ;;  %v1508_v30 = vadd.f32 %v1472_v49, %v1396_v43  ;;  %v1060_v35 = vadd.f32 %v1024_v44, %v948_v63  ;;  %v613_v13 = vmul.f32 %v6257_v27, %v5998_v58  ;;  %v1099_v33 = vld [vmem:[#allocation2 + $0xa2] sm:$0xf] }
  0xa7   : > { %v1061_v32 = vadd.f32 %v1025_v18, %v949_v17  ;;  %v614_v29 = vmul.f32 %v5998_v58, %v574_v21  ;;  %v689_v40 = vmul.f32 %v6262_v57, %v6002_v39  ;;  %v690_v60 = vmul.f32 %v6002_v39, %v650_v20 }
  0xa8   : > { %v801_v53 = vmul.f32 %v6267_v38, %v6006_v61  ;;  %v1550_v11 = vpack.c.bf16 %v1508_v30, %v1507_v28  ;;  %v1172_v49 = vadd.f32 %v1136_v24, %v1060_v35  ;;  %v802_v41 = vmul.f32 %v6006_v61, %v762_v19  ;;  %v6380_v28 = vld [vmem:[#allocation2 + $0xb0] sm:$0xff]  ;;  %v1324_v19 = vld [vmem:[#allocation2 + $0xb9] sm:$0xf] }
  0xa9   : > { %v1173_v44 = vadd.f32 %v1137_v23, %v1061_v32  ;;  %v725_v27 = vadd.f32 %v689_v40, %v613_v13  ;;  %v726_v18 = vadd.f32 %v690_v60, %v614_v29  ;;  %v914_v47 = vmul.f32 %v6298_v31, %v6010_v62  ;;  %v1212_v23 = vld [vmem:[#allocation2 + $0xb8] sm:$0xf] }
  0xaa   : > { %v915_v46 = vmul.f32 %v6010_v62, %v875_v36  ;;  %5213 = vmatprep.mubr.bf16.mxu0 %v1550_v11  ;;  %v1285_v57 = vadd.f32 %v1249_v25, %v1172_v49  ;;  %v1474_v38 = vmul.f32 %v6067_v45, %v6361_v22  ;;  %v1026_v24 = vmul.f32 %v6314_v52, %v6016_v0  ;;  %v6385_v32 = vld [vmem:[#allocation2 + $0xb1] sm:$0xff] }
  0xab   : > { %v1286_v43 = vadd.f32 %v1250_v34, %v1173_v44  ;;  %v837_v63 = vadd.f32 %v801_v53, %v725_v27  ;;  %v838_v17 = vadd.f32 %v802_v41, %v726_v18  ;;  %v1027_v21 = vmul.f32 %v6016_v0, %v987_v55  ;;  %v6390_v60 = vld [vmem:[#allocation2 + $0xb2] sm:$0xff] }
  0xac   : > { %v1138_v20 = vmul.f32 %v6333_v48, %v6020_v1  ;;  %v1397_v30 = vadd.f32 %v1361_v59, %v1285_v57  ;;  %v1139_v34 = vmul.f32 %v6020_v1, %v1099_v33  ;;  %v1251_v35 = vmul.f32 %v6024_v2, %v6380_v28 }
  0xad   : > { %v1398_v25 = vadd.f32 %v1362_v26, %v1286_v43  ;;  %v950_v13 = vadd.f32 %v914_v47, %v837_v63  ;;  %v951_v36 = vadd.f32 %v915_v46, %v838_v17  ;;  %v1252_v29 = vmul.f32 %v6024_v2, %v1212_v23  ;;  %v1436_v26 = vld [vmem:[#allocation2 + $0xba] sm:$0xf] }
  0xae   : > { %v1363_v40 = vmul.f32 %v6028_v42, %v6385_v32  ;;  %v1509_v53 = vadd.f32 %v1473_v51, %v1397_v30  ;;  %v1364_v59 = vmul.f32 %v6028_v42, %v1324_v19  ;;  %v1475_v49 = vmul.f32 %v6067_v45, %v6390_v60 }
  0xaf   : > { %v1510_v11 = vadd.f32 %v1474_v38, %v1398_v25  ;;  %v1062_v44 = vadd.f32 %v1026_v24, %v950_v13  ;;  %v1063_v41 = vadd.f32 %v1027_v21, %v951_v36  ;;  %v615_v55 = vmul.f32 %v6302_v37, %v5998_v58  ;;  %v6414_v24 = vld [vmem:[#allocation2 + $0xc0] sm:$0xff] }
  0xb0   : > { %v616_v27 = vmul.f32 %v6298_v31, %v5998_v58  ;;  %v691_v47 = vmul.f32 %v6310_v15, %v6002_v39  ;;  %v692_v51 = vmul.f32 %v6314_v52, %v6002_v39  ;;  %v803_v46 = vmul.f32 %v6316_v14, %v6006_v61  ;;  %v6416_v14 = vld [vmem:[#allocation2 + $0xc8] sm:$0xff]  ;;  %v577_v13 = vld [vmem:[#allocation2 + $0xa0] sm:$0xf] }
  0xb1   : > { %v5031_v18 = vpack.c.bf16 %v1510_v11, %v1509_v53  ;;  %v1174_v33 = vadd.f32 %v1138_v20, %v1062_v44  ;;  %v1175_v57 = vadd.f32 %v1139_v34, %v1063_v41  ;;  %v1476_v43 = vmul.f32 %v6067_v45, %v1436_v26  ;;  %v6422_v21 = vld [vmem:[#allocation2 + $0xc1] sm:$0xff]  ;;  %v6424_v20 = vld [vmem:[#allocation2 + $0xc9] sm:$0xff] }
  0xb2   : > { %v804_v37 = vmul.f32 %v6333_v48, %v6006_v61  ;;  %v727_v31 = vadd.f32 %v691_v47, %v615_v55  ;;  %v728_v38 = vadd.f32 %v692_v51, %v616_v27  ;;  %v916_v15 = vmul.f32 %v6343_v56, %v6010_v62  ;;  %v653_v26 = vld [vmem:[#allocation2 + $0xa1] sm:$0xf] }
  0xb3   : > { %5214 = vmatmul.mubr.msk.bf16.gmra.mrb[12].mxu0 %vm6146_vm2, %v5031_v18  ;;  %v917_v52 = vmul.f32 %v6380_v28, %v6010_v62  ;;  %v1287_v23 = vadd.f32 %v1251_v35, %v1174_v33  ;;  %v1288_v63 = vadd.f32 %v1252_v29, %v1175_v57  ;;  %v1028_v48 = vmul.f32 %v6347_v16, %v6016_v0  ;;  %v6430_v35 = vld [vmem:[#allocation2 + $0xc2] sm:$0xff] }
  0xb4   : > { %v1029_v17 = vmul.f32 %v6385_v32, %v6016_v0  ;;  %v839_v19 = vadd.f32 %v803_v46, %v727_v31  ;;  %v840_v30 = vadd.f32 %v804_v37, %v728_v38  ;;  %v1140_v25 = vmul.f32 %v6361_v22, %v6020_v1  ;;  %v765_v18 = vld [vmem:[#allocation2 + $0xa2] sm:$0xf]  ;;  %v878_v46 = vld [vmem:[#allocation2 + $0xb8] sm:$0xf]  ;;  %v6443_v37 = vld [vmem:[#allocation2 + $0xca] sm:$0xff] }
  0xb5   : > { %v1141_v34 = vmul.f32 %v6390_v60, %v6020_v1  ;;  %v1399_v36 = vadd.f32 %v1363_v40, %v1287_v23  ;;  %v1400_v29 = vadd.f32 %v1364_v59, %v1288_v63  ;;  %v1253_v53 = vmul.f32 %v6024_v2, %v6414_v24 }
  0xb6   : > { %v1254_v11 = vmul.f32 %v6024_v2, %v6416_v14  ;;  %v952_v44 = vadd.f32 %v916_v15, %v839_v19  ;;  %v953_v41 = vadd.f32 %v917_v52, %v840_v30  ;;  %v1365_v55 = vmul.f32 %v6028_v42, %v6422_v21  ;;  %v990_v15 = vld [vmem:[#allocation2 + $0xb9] sm:$0xf] }
  0xb7   : > { %v1366_v27 = vmul.f32 %v6028_v42, %v6424_v20  ;;  %v1511_v47 = vadd.f32 %v1475_v49, %v1399_v36  ;;  %v1512_v51 = vadd.f32 %v1476_v43, %v1400_v29  ;;  %v1477_v40 = vmul.f32 %v6067_v45, %v6430_v35  ;;  %v1102_v30 = vld [vmem:[#allocation2 + $0xba] sm:$0xf] }
  0xb8   : > { %v617_v59 = vmul.f32 %v5998_v58, %v577_v13  ;;  %v1064_v33 = vadd.f32 %v1028_v48, %v952_v44  ;;  %v1065_v57 = vadd.f32 %v1029_v17, %v953_v41  ;;  %v618_v31 = vmul.f32 %v6343_v56, %v5998_v58  ;;  %v1215_v13 = vld [vmem:[#allocation2 + $0xd0] sm:$0xf] }
  0xb9   : > { %v693_v38 = vmul.f32 %v6002_v39, %v653_v26  ;;  %v5034_v52 = vpack.c.bf16 %v1512_v51, %v1511_v47  ;;  %v694_v49 = vmul.f32 %v6347_v16, %v6002_v39  ;;  %v805_v43 = vmul.f32 %v6006_v61, %v765_v18  ;;  %v1327_v41 = vld [vmem:[#allocation2 + $0xd1] sm:$0xf]  ;;  %v6465_v18 = vld [vmem:[#allocation2 + $0xd9] sm:$0xff] }
  0xba   : > { %v806_v23 = vmul.f32 %v6361_v22, %v6006_v61  ;;  %v1176_v63 = vadd.f32 %v1140_v25, %v1064_v33  ;;  %v1177_v48 = vadd.f32 %v1141_v34, %v1065_v57  ;;  %v918_v19 = vmul.f32 %v6010_v62, %v878_v46  ;;  %v6461_v22 = vld [vmem:[#allocation2 + $0xd8] sm:$0xff]  ;;  %v1439_v47 = vld [vmem:[#allocation2 + $0xd2] sm:$0xf] }
  0xbb   : > { %v729_v17 = vadd.f32 %v693_v38, %v617_v59  ;;  %5217 = vmatprep.mubr.msk.bf16.mxu0 %vm6200_vm3, %v5034_v52  ;;  %v1478_v56 = vmul.f32 %v6067_v45, %v6443_v37  ;;  %v730_v36 = vadd.f32 %v694_v49, %v618_v31  ;;  %v919_v16 = vmul.f32 %v6414_v24, %v6010_v62  ;;  %v580_v38 = vld [vmem:[#allocation2 + $0xb8] sm:$0xf] }
  0xbc   : > { %v1030_v29 = vmul.f32 %v6016_v0, %v990_v15  ;;  %v1289_v25 = vadd.f32 %v1253_v53, %v1176_v63  ;;  %v1290_v34 = vadd.f32 %v1254_v11, %v1177_v48  ;;  %v1031_v44 = vmul.f32 %v6422_v21, %v6016_v0  ;;  %v656_v15 = vld [vmem:[#allocation2 + $0xb9] sm:$0xf] }
  0xbd   : > { %v841_v26 = vadd.f32 %v805_v43, %v729_v17  ;;  %v842_v51 = vadd.f32 %v806_v23, %v730_v36  ;;  %v1142_v59 = vmul.f32 %v6020_v1, %v1102_v30  ;;  %v1143_v46 = vmul.f32 %v6430_v35, %v6020_v1  ;;  %v768_v63 = vld [vmem:[#allocation2 + $0xba] sm:$0xf] }
  0xbe   : > { %v1255_v33 = vmul.f32 %v6024_v2, %v1215_v13  ;;  %v1401_v57 = vadd.f32 %v1365_v55, %v1289_v25  ;;  %v1402_v31 = vadd.f32 %v1366_v27, %v1290_v34  ;;  %v1256_v11 = vmul.f32 %v6024_v2, %v6461_v22  ;;  %v881_v25 = vld [vmem:[#allocation2 + $0xd0] sm:$0xf] }
  0xbf   : > { %v954_v53 = vadd.f32 %v918_v19, %v841_v26  ;;  %v955_v52 = vadd.f32 %v919_v16, %v842_v51  ;;  %v1367_v49 = vmul.f32 %v6028_v42, %v1327_v41  ;;  %v1368_v43 = vmul.f32 %v6028_v42, %v6465_v18  ;;  %v6479_v19 = vld [vmem:[#allocation2 + $0xda] sm:$0xff]  ;;  %v1105_v51 = vld [vmem:[#allocation2 + $0xd2] sm:$0xf] }
  0xc0   : > { %v1479_v23 = vmul.f32 %v6067_v45, %v1439_v47  ;;  %v1513_v48 = vadd.f32 %v1477_v40, %v1401_v57  ;;  %v1514_v17 = vadd.f32 %v1478_v56, %v1402_v31  ;;  %v619_v55 = vmul.f32 %v6380_v28, %v5998_v58  ;;  %v6490_v57 = vld [vmem:[#allocation2 + $0xe0] sm:$0xff] }
  0xc1   : > { %v1066_v30 = vadd.f32 %v1030_v29, %v954_v53  ;;  %v1067_v27 = vadd.f32 %v1031_v44, %v955_v52  ;;  %v620_v13 = vmul.f32 %v5998_v58, %v580_v38  ;;  %v695_v36 = vmul.f32 %v6385_v32, %v6002_v39  ;;  %v993_v29 = vld [vmem:[#allocation2 + $0xd1] sm:$0xf]  ;;  %v1218_v53 = vld [vmem:[#allocation2 + $0xe8] sm:$0xf] }
  0xc2   : > { %v696_v16 = vmul.f32 %v6002_v39, %v656_v15  ;;  %v1553_v34 = vpack.c.bf16 %v1514_v17, %v1513_v48  ;;  %v807_v40 = vmul.f32 %v6390_v60, %v6006_v61  ;;  %v808_v56 = vmul.f32 %v6006_v61, %v768_v63  ;;  %v6498_v63 = vld [vmem:[#allocation2 + $0xe1] sm:$0xff]  ;;  %v1330_v48 = vld [vmem:[#allocation2 + $0xe9] sm:$0xf] }
  0xc3   : > { %v1178_v26 = vadd.f32 %v1142_v59, %v1066_v30  ;;  %v1179_v28 = vadd.f32 %v1143_v46, %v1067_v27  ;;  %v731_v44 = vadd.f32 %v695_v36, %v619_v55  ;;  %v920_v47 = vmul.f32 %v6416_v14, %v6010_v62  ;;  %v6500_v17 = vld [vmem:[#allocation2 + $0xe2] sm:$0xff] }
  0xc4   : > { %v732_v41 = vadd.f32 %v696_v16, %v620_v13  ;;  %5218 = vmatmul.mubr.bf16.gmra.mrb[16].mxu0 %v1553_v34  ;;  %v1480_v59 = vmul.f32 %v6067_v45, %v6479_v19  ;;  %v921_v31 = vmul.f32 %v6010_v62, %v881_v25  ;;  %v1032_v60 = vmul.f32 %v6424_v20, %v6016_v0 }
  0xc5   : > { %v1291_v32 = vadd.f32 %v1255_v33, %v1178_v26  ;;  %v1292_v46 = vadd.f32 %v1256_v11, %v1179_v28  ;;  %v843_v38 = vadd.f32 %v807_v40, %v731_v44  ;;  %v1033_v52 = vmul.f32 %v6016_v0, %v993_v29 }
  0xc6   : > { %v844_v15 = vadd.f32 %v808_v56, %v732_v41  ;;  %v1144_v30 = vmul.f32 %v6443_v37, %v6020_v1  ;;  %v1145_v55 = vmul.f32 %v6020_v1, %v1105_v51  ;;  %v1257_v27 = vmul.f32 %v6024_v2, %v6490_v57 }
  0xc7   : > { %v1403_v33 = vadd.f32 %v1367_v49, %v1291_v32  ;;  %v1404_v13 = vadd.f32 %v1368_v43, %v1292_v46  ;;  %v956_v11 = vadd.f32 %v920_v47, %v843_v38  ;;  %v1258_v16 = vmul.f32 %v6024_v2, %v1218_v53  ;;  %v1442_v43 = vld [vmem:[#allocation2 + $0xea] sm:$0xf]  ;;  %v6534_v38 = vld [vmem:[#allocation2 + $0xf8] sm:$0xff] }
  0xc8   : > { %v957_v36 = vadd.f32 %v921_v31, %v844_v15  ;;  %v1369_v34 = vmul.f32 %v6028_v42, %v6498_v63  ;;  %v1370_v26 = vmul.f32 %v6028_v42, %v1330_v48  ;;  %v1481_v49 = vmul.f32 %v6067_v45, %v6500_v17 }
  0xc9   : > { %v1515_v25 = vadd.f32 %v1479_v23, %v1403_v33  ;;  %v1516_v40 = vadd.f32 %v1480_v59, %v1404_v13  ;;  %v1068_v56 = vadd.f32 %v1032_v60, %v956_v11  ;;  %v621_v28 = vmul.f32 %v6414_v24, %v5998_v58  ;;  %v6540_v33 = vld [vmem:[#allocation2 + $0xf0] sm:$0xff] }
  0xca   : > { %v1069_v29 = vadd.f32 %v1033_v52, %v957_v36  ;;  %v622_v44 = vmul.f32 %v6416_v14, %v5998_v58  ;;  %v697_v23 = vmul.f32 %v6422_v21, %v6002_v39  ;;  %v698_v41 = vmul.f32 %v6424_v20, %v6002_v39  ;;  %v6548_v36 = vld [vmem:[#allocation2 + $0xf1] sm:$0xff] }
  0xcb   : > { %v809_v47 = vmul.f32 %v6430_v35, %v6006_v61  ;;  %v5037_v51 = vpack.c.bf16 %v1516_v40, %v1515_v25  ;;  %v1180_v32 = vadd.f32 %v1144_v30, %v1068_v56  ;;  %v810_v31 = vmul.f32 %v6443_v37, %v6006_v61  ;;  %v6542_v30 = vld [vmem:[#allocation2 + $0xf9] sm:$0xff] }
  0xcc   : > { %v1181_v59 = vadd.f32 %v1145_v55, %v1069_v29  ;;  %v733_v24 = vadd.f32 %v697_v23, %v621_v28  ;;  %v734_v60 = vadd.f32 %v698_v41, %v622_v44  ;;  %v922_v14 = vmul.f32 %v6461_v22, %v6010_v62  ;;  %v6554_v28 = vld [vmem:[#allocation2 + $0xf2] sm:$0xff]  ;;  %v6558_v41 = vld [vmem:[#allocation2 + $0xfa] sm:$0xff] }
  0xcd   : > { %v923_v21 = vmul.f32 %v6490_v57, %v6010_v62  ;;  %5221 = vmatprep.mubr.msk.bf16.mxu0 %vm6146_vm2, %v5037_v51  ;;  %v1293_v20 = vadd.f32 %v1257_v27, %v1180_v32  ;;  %v1482_v35 = vmul.f32 %v6067_v45, %v1442_v43  ;;  %v1034_v46 = vmul.f32 %v6465_v18, %v6016_v0 }
  0xce   : > { %v1294_v53 = vadd.f32 %v1258_v16, %v1181_v59  ;;  %v845_v37 = vadd.f32 %v809_v47, %v733_v24  ;;  %v846_v15 = vadd.f32 %v810_v31, %v734_v60  ;;  %v1035_v52 = vmul.f32 %v6498_v63, %v6016_v0  ;;  %v583_v16 = vld [vmem:[#allocation2 + $0xd0] sm:$0xf]  ;;  %v884_v24 = vld [vmem:[#allocation2 + $0xe8] sm:$0xf] }
  0xcf   : > { %v1146_v48 = vmul.f32 %v6479_v19, %v6020_v1  ;;  %v1405_v55 = vadd.f32 %v1369_v34, %v1293_v20  ;;  %v1147_v13 = vmul.f32 %v6500_v17, %v6020_v1  ;;  %v1259_v11 = vmul.f32 %v6024_v2, %v6540_v33  ;;  %v659_v34 = vld [vmem:[#allocation2 + $0xd1] sm:$0xf]  ;;  %v996_v20 = vld [vmem:[#allocation2 + $0xe9] sm:$0xf] }
  0xd0   : > { %v1406_v27 = vadd.f32 %v1370_v26, %v1294_v53  ;;  %v958_v25 = vadd.f32 %v922_v14, %v845_v37  ;;  %v959_v40 = vadd.f32 %v923_v21, %v846_v15  ;;  %v1260_v56 = vmul.f32 %v6024_v2, %v6534_v38  ;;  %v771_v26 = vld [vmem:[#allocation2 + $0xd2] sm:$0xf]  ;;  %v1108_v15 = vld [vmem:[#allocation2 + $0xea] sm:$0xf] }
  0xd1   : > { %v1371_v29 = vmul.f32 %v6028_v42, %v6548_v36  ;;  %v1517_v43 = vadd.f32 %v1481_v49, %v1405_v55  ;;  %v1372_v23 = vmul.f32 %v6028_v42, %v6542_v30  ;;  %v1483_v47 = vmul.f32 %v6067_v45, %v6554_v28 }
  0xd2   : > { %v1518_v44 = vadd.f32 %v1482_v35, %v1406_v27  ;;  %v1070_v51 = vadd.f32 %v1034_v46, %v958_v25  ;;  %v1071_v32 = vadd.f32 %v1035_v52, %v959_v40  ;;  %v623_v59 = vmul.f32 %v5998_v58, %v583_v16  ;;  %v1221_v27 = vld [vmem:[#allocation2 + $0x100] sm:$0xf] }
  0xd3   : > { %v624_v31 = vmul.f32 %v6461_v22, %v5998_v58  ;;  %v699_v49 = vmul.f32 %v6002_v39, %v659_v34  ;;  %v700_v14 = vmul.f32 %v6465_v18, %v6002_v39  ;;  %v811_v21 = vmul.f32 %v6006_v61, %v771_v26  ;;  %v1333_v40 = vld [vmem:[#allocation2 + $0x101] sm:$0xf]  ;;  %v6583_v34 = vld [vmem:[#allocation2 + $0x109] sm:$0xff] }
  0xd4   : > { %v5040_v60 = vpack.c.bf16 %v1518_v44, %v1517_v43  ;;  %v1182_v53 = vadd.f32 %v1146_v48, %v1070_v51  ;;  %v1183_v35 = vadd.f32 %v1147_v13, %v1071_v32  ;;  %v1484_v46 = vmul.f32 %v6067_v45, %v6558_v41  ;;  %v6578_v48 = vld [vmem:[#allocation2 + $0x108] sm:$0xff]  ;;  %v1445_v32 = vld [vmem:[#allocation2 + $0x102] sm:$0xf] }
  0xd5   : > { %v812_v37 = vmul.f32 %v6479_v19, %v6006_v61  ;;  %v735_v22 = vadd.f32 %v699_v49, %v623_v59  ;;  %v736_v52 = vadd.f32 %v700_v14, %v624_v31  ;;  %v924_v55 = vmul.f32 %v6010_v62, %v884_v24  ;;  %v586_v24 = vld [vmem:[#allocation2 + $0xe8] sm:$0xf] }
  0xd6   : > { %5222 = vmatmul.mubr.msk.bf16.gmra.mrb[20].mxu0 %vm6200_vm3, %v5040_v60  ;;  %v925_v18 = vmul.f32 %v6540_v33, %v6010_v62  ;;  %v1295_v13 = vadd.f32 %v1259_v11, %v1182_v53  ;;  %v1296_v16 = vadd.f32 %v1260_v56, %v1183_v35  ;;  %v1036_v25 = vmul.f32 %v6016_v0, %v996_v20  ;;  %v662_v20 = vld [vmem:[#allocation2 + $0xe9] sm:$0xf] }
  0xd7   : > { %v1037_v19 = vmul.f32 %v6548_v36, %v6016_v0  ;;  %v847_v26 = vadd.f32 %v811_v21, %v735_v22  ;;  %v848_v43 = vadd.f32 %v812_v37, %v736_v52  ;;  %v1148_v44 = vmul.f32 %v6020_v1, %v1108_v15  ;;  %v774_v53 = vld [vmem:[#allocation2 + $0xea] sm:$0xf] }
  0xd8   : > { %v1149_v51 = vmul.f32 %v6554_v28, %v6020_v1  ;;  %v1407_v59 = vadd.f32 %v1371_v29, %v1295_v13  ;;  %v1408_v31 = vadd.f32 %v1372_v23, %v1296_v16  ;;  %v1261_v11 = vmul.f32 %v6024_v2, %v1221_v27  ;;  %v6597_v52 = vld [vmem:[#allocation2 + $0x10a] sm:$0xff]  ;;  %v887_v27 = vld [vmem:[#allocation2 + $0x100] sm:$0xf] }
  0xd9   : > { %v1262_v56 = vmul.f32 %v6024_v2, %v6578_v48  ;;  %v960_v60 = vadd.f32 %v924_v55, %v847_v26  ;;  %v961_v49 = vadd.f32 %v925_v18, %v848_v43  ;;  %v1373_v14 = vmul.f32 %v6028_v42, %v1333_v40  ;;  %v999_v40 = vld [vmem:[#allocation2 + $0x101] sm:$0xf] }
  0xda   : > { %v1374_v21 = vmul.f32 %v6028_v42, %v6583_v34  ;;  %v1519_v35 = vadd.f32 %v1483_v47, %v1407_v59  ;;  %v1520_v37 = vadd.f32 %v1484_v46, %v1408_v31  ;;  %v1485_v29 = vmul.f32 %v6067_v45, %v1445_v32  ;;  %v1111_v43 = vld [vmem:[#allocation2 + $0x102] sm:$0xf]  ;;  %v1224_v31 = vld [vmem:[#allocation2 + $0x118] sm:$0xf] }
  0xdb   : > { %v625_v23 = vmul.f32 %v6490_v57, %v5998_v58  ;;  %v1072_v15 = vadd.f32 %v1036_v25, %v960_v60  ;;  %v1073_v22 = vadd.f32 %v1037_v19, %v961_v49  ;;  %v626_v55 = vmul.f32 %v5998_v58, %v586_v24  ;;  %v6614_v49 = vld [vmem:[#allocation2 + $0x110] sm:$0xff] }
  0xdc   : > { %v701_v18 = vmul.f32 %v6498_v63, %v6002_v39  ;;  %v1556_v13 = vpack.c.bf16 %v1520_v37, %v1519_v35  ;;  %v702_v16 = vmul.f32 %v6002_v39, %v662_v20  ;;  %v813_v47 = vmul.f32 %v6500_v17, %v6006_v61  ;;  %v1336_v20 = vld [vmem:[#allocation2 + $0x119] sm:$0xf] }
  0xdd   : > { %v814_v46 = vmul.f32 %v6006_v61, %v774_v53  ;;  %v1184_v57 = vadd.f32 %v1148_v44, %v1072_v15  ;;  %v1185_v25 = vadd.f32 %v1149_v51, %v1073_v22  ;;  %v926_v26 = vmul.f32 %v6534_v38, %v6010_v62 }
  0xde   : > { %v737_v19 = vadd.f32 %v701_v18, %v625_v23  ;;  %5225 = vmatprep.mubr.bf16.mxu0 %v1556_v13  ;;  %v1486_v63 = vmul.f32 %v6067_v45, %v6597_v52  ;;  %v738_v32 = vadd.f32 %v702_v16, %v626_v55  ;;  %v927_v59 = vmul.f32 %v6010_v62, %v887_v27  ;;  %v6624_v18 = vld [vmem:[#allocation2 + $0x112] sm:$0xff] }
  0xdf   : > { %v1038_v17 = vmul.f32 %v6542_v30, %v6016_v0  ;;  %v1297_v24 = vadd.f32 %v1261_v11, %v1184_v57  ;;  %v1298_v60 = vadd.f32 %v1262_v56, %v1185_v25  ;;  %v1039_v51 = vmul.f32 %v6016_v0, %v999_v40  ;;  %v6622_v56 = vld [vmem:[#allocation2 + $0x111] sm:$0xff]  ;;  %v1448_v25 = vld [vmem:[#allocation2 + $0x11a] sm:$0xf] }
  0xe0   : > { %v849_v44 = vadd.f32 %v813_v47, %v737_v19  ;;  %v850_v53 = vadd.f32 %v814_v46, %v738_v32  ;;  %v1150_v35 = vmul.f32 %v6558_v41, %v6020_v1  ;;  %v1151_v37 = vmul.f32 %v6020_v1, %v1111_v43 }
  0xe1   : > { %v1263_v23 = vmul.f32 %v6024_v2, %v6614_v49  ;;  %v1409_v15 = vadd.f32 %v1373_v14, %v1297_v24  ;;  %v1410_v22 = vadd.f32 %v1374_v21, %v1298_v60  ;;  %v1264_v11 = vmul.f32 %v6024_v2, %v1224_v31  ;;  %v1225_v60 = vld [vmem:[#allocation2 + $0x120] sm:$0xff] }
  0xe2   : > { %v962_v55 = vadd.f32 %v926_v26, %v849_v44  ;;  %v963_v27 = vadd.f32 %v927_v59, %v850_v53  ;;  %v1375_v13 = vmul.f32 %v6028_v42, %v6622_v56  ;;  %v1376_v16 = vmul.f32 %v6028_v42, %v1336_v20  ;;  %v6654_v53 = vld [vmem:[#allocation2 + $0x128] sm:$0xff] }
  0xe3   : > { %v1487_v47 = vmul.f32 %v6067_v45, %v6624_v18  ;;  %v1521_v46 = vadd.f32 %v1485_v29, %v1409_v15  ;;  %v1522_v40 = vadd.f32 %v1486_v63, %v1410_v22  ;;  %v627_v21 = vmul.f32 %v6540_v33, %v5998_v58 }
  0xe4   : > { %v1074_v14 = vadd.f32 %v1038_v17, %v962_v55  ;;  %v1075_v57 = vadd.f32 %v1039_v51, %v963_v27  ;;  %v628_v19 = vmul.f32 %v6534_v38, %v5998_v58  ;;  %v703_v26 = vmul.f32 %v6548_v36, %v6002_v39  ;;  %v589_v55 = vld [vmem:[#allocation2 + $0x100] sm:$0xf] }
  0xe5   : > { %v704_v43 = vmul.f32 %v6542_v30, %v6002_v39  ;;  %v5043_v32 = vpack.c.bf16 %v1522_v40, %v1521_v46  ;;  %v815_v29 = vmul.f32 %v6554_v28, %v6006_v61  ;;  %v816_v63 = vmul.f32 %v6558_v41, %v6006_v61 }
  0xe6   : > { %v1186_v59 = vadd.f32 %v1150_v35, %v1074_v14  ;;  %v1187_v33 = vadd.f32 %v1151_v37, %v1075_v57  ;;  %v739_v17 = vadd.f32 %v703_v26, %v627_v21  ;;  %v928_v38 = vmul.f32 %v6578_v48, %v6010_v62  ;;  %v1337_v35 = vld [vmem:[#allocation2 + $0x121] sm:$0xff]  ;;  %v6656_v37 = vld [vmem:[#allocation2 + $0x129] sm:$0xff] }
  0xe7   : > { %v740_v31 = vadd.f32 %v704_v43, %v628_v19  ;;  %5226 = vmatmul.mubr.msk.bf16.gmra.mrb[24].mxu0 %vm6146_vm2, %v5043_v32  ;;  %v1488_v30 = vmul.f32 %v6067_v45, %v1448_v25  ;;  %v929_v24 = vmul.f32 %v6614_v49, %v6010_v62  ;;  %v1040_v28 = vmul.f32 %v6583_v34, %v6016_v0  ;;  %v665_v14 = vld [vmem:[#allocation2 + $0x101] sm:$0xf] }
  0xe8   : > { %v1299_v36 = vadd.f32 %v1263_v23, %v1186_v59  ;;  %v1300_v41 = vadd.f32 %v1264_v11, %v1187_v33  ;;  %v851_v44 = vadd.f32 %v815_v29, %v739_v17  ;;  %v1041_v20 = vmul.f32 %v6622_v56, %v6016_v0  ;;  %v777_v21 = vld [vmem:[#allocation2 + $0x102] sm:$0xf]  ;;  %v890_v59 = vld [vmem:[#allocation2 + $0x118] sm:$0xf] }
  0xe9   : > { %v852_v51 = vadd.f32 %v816_v63, %v740_v31  ;;  %v1152_v15 = vmul.f32 %v6597_v52, %v6020_v1  ;;  %v1153_v22 = vmul.f32 %v6624_v18, %v6020_v1  ;;  %v1265_v40 = vmul.f32 %v6024_v2, %v1225_v60  ;;  %v1449_v29 = vld [vmem:[#allocation2 + $0x122] sm:$0xff]  ;;  %v6669_v63 = vld [vmem:[#allocation2 + $0x12a] sm:$0xff] }
  0xea   : > { %v1411_v23 = vadd.f32 %v1375_v13, %v1299_v36  ;;  %v1412_v27 = vadd.f32 %v1376_v16, %v1300_v41  ;;  %v964_v11 = vadd.f32 %v928_v38, %v851_v44  ;;  %v1266_v25 = vmul.f32 %v6024_v2, %v6654_v53 }
  0xeb   : > { %v965_v46 = vadd.f32 %v929_v24, %v852_v51  ;;  %v1377_v13 = vmul.f32 %v6028_v42, %v1337_v35  ;;  %v1378_v19 = vmul.f32 %v6028_v42, %v6656_v37  ;;  %v629_v16 = vmul.f32 %v5998_v58, %v589_v55 }
  0xec   : > { %v1523_v57 = vadd.f32 %v1487_v47, %v1411_v23  ;;  %v1524_v26 = vadd.f32 %v1488_v30, %v1412_v27  ;;  %v1076_v43 = vadd.f32 %v1040_v28, %v964_v11  ;;  %v630_v47 = vmul.f32 %v6578_v48, %v5998_v58  ;;  %v1002_v28 = vld [vmem:[#allocation2 + $0x119] sm:$0xf] }
  0xed   : > { %v1077_v32 = vadd.f32 %v1041_v20, %v965_v46  ;;  %v705_v33 = vmul.f32 %v6002_v39, %v665_v14  ;;  %v706_v17 = vmul.f32 %v6583_v34, %v6002_v39  ;;  %v817_v31 = vmul.f32 %v6006_v61, %v777_v21  ;;  %v1114_v20 = vld [vmem:[#allocation2 + $0x11a] sm:$0xf] }
  0xee   : > { %v5046_v38 = vpack.c.bf16 %v1524_v26, %v1523_v57  ;;  %v1188_v36 = vadd.f32 %v1152_v15, %v1076_v43  ;;  %v818_v24 = vmul.f32 %v6597_v52, %v6006_v61  ;;  %v930_v51 = vmul.f32 %v6010_v62, %v890_v59  ;;  %v1228_v14 = vld [vmem:[#allocation2 + $0x138] sm:$0xff] }
  0xef   : > { %v1189_v30 = vadd.f32 %v1153_v22, %v1077_v32  ;;  %v741_v41 = vadd.f32 %v705_v33, %v629_v16  ;;  %v742_v44 = vadd.f32 %v706_v17, %v630_v47  ;;  %v931_v48 = vmul.f32 %v1225_v60, %v6010_v62  ;;  %v1227_v22 = vld [vmem:[#allocation2 + $0x130] sm:$0xf]  ;;  %v668_v59 = vld [vmem:[#allocation2 + $0x119] sm:$0xf] }
  0xf0   : > { %5229 = vmatprep.mubr.msk.bf16.mxu0 %vm6200_vm3, %v5046_v38  ;;  %v1301_v34 = vadd.f32 %v1265_v40, %v1188_v36  ;;  %v1489_v55 = vmul.f32 %v6067_v45, %v1449_v29  ;;  %v1490_v15 = vmul.f32 %v6067_v45, %v6669_v63  ;;  %v1042_v11 = vmul.f32 %v6016_v0, %v1002_v28  ;;  %v1339_v60 = vld [vmem:[#allocation2 + $0x131] sm:$0xf]  ;;  %v592_v40 = vld [vmem:[#allocation2 + $0x118] sm:$0xf] }
  0xf1   : > { %v1302_v23 = vadd.f32 %v1266_v25, %v1189_v30  ;;  %v853_v52 = vadd.f32 %v817_v31, %v741_v41  ;;  %v854_v27 = vadd.f32 %v818_v24, %v742_v44  ;;  %v1043_v46 = vmul.f32 %v1337_v35, %v6016_v0  ;;  %v1340_v31 = vld [vmem:[#allocation2 + $0x139] sm:$0xff]  ;;  %v893_v24 = vld [vmem:[#allocation2 + $0x130] sm:$0xf] }
  0xf2   : > { %v1413_v21 = vadd.f32 %v1377_v13, %v1301_v34  ;;  %v1154_v26 = vmul.f32 %v6020_v1, %v1114_v20  ;;  %v1155_v32 = vmul.f32 %v1449_v29, %v6020_v1  ;;  %v1267_v16 = vmul.f32 %v6024_v2, %v1227_v22  ;;  %v780_v38 = vld [vmem:[#allocation2 + $0x11a] sm:$0xf]  ;;  %v1451_v28 = vld [vmem:[#allocation2 + $0x132] sm:$0xf] }
  0xf3   : > { %v1414_v57 = vadd.f32 %v1378_v19, %v1302_v23  ;;  %v966_v25 = vadd.f32 %v930_v51, %v853_v52  ;;  %v967_v43 = vadd.f32 %v931_v48, %v854_v27  ;;  %v1268_v17 = vmul.f32 %v6024_v2, %v1228_v14  ;;  %v1452_v41 = vld [vmem:[#allocation2 + $0x13a] sm:$0xff] }
  0xf4   : > { %v1525_v47 = vadd.f32 %v1489_v55, %v1413_v21  ;;  %v1379_v35 = vmul.f32 %v6028_v42, %v1339_v60  ;;  %v631_v36 = vmul.f32 %v6614_v49, %v5998_v58  ;;  %v632_v30 = vmul.f32 %v5998_v58, %v592_v40  ;;  %v1005_v55 = vld [vmem:[#allocation2 + $0x131] sm:$0xf] }
  0xf5   : > { %v1526_v33 = vadd.f32 %v1490_v15, %v1414_v57  ;;  %v1078_v13 = vadd.f32 %v1042_v11, %v966_v25  ;;  %v1079_v19 = vadd.f32 %v1043_v46, %v967_v43  ;;  %v707_v44 = vmul.f32 %v6622_v56, %v6002_v39  ;;  %v1117_v11 = vld [vmem:[#allocation2 + $0x132] sm:$0xf] }
  0xf6   : > { %v708_v51 = vmul.f32 %v6002_v39, %v668_v59  ;;  %v819_v48 = vmul.f32 %v6624_v18, %v6006_v61  ;;  %v1380_v23 = vmul.f32 %v6028_v42, %v1340_v31  ;;  %v820_v49 = vmul.f32 %v6006_v61, %v780_v38  ;;  %v1341_v59 = vld [vmem:[#allocation2 + $0x141] sm:$0xff]  ;;  %v1454_v38 = vld [vmem:[#allocation2 + $0x14a] sm:$0xf] }
  0xf7   : > { %v1559_v29 = vpack.c.bf16 %v1526_v33, %v1525_v47  ;;  %v1190_v20 = vadd.f32 %v1154_v26, %v1078_v13  ;;  %v1191_v34 = vadd.f32 %v1155_v32, %v1079_v19  ;;  %v743_v58 = vadd.f32 %v707_v44, %v631_v36  ;;  %v1229_v26 = vld [vmem:[#allocation2 + $0x140] sm:$0xff]  ;;  %v1342_v47 = vld [vmem:[#allocation2 + $0x149] sm:$0xf] }
  0xf8   : > { %v744_v15 = vadd.f32 %v708_v51, %v632_v30  ;;  %v932_v22 = vmul.f32 %v6654_v53, %v6010_v62  ;;  %v933_v56 = vmul.f32 %v6010_v62, %v893_v24  ;;  %v1491_v27 = vmul.f32 %v6067_v45, %v1451_v28  ;;  %v1230_v53 = vld [vmem:[#allocation2 + $0x148] sm:$0xf] }
  0xf9   : > { %5230 = vmatmul.mubr.bf16.gmra.mrb[28].mxu0 %v1559_v29  ;;  %v1303_v52 = vadd.f32 %v1267_v16, %v1190_v20  ;;  %v1304_v39 = vadd.f32 %v1268_v17, %v1191_v34  ;;  %v1492_v18 = vmul.f32 %v6067_v45, %v1452_v41  ;;  %v855_v46 = vadd.f32 %v819_v48, %v743_v58 }
  0xfa   : > { %v856_v14 = vadd.f32 %v820_v49, %v744_v15  ;;  %v1044_v61 = vmul.f32 %v6656_v37, %v6016_v0  ;;  %v1045_v60 = vmul.f32 %v6016_v0, %v1005_v55  ;;  %v1156_v25 = vmul.f32 %v6669_v63, %v6020_v1 }
  0xfb   : > { %v1415_v21 = vadd.f32 %v1379_v35, %v1303_v52  ;;  %v1416_v57 = vadd.f32 %v1380_v23, %v1304_v39  ;;  %v968_v40 = vadd.f32 %v932_v22, %v855_v46  ;;  %v1157_v43 = vmul.f32 %v6020_v1, %v1117_v11  ;;  %v1453_v35 = vld [vmem:[#allocation2 + $0x142] sm:$0xff] }
  0xfc   : > { %v969_v62 = vadd.f32 %v933_v56, %v856_v14  ;;  %v1269_v37 = vmul.f32 %v6024_v2, %v1229_v26  ;;  %v1270_v0 = vmul.f32 %v6024_v2, %v1230_v53  ;;  %v1381_v36 = vmul.f32 %v6028_v42, %v1341_v59  ;;  %v9518_v56 = vld [vmem:[#allocation42_spill] sm:$0xff]  ;;  %v9521_v26 = vld [vmem:[#allocation47_spill] sm:$0xff]  ;;  %v9522_v53 = vld [vmem:[#allocation13_spill] sm:$0xff] }
  0xfd   : > { %v1527_v32 = vadd.f32 %v1491_v27, %v1415_v21  ;;  %v1528_v16 = vadd.f32 %v1492_v18, %v1416_v57  ;;  %v1080_v33 = vadd.f32 %v1044_v61, %v968_v40  ;;  %v1382_v63 = vmul.f32 %v6028_v42, %v1342_v47 }
  0xfe   : > { %v1081_v17 = vadd.f32 %v1045_v60, %v969_v62  ;;  %v1493_v24 = vmul.f32 %v6067_v45, %v1453_v35  ;;  %v1494_v29 = vmul.f32 %v6067_v45, %v1454_v38  ;;  %v9371_v41 = vmov 0.0   ;;  %v9523_v62 = vld [vmem:[#allocation48_spill] sm:$0xff] }
  0xff   : > { %v5049_v31 = vpack.c.bf16 %v1528_v16, %v1527_v32  ;;  %v1192_v13 = vadd.f32 %v1156_v25, %v1080_v33  ;;  %5237 = vmatprep.subr.bf16.mxu1 %v9371_v41  ;;  %v5059_v44 = vcombine.low %v5805_v3, %v5810_v4  ;;  %v5060_v42 = vcombine.low %v5815_v5, %v5820_v6  ;;  %v9507_v4 = vld [vmem:[#allocation19_spill] sm:$0xff]  ;;  %v9508_v6 = vld [vmem:[#allocation21_spill] sm:$0xff]  ;;  %v9524_v16 = vld [vmem:[#allocation46_spill] sm:$0xff] }
 0x100   : > { %v1193_v19 = vadd.f32 %v1157_v43, %v1081_v17  ;;  %v5061_v45 = vcombine.low %v5825_v7, %v5830_v8  ;;  %v5062_v3 = vcombine.low %v5835_v9, %v5840_v10  ;;  %v5063_v5 = vcombine.low %v9507_v4, %v5850_v12  ;;  %v9510_v7 = vld [vmem:[#allocation23_spill] sm:$0xff]  ;;  %v9511_v8 = vld [vmem:[#allocation22_spill] sm:$0xff]  ;;  %v9512_v9 = vld [vmem:[#allocation25_spill] sm:$0xff]  ;;  %5253 = vmatprep.mubr.msk.bf16.mxu1 %vm5521_vm4, %v9371_v41 }
 0x101   : > { %5233 = vmatprep.mubr.msk.bf16.mxu0 %vm6146_vm2, %v5049_v31  ;;  %v1305_v1 = vadd.f32 %v1269_v37, %v1192_v13  ;;  %5238 = vmatpush3.bf16.msra.mxu1 %v5059_v44  ;;  %v5064_v20 = vcombine.low %v9509_v50, %v9508_v6  ;;  %v5065_v34 = vcombine.low %v9511_v8, %v9510_v7  ;;  %v9513_v10 = vld [vmem:[#allocation24_spill] sm:$0xff]  ;;  %v9515_v12 = vld [vmem:[#allocation45_spill] sm:$0xff]  ;;  %v6755_v55 = vstv %s5055_s25  ;;  %v9527_v33 = vld [vmem:[#allocation14_spill] sm:$0xff]  ;;  %s5522_s25 = smov [#allocation4]  }
 0x102   : > { %v1306_v30 = vadd.f32 %v1270_v0, %v1193_v19  ;;  %5239 = vmatprep.subr.bf16.mxu1 %v9371_v41  ;;  %v5066_v23 = vcombine.low %v9513_v10, %v9512_v9  ;;  %v6753_v49 = vadd.s32 16, %v9515_v12  ;;  %9517 = vst [vmem:[#allocation21_spill] sm:$0xff] %v6755_v55  ;;  %vm1885_vm5 = vcmp.ge.s32.totalorder %v6755_v55, 0  ;;  %s5425_s0 = sshll.u32 %s5522_s25, 4  ;;  %s5426_s0 = int_to_ptr.vmem [resolvable:$false] %s5425_s0 }
 0x103   : > { %v1417_v28 = vadd.f32 %v1381_v36, %v1305_v1  ;;  %vm1897_vm6 = vcmp.lt.s32.totalorder %v6755_v55, 16  ;;  %v6763_v15 = vadd.s32 4294967294, %v9515_v12  ;;  %v1867_v27 = vadd.s32 1, %v6755_v55  ;;  %p5428_p1 = scmp.lt.s32.totalorder %s9274_s16, %s5426_s0 }
 0x104   : > { %v1418_v2 = vadd.f32 %v1382_v63, %v1306_v30  ;;  %9516 = vst [vmem:[#allocation19_spill] sm:$0xff] %v6753_v49  ;;  %v6758_v58 = vadd.s32 4294967294, %v6753_v49  ;;  %vm6767_vm7 = vmand %vm1885_vm5, %vm1897_vm6  ;;  %v1868_v57 = vadd.s32 2, %v6755_v55  ;;  %v6786_v40 = vrot.slane %v9522_v53, %v9521_v26 }
 0x105   : > { %v1529_v51 = vadd.f32 %v1493_v24, %v1417_v28  ;;  %5240 = vmatpush3.bf16.msra.mxu1 %v5060_v42  ;;  %vm1921_vm9 = vcmp.ge.s32.totalorder %v6763_v15, 0  ;;  %vm1886_vm11 = vcmp.ge.s32.totalorder %v1867_v27, 0  ;;  %vm1898_vm12 = vcmp.lt.s32.totalorder %v1867_v27, 16 }
 0x106   : > { %v1530_v48 = vadd.f32 %v1494_v29, %v1418_v2  ;;  %5241 = vmatprep.subr.bf16.mxu1 %v9371_v41  ;;  %vm1962_vm8 = vcmp.lt.s32.totalorder %v6758_v58, 16  ;;  %vm1924_vm13 = vmand %vm6767_vm7, %vm1921_vm9  ;;  %v6790_v25 = vrot.slane %v9522_v53, %v9523_v62  ;;  %v6795_v59 = vrot.slane %v9522_v53, %v9524_v16  ;;  %v9528_v29 = vld [vmem:[#allocation15_spill] sm:$0xff] }
 0x107   : > { %vm1965_vm10 = vmand %vm6767_vm7, %vm1962_vm8  ;;  %v6803_v17 = vrot.slane %v9527_v33, %v9524_v16  ;;  %v6807_v37 = vrot.slane %v9527_v33, %v9521_v26  ;;  %v6811_v31 = vrot.slane %v9527_v33, %v9523_v62  ;;  %vm1887_vm2 = vcmp.ge.s32.totalorder %v1868_v57, 0 }
 0x108   : > { %v5052_v54 = vpack.c.bf16 %v1530_v48, %v1529_v51  ;;  %vm6797_vm14 = vmand %vm1886_vm11, %vm1898_vm12  ;;  %v6814_v38 = vadd.s32 3, %v6755_v55  ;;  %v6823_v63 = vadd.s32 4, %v6755_v55  ;;  %v6828_v24 = vadd.s32 5, %v6755_v55 }
 0x109   : > { %5242 = vmatpush3.bf16.msra.mxu1 %v5061_v45  ;;  %vm1927_vm5 = vmand %vm6797_vm14, %vm1921_vm9  ;;  %v6832_v28 = vrot.slane %v9528_v29, %v9524_v16  ;;  %v6837_v44 = vadd.s32 6, %v6755_v55  ;;  %v6841_v51 = vrot.slane %v9528_v29, %v9521_v26  ;;  %v6845_v48 = vrot.slane %v9528_v29, %v9523_v62 }
 0x10a   : > { %5234 = vmatmul.mubr.msk.bf16.gmra.mrb[32].mxu0 %vm6200_vm3, %v5052_v54  ;;  %5243 = vmatprep.subr.bf16.mxu1 %v9371_v41  ;;  %vm1899_vm3 = vcmp.lt.s32.totalorder %v1868_v57, 16  ;;  %v6853_v6 = vadd.s32 8, %v6755_v55  ;;  %v6856_v50 = vadd.s32 9, %v6755_v55  ;;  %vm1900_vm11 = vcmp.lt.s32.totalorder %v6814_v38, 16  ;;  %vm1968_vm12 = vmand %vm6797_vm14, %vm1962_vm8 }
 0x10b   : > { %vm6868_vm6 = vmand %vm1887_vm2, %vm1899_vm3  ;;  %vm1889_vm3 = vcmp.ge.s32.totalorder %v6823_v63, 0 }
 0x10d   : > { %5244 = vmatpush3.bf16.msra.mxu1 %v5062_v3  ;;  %v6850_v3 = vadd.s32 7, %v6755_v55 }
 0x10e   : > { %5245 = vmatprep.subr.bf16.mxu1 %v9371_v41 }
 0x111   : > { %5246 = vmatpush3.bf16.msra.mxu1 %v5063_v5 }
 0x112   : > { %5247 = vmatprep.subr.bf16.mxu1 %v9371_v41 }
 0x115   : > { %5248 = vmatpush3.bf16.msra.mxu1 %v5064_v20 }
 0x116   : > { %5249 = vmatprep.subr.bf16.mxu1 %v9371_v41 }
 0x119   : > { %5250 = vmatpush3.bf16.msra.mxu1 %v5065_v34 }
 0x11a   : > { %5251 = vmatprep.subr.bf16.mxu1 %v9371_v41 }
 0x11d   : > { %5252 = vmatpush3.bf16.msra.mxu1 %v5066_v23 }
 0x150   : > { %v5203_v22 = vpop.f32.mrb[0].mxu0 }
 0x151   : > { %v1795_v52 = vadd.f32 %v5203_v22, %v9518_v56  ;;  %v1644_v39 = vpop.f32.mrb[1].mxu0 }
 0x152   : > { %v1793_v11 = vadd.f32 %v9518_v56, %v1644_v39  ;;  %v5204_v46 = vpop.f32.mrb[2].mxu0 }
 0x153   : > { %v1647_v14 = vpop.f32.mrb[3].mxu0  ;;  %v1831_v61 = vmax.f32 %v1795_v52, 0.0  ;;  %v1796_v21 = vadd.f32 %v5204_v46, %v9518_v56 }
 0x154   : > { %v1829_v60 = vmax.f32 %v1793_v11, 0.0  ;;  %v1794_v43 = vadd.f32 %v9518_v56, %v1647_v14 }
 0x155   : > { %v2073_v32 = vsel %vm1965_vm10, %v1831_v61, 0.0  ;;  %v1832_v35 = vmax.f32 %v1796_v21, 0.0  ;;  %vm1888_vm10 = vcmp.ge.s32.totalorder %v6814_v38, 0 }
 0x156   : > { %v2071_v0 = vsel %vm1924_vm13, %v1829_v60, 0.0  ;;  %v2147_v13 = vmul.f32 %v6786_v40, %v2073_v32  ;;  %v2322_v19 = vmul.f32 %v6790_v25, %v2073_v32  ;;  %v1830_v36 = vmax.f32 %v1794_v43, 0.0  ;;  %vm6970_vm13 = vmand %vm1888_vm10, %vm1900_vm11 }
 0x157   : > { %v2145_v1 = vmul.f32 %v6786_v40, %v2071_v0  ;;  %v2320_v30 = vmul.f32 %v6790_v25, %v2071_v0  ;;  %v2074_v42 = vsel %vm1927_vm5, %v1832_v35, 0.0  ;;  %v2113_v9 = vmul.f32 %v6795_v59, %v2073_v32  ;;  %vm1974_vm2 = vmand %vm6970_vm13, %vm1962_vm8 }
 0x158   : > { %v2072_v2 = vsel %vm6767_vm7, %v1830_v36, 0.0  ;;  %v2209_v4 = vrot.slane %v2147_v13, 1  ;;  %v2384_v5 = vrot.slane %v2322_v19, 2  ;;  %v2111_v10 = vmul.f32 %v6795_v59, %v2071_v0  ;;  %vm1930_vm7 = vmand %vm6868_vm6, %vm1921_vm9 }
 0x159   : > { %v2146_v54 = vmul.f32 %v6786_v40, %v2072_v2  ;;  %v2321_v45 = vmul.f32 %v6790_v25, %v2072_v2  ;;  %v2206_v20 = vrot.slane %v2145_v1, 1  ;;  %v2381_v7 = vrot.slane %v2320_v30, 2  ;;  %vm1933_vm10 = vmand %vm6970_vm13, %vm1921_vm9 }
 0x15a   : > { %v2148_v23 = vmul.f32 %v6786_v40, %v2074_v42  ;;  %v2112_v22 = vmul.f32 %v6795_v59, %v2072_v2  ;;  %v2288_v46 = vadd.f32 %v2209_v4, %v2113_v9  ;;  %v2323_v14 = vmul.f32 %v6790_v25, %v2074_v42 }
 0x15b   : > { %v2207_v8 = vrot.slane %v2146_v54, 1  ;;  %v2382_v34 = vrot.slane %v2321_v45, 2  ;;  %v2559_v53 = vmul.f32 %v6807_v37, %v2074_v42  ;;  %v2733_v43 = vmul.f32 %v6811_v31, %v2074_v42 }
 0x15c   : > { %v6877_v0 = vadd.s32 10, %v6755_v55  ;;  %v2495_v57 = vmul.f32 %v6803_v17, %v2074_v42  ;;  %v2114_v1 = vmul.f32 %v6795_v59, %v2074_v42  ;;  %v2211_v30 = vrot.slane %v2148_v23, 1 }
 0x15d   : > { %v2208_v52 = vsel %vm2205_vm15, %v2206_v20, %v2207_v8  ;;  %v2210_v39 = vsel %vm2205_vm15, %v2207_v8, %v2209_v4  ;;  %v2383_v27 = vsel %vm2380_vm0, %v2381_v7, %v2382_v34  ;;  %v2385_v18 = vsel %vm2380_vm0, %v2382_v34, %v2384_v5 }
 0x15e   : > { %v2286_v61 = vadd.f32 %v2208_v52, %v2111_v10  ;;  %v2287_v60 = vadd.f32 %v2210_v39, %v2112_v22  ;;  %9531 = vst [vmem:[#allocation20_spill] sm:$0xff] %v6877_v0  ;;  %v2463_v45 = vadd.f32 %v2384_v5, %v2288_v46  ;;  %v2386_v4 = vrot.slane %v2323_v14, 2 }
 0x15f   : > { %v2619_v8 = vrot.slane %v2559_v53, 1  ;;  %v2793_v34 = vrot.slane %v2733_v43, 2  ;;  %vm1901_vm5 = vcmp.lt.s32.totalorder %v6823_v63, 16 }
 0x160   : > { %v2461_v35 = vadd.f32 %v2383_v27, %v2286_v61  ;;  %v2462_v13 = vadd.f32 %v2385_v18, %v2287_v60  ;;  %vm7100_vm11 = vmand %vm1889_vm3, %vm1901_vm5  ;;  %vm1891_vm3 = vcmp.ge.s32.totalorder %v6837_v44, 0  ;;  %vm1903_vm5 = vcmp.lt.s32.totalorder %v6837_v44, 16 }
 0x162   : > { %v2525_v20 = vadd.f32 %v2495_v57, %v2461_v35 }
 0x163   : > { %v5207_v21 = vpop.f32.mrb[4].mxu0 }
 0x164   : > { %v1799_v32 = vadd.f32 %v5207_v21, %v9518_v56  ;;  %v1660_v33 = vpop.f32.mrb[5].mxu0 }
 0x165   : > { %v1797_v19 = vadd.f32 %v9518_v56, %v1660_v33  ;;  %v5208_v36 = vpop.f32.mrb[6].mxu0 }
 0x166   : > { %v1835_v29 = vmax.f32 %v1799_v32, 0.0  ;;  %v1800_v2 = vadd.f32 %v5208_v36, %v9518_v56  ;;  %v1663_v54 = vpop.f32.mrb[7].mxu0 }
 0x167   : > { %v1833_v7 = vmax.f32 %v1797_v19, 0.0  ;;  %v1798_v5 = vadd.f32 %v9518_v56, %v1663_v54 }
 0x168   : > { %v6887_v9 = vsel %vm1930_vm7, %v1835_v29, 0.0  ;;  %v1836_v10 = vmax.f32 %v1800_v2, 0.0  ;;  %vm1902_vm7 = vcmp.lt.s32.totalorder %v6828_v24, 16 }
 0x169   : > { %v6891_v22 = vmul.f32 %v6786_v40, %v6887_v9  ;;  %v6895_v42 = vmul.f32 %v6790_v25, %v6887_v9  ;;  %v2075_v23 = vsel %vm6797_vm14, %v1833_v7, 0.0  ;;  %v6902_v52 = vmul.f32 %v6807_v37, %v6887_v9  ;;  %vm6980_vm14 = vmand %vm6868_vm6, %vm1962_vm8 }
 0x16a   : > { %v2149_v39 = vmul.f32 %v6786_v40, %v2075_v23  ;;  %v2324_v27 = vmul.f32 %v6790_v25, %v2075_v23  ;;  %v2496_v18 = vmul.f32 %v6803_v17, %v2075_v23  ;;  %v2115_v46 = vmul.f32 %v6795_v59, %v2075_v23 }
 0x16b   : > { %v2560_v14 = vmul.f32 %v6807_v37, %v2075_v23  ;;  %v6912_v61 = vmul.f32 %v6811_v31, %v2075_v23  ;;  %v6916_v60 = vsel %vm6868_vm6, %v1836_v10, 0.0  ;;  %v1834_v2 = vmax.f32 %v1798_v5, 0.0 }
 0x16c   : > { %v2212_v21 = vrot.slane %v2149_v39, 1  ;;  %v2387_v53 = vrot.slane %v2324_v27, 2  ;;  %v2526_v43 = vadd.f32 %v2496_v18, %v2462_v13  ;;  %v6920_v32 = vmul.f32 %v6786_v40, %v6916_v60 }
 0x16d   : > { %v2620_v57 = vrot.slane %v2560_v14, 1  ;;  %v2794_v35 = vrot.slane %v6912_v61, 2  ;;  %v6926_v19 = vmul.f32 %v6790_v25, %v6916_v60  ;;  %v6936_v29 = vmul.f32 %v6807_v37, %v6916_v60 }
 0x16e   : > { %v2213_v13 = vsel %vm2205_vm15, %v2211_v30, %v2212_v21  ;;  %v2388_v36 = vsel %vm2380_vm0, %v2386_v4, %v2387_v53  ;;  %v2076_v39 = vsel %vm1968_vm12, %v1834_v2, 0.0  ;;  %v2907_v47 = vmul.f32 %v6832_v28, %v6887_v9 }
 0x16f   : > { %v2289_v54 = vadd.f32 %v2213_v13, %v2114_v1  ;;  %v2621_v10 = vsel %vm2205_vm15, %v2619_v8, %v2620_v57  ;;  %v2795_v23 = vsel %vm2380_vm0, %v2793_v34, %v2794_v35  ;;  %v6945_v30 = vmul.f32 %v6832_v28, %v6916_v60 }
 0x170   : > { %v2699_v27 = vadd.f32 %v2621_v10, %v2525_v20  ;;  %v2150_v5 = vmul.f32 %v6786_v40, %v2076_v39  ;;  %v2325_v1 = vmul.f32 %v6790_v25, %v2076_v39  ;;  %v6953_v8 = vmul.f32 %v6841_v51, %v6887_v9 }
 0x171   : > { %v6947_v4 = vadd.f32 %v2388_v36, %v2289_v54  ;;  %v2497_v34 = vmul.f32 %v6803_v17, %v2076_v39  ;;  %v2561_v20 = vmul.f32 %v6807_v37, %v2076_v39  ;;  %v2735_v18 = vmul.f32 %v6811_v31, %v2076_v39 }
 0x172   : > { %v2873_v14 = vadd.f32 %v2795_v23, %v2699_v27  ;;  %v2116_v61 = vmul.f32 %v6795_v59, %v2076_v39  ;;  %v2214_v13 = vrot.slane %v2150_v5, 1  ;;  %v2389_v36 = vrot.slane %v2325_v1, 2 }
 0x173   : > { %v6961_v2 = vmul.f32 %v6841_v51, %v6916_v60  ;;  %v2527_v54 = vadd.f32 %v2497_v34, %v2463_v45  ;;  %v2622_v10 = vrot.slane %v2561_v20, 1  ;;  %v2796_v33 = vrot.slane %v2735_v18, 2 }
 0x174   : > { %v5211_v7 = vpop.f32.mrb[8].mxu0  ;;  %v2937_v41 = vadd.f32 %v2907_v47, %v2873_v14  ;;  %v2215_v49 = vsel %vm2205_vm15, %v2212_v21, %v2214_v13  ;;  %v2291_v16 = vadd.f32 %v2214_v13, %v2116_v61  ;;  %v2390_v62 = vsel %vm2380_vm0, %v2387_v53, %v2389_v36 }
 0x175   : > { %v1803_v23 = vadd.f32 %v5211_v7, %v9518_v56  ;;  %v1676_v45 = vpop.f32.mrb[9].mxu0  ;;  %v2290_v27 = vadd.f32 %v2215_v49, %v2115_v46  ;;  %v2701_v5 = vadd.f32 %v2622_v10, %v2527_v54  ;;  %v2623_v21 = vsel %vm2205_vm15, %v2620_v57, %v2622_v10 }
 0x176   : > { %v1801_v47 = vadd.f32 %v9518_v56, %v1676_v45  ;;  %v5212_v1 = vpop.f32.mrb[10].mxu0  ;;  %v2700_v20 = vadd.f32 %v2623_v21, %v2526_v43  ;;  %v3031_v49 = vrot.slane %v6953_v8, 1  ;;  %v6988_v18 = vadd.f32 %v2389_v36, %v2291_v16 }
 0x177   : > { %v1839_v34 = vmax.f32 %v1803_v23, 0.0  ;;  %v1804_v38 = vadd.f32 %v5212_v1, %v9518_v56  ;;  %v1679_v7 = vpop.f32.mrb[11].mxu0  ;;  %v6986_v46 = vadd.f32 %v2390_v62, %v2290_v27  ;;  %v6990_v57 = vadd.f32 %v2796_v33, %v2701_v5 }
 0x178   : > { %v1837_v14 = vmax.f32 %v1801_v47, 0.0  ;;  %v1802_v43 = vadd.f32 %v9518_v56, %v1679_v7  ;;  %v2797_v62 = vsel %vm2380_vm0, %v2794_v35, %v2796_v33  ;;  %v3032_v36 = vrot.slane %v6961_v2, 1 }
 0x179   : > { %v6998_v11 = vsel %vm6970_vm13, %v1839_v34, 0.0  ;;  %v1840_v61 = vmax.f32 %v1804_v38, 0.0  ;;  %vm1890_vm6 = vcmp.ge.s32.totalorder %v6828_v24, 0  ;;  %v2874_v21 = vadd.f32 %v2797_v62, %v2700_v20  ;;  %vm7135_vm13 = vmand %vm7100_vm11, %vm1962_vm8 }
 0x17a   : > { %v7006_v16 = vmul.f32 %v6786_v40, %v6998_v11  ;;  %v7010_v8 = vmul.f32 %v6790_v25, %v6998_v11  ;;  %v7014_v13 = vsel %vm6980_vm14, %v1837_v14, 0.0  ;;  %v7019_v54 = vmul.f32 %v6795_v59, %v6998_v11  ;;  %vm7124_vm12 = vmand %vm1890_vm6, %vm1902_vm7 }
 0x17b   : > { %v7023_v33 = vmul.f32 %v6795_v59, %v7014_v13  ;;  %v7027_v35 = vmul.f32 %v6786_v40, %v7014_v13  ;;  %v7029_v10 = vsel %vm1974_vm2, %v1840_v61, 0.0  ;;  %v7037_v45 = vmul.f32 %v6790_v25, %v7014_v13  ;;  %vm7146_vm14 = vmand %vm7100_vm11, %vm1921_vm9 }
 0x17c   : > { %9536 = vst [vmem:[#allocation23_spill] sm:$0xff] %v7010_v8  ;;  %9537 = vst [vmem:[#allocation22_spill] sm:$0xff] %v7019_v54  ;;  %v7041_v27 = vmul.f32 %v6786_v40, %v7029_v10  ;;  %v7050_v47 = vmul.f32 %v6795_v59, %v7029_v10  ;;  %v1838_v1 = vmax.f32 %v1802_v43, 0.0  ;;  %v7054_v34 = vmul.f32 %v6790_v25, %v7029_v10 }
 0x17d   : > { %9538 = vst [vmem:[#allocation25_spill] sm:$0xff] %v7023_v33  ;;  %v7058_v53 = vmul.f32 %v6841_v51, %v7014_v13  ;;  %v3033_v38 = vsel %vm2205_vm15, %v3031_v49, %v3032_v36  ;;  %v3145_v39 = vmul.f32 %v6845_v48, %v6887_v9  ;;  %v2938_v14 = vadd.f32 %v6945_v30, %v2874_v21  ;;  %vm7159_vm2 = vmand %vm7124_vm12, %vm1921_vm9 }
 0x17e   : > { %9539 = vst [vmem:[#allocation24_spill] sm:$0xff] %v7041_v27  ;;  %9540 = vst [vmem:[#allocation42_spill] sm:$0xff] %v7050_v47  ;;  %v7063_v7 = vsel %vm1933_vm10, %v1838_v1, 0.0  ;;  %v3111_v61 = vadd.f32 %v3033_v38, %v2937_v41  ;;  %v3146_v20 = vmul.f32 %v6845_v48, %v6916_v60  ;;  %v7080_v1 = vmul.f32 %v6845_v48, %v7014_v13 }
 0x17f   : > { %9541 = vst [vmem:[#allocation13_spill] sm:$0xff] %v7054_v34  ;;  %v7071_v62 = vmul.f32 %v6786_v40, %v7063_v7  ;;  %v7075_v49 = vmul.f32 %v6790_v25, %v7063_v7  ;;  %v9379_v23 = vrot.slane %v7058_v53, 1  ;;  %v3205_v41 = vrot.slane %v3145_v39, 2  ;;  %vm7274_vm7 = vmand %vm1891_vm3, %vm1903_vm5 }
 0x180   : > { %v3206_v30 = vrot.slane %v3146_v20, 2  ;;  %v2498_v21 = vmul.f32 %v6803_v17, %v6887_v9  ;;  %v7086_v38 = vmul.f32 %v6795_v59, %v7063_v7  ;;  %v2624_v5 = vrot.slane %v6902_v52, 1  ;;  %vm7463_vm3 = vmand %vm7274_vm7, %vm1962_vm8 }
 0x181   : > { %9542 = vst [vmem:[#allocation14_spill] sm:$0xff] %v7075_v49  ;;  %v3035_v2 = vsel %vm2205_vm15, %v3032_v36, %v9379_v23  ;;  %v9380_v39 = vrot.slane %v7080_v1, 2  ;;  %v9381_v36 = vrot.slane %v6936_v29, 1  ;;  %v2736_v52 = vmul.f32 %v6811_v31, %v6887_v9 }
 0x182   : > { %9543 = vst [vmem:[#allocation15_spill] sm:$0xff] %v7086_v38  ;;  %v3112_v26 = vadd.f32 %v3035_v2, %v2938_v14  ;;  %v3207_v12 = vsel %vm2380_vm0, %v3205_v41, %v3206_v30  ;;  %v2528_v20 = vadd.f32 %v2498_v21, %v6947_v4  ;;  %v7109_v2 = vmul.f32 %v6811_v31, %v6916_v60 }
 0x183   : > { %v3285_v43 = vadd.f32 %v3207_v12, %v3111_v61  ;;  %v3209_v63 = vsel %vm2380_vm0, %v3206_v30, %v9380_v39  ;;  %v2909_v41 = vmul.f32 %v6832_v28, %v7014_v13  ;;  %v2974_v12 = vmul.f32 %v6841_v51, %v7063_v7 }
 0x184   : > { %v3286_v23 = vadd.f32 %v3209_v63, %v3112_v26  ;;  %v2626_v30 = vsel %vm2205_vm15, %v2624_v5, %v9381_v36  ;;  %v2798_v39 = vrot.slane %v2736_v52, 2  ;;  %v9384_v47 = vrot.slane %v7109_v2, 2 }
 0x185   : > { %v2702_v54 = vadd.f32 %v2626_v30, %v2528_v20  ;;  %v2939_v26 = vadd.f32 %v2909_v41, %v6990_v57  ;;  %v7153_v20 = vmul.f32 %v6841_v51, %v6998_v11  ;;  %vm3315_vm6 = vcmask 1041408  }
 0x186   : > { %v5215_v14 = vpop.f32.mrb[12].mxu0  ;;  %v3326_v27 = vpack.c.bf16 %v3286_v23, %v3285_v43  ;;  %v2910_v23 = vmul.f32 %v6832_v28, %v7063_v7  ;;  %vm7284_vm10 = vmpackc.low %vm5519_vm1, %vm3315_vm6  ;;  %v2117_v44 = vmul.f32 %v6795_v59, %v6887_v9  ;;  %v9398_v4 = vrot.slane %v7037_v45, 2 }
 0x187   : > { %v1807_v61 = vadd.f32 %v5215_v14, %v9518_v56  ;;  %v1692_v21 = vpop.f32.mrb[13].mxu0 }
 0x188   : > { %v1805_v24 = vadd.f32 %v9518_v56, %v1692_v21  ;;  %v5216_v34 = vpop.f32.mrb[14].mxu0  ;;  %5254 = vmatmul.mubr.bf16.vlgmr.msra.gmra.mrb[0].mxu1 %v3326_v27 }
 0x189   : > { %v1843_v63 = vmax.f32 %v1807_v61, 0.0  ;;  %v1808_v52 = vadd.f32 %v5216_v34, %v9518_v56  ;;  %v1695_v36 = vpop.f32.mrb[15].mxu0  ;;  %v2800_v34 = vsel %vm2380_vm0, %v2798_v39, %v9384_v47 }
 0x18a   : > { %v1841_v21 = vmax.f32 %v1805_v24, 0.0  ;;  %v1806_v41 = vadd.f32 %v9518_v56, %v1695_v36  ;;  %v2876_v30 = vadd.f32 %v2800_v34, %v2702_v54  ;;  %v3036_v24 = vrot.slane %v2974_v12, 1 }
 0x18b   : > { %v7171_v43 = vsel %vm7135_vm13, %v1843_v63, 0.0  ;;  %v1844_v61 = vmax.f32 %v1808_v52, 0.0  ;;  %v9556_v63 = vmov 0.0   ;;  %v3037_v52 = vrot.slane %v7153_v20, 1  ;;  %vm1980_vm13 = vmand %vm7124_vm12, %vm1962_vm8 }
 0x18c   : > { %v7177_v36 = vmul.f32 %v6795_v59, %v7171_v43  ;;  %v7181_v39 = vmul.f32 %v6786_v40, %v7171_v43  ;;  %v7185_v14 = vsel %vm7146_vm14, %v1841_v21, 0.0  ;;  %5257 = vmatprep.mubr.msk.bf16.mxu1 %vm5521_vm4, %v9556_v63  ;;  %v7192_v54 = vmul.f32 %v6790_v25, %v7171_v43 }
 0x18d   : > { %v7196_v27 = vmul.f32 %v6786_v40, %v7185_v14  ;;  %v7200_v12 = vmul.f32 %v6790_v25, %v7185_v14  ;;  %v7204_v5 = vsel %vm7159_vm2, %v1844_v61, 0.0  ;;  %v7209_v20 = vmul.f32 %v6807_v37, %v7185_v14 }
 0x18e   : > { %9554 = vst [vmem:[#allocation49_spill] sm:$0xff] %v7177_v36  ;;  %9555 = vst [vmem:[#allocation50_spill] sm:$0xff] %v7181_v39  ;;  %v7213_v34 = vmul.f32 %v6786_v40, %v7204_v5  ;;  %v7217_v47 = vmul.f32 %v6790_v25, %v7204_v5  ;;  %v7221_v36 = vmul.f32 %v6795_v59, %v7204_v5  ;;  %v1842_v57 = vmax.f32 %v1806_v41, 0.0 }
 0x18f   : > { %9557 = vst [vmem:[#allocation51_spill] sm:$0xff] %v7192_v54  ;;  %9558 = vst [vmem:[#allocation52_spill] sm:$0xff] %v7196_v27  ;;  %v2940_v61 = vadd.f32 %v2910_v23, %v2876_v30  ;;  %v3038_v21 = vsel %vm2205_vm15, %v3036_v24, %v3037_v52  ;;  %v9565_v39 = vrot.slane %v7058_v53, 1  ;;  %v3149_v41 = vmul.f32 %v6845_v48, %v6998_v11 }
 0x190   : > { %9559 = vst [vmem:[#allocation53_spill] sm:$0xff] %v7200_v12  ;;  %9560 = vst [vmem:[#allocation54_spill] sm:$0xff] %v7204_v5  ;;  %v7232_v49 = vsel %vm7100_vm11, %v1842_v57, 0.0  ;;  %v2499_v23 = vmul.f32 %v6803_v17, %v6916_v60  ;;  %v2500_v57 = vmul.f32 %v6803_v17, %v7014_v13  ;;  %v2564_v12 = vmul.f32 %v6807_v37, %v7014_v13 }
 0x191   : > { %9561 = vst [vmem:[#allocation55_spill] sm:$0xff] %v7209_v20  ;;  %9562 = vst [vmem:[#allocation56_spill] sm:$0xff] %v7213_v34  ;;  %v3113_v0 = vadd.f32 %v9565_v39, %v2939_v26  ;;  %v3148_v20 = vmul.f32 %v6845_v48, %v7063_v7  ;;  %v3114_v5 = vadd.f32 %v3038_v21, %v2940_v61  ;;  %v3211_v24 = vrot.slane %v3149_v41, 2 }
 0x192   : > { %9563 = vst [vmem:[#allocation57_spill] sm:$0xff] %v7217_v47  ;;  %9564 = vst [vmem:[#allocation58_spill] sm:$0xff] %v7221_v36  ;;  %v7241_v53 = vmul.f32 %v6786_v40, %v7232_v49  ;;  %v7245_v26 = vmul.f32 %v6790_v25, %v7232_v49  ;;  %v9567_v39 = vrot.slane %v7080_v1, 2  ;;  %v2529_v61 = vadd.f32 %v2499_v23, %v6986_v46 }
 0x193   : > { %v3210_v55 = vrot.slane %v3148_v20, 2  ;;  %v7254_v30 = vmul.f32 %v6807_v37, %v7232_v49  ;;  %v2738_v54 = vmul.f32 %v6811_v31, %v7014_v13  ;;  %v2911_v20 = vmul.f32 %v6832_v28, %v6998_v11  ;;  %vm7311_vm11 = vmand %vm7274_vm7, %vm1921_vm9 }
 0x194   : > { %9566 = vst [vmem:[#allocation59_spill] sm:$0xff] %v7245_v26  ;;  %v3287_v21 = vadd.f32 %v9567_v39, %v3113_v0  ;;  %v2530_v1 = vadd.f32 %v2500_v57, %v6988_v18  ;;  %v2912_v46 = vmul.f32 %v6832_v28, %v7029_v10  ;;  %v7268_v41 = vmul.f32 %v6841_v51, %v7029_v10 }
 0x195   : > { %9568 = vst [vmem:[#allocation60_spill] sm:$0xff] %v7254_v30  ;;  %v3212_v0 = vsel %vm2380_vm0, %v3210_v55, %v3211_v24  ;;  %v2627_v39 = vrot.slane %v2564_v12, 1  ;;  %v2801_v55 = vrot.slane %v2738_v54, 2  ;;  %v7280_v18 = vmul.f32 %v6845_v48, %v7029_v10 }
 0x196   : > { %v3288_v23 = vadd.f32 %v3212_v0, %v3114_v5  ;;  %v9571_v57 = vmov 0  ;;  %v3039_v36 = vrot.slane %v7268_v41, 1  ;;  %v2118_v5 = vmul.f32 %v6795_v59, %v6916_v60 }
 0x197   : > { %v9572_v57 = vsel %vm7284_vm10, 4294967295, %v9571_v57  ;;  %v9574_v54 = vrot.slane %v6920_v32, 1  ;;  %v9575_v12 = vrot.slane %v6891_v22, 1  ;;  %v5219_v47 = vpop.f32.mrb[16].mxu0  ;;  %v9576_v26 = vrot.slane %v6936_v29, 1 }
 0x198   : > { %9573 = vst [vmem:[#allocation61_spill] sm:$0xff] %v9572_v57  ;;  %v5068_v34 = vpack.c.bf16 %v3288_v23, %v3287_v21  ;;  %v2704_v30 = vadd.f32 %v2627_v39, %v2530_v1  ;;  %v9577_v41 = vrot.slane %v7109_v2, 2  ;;  %v1811_v8 = vadd.f32 %v5219_v47, %v9518_v56  ;;  %v1708_v60 = vpop.f32.mrb[17].mxu0 }
 0x199   : > { %v2218_v0 = vsel %vm2205_vm15, %v9575_v12, %v9574_v54  ;;  %v2628_v27 = vsel %vm2205_vm15, %v9576_v26, %v2627_v39  ;;  %v3040_v33 = vsel %vm2205_vm15, %v3037_v52, %v3039_v36  ;;  %v3213_v22 = vrot.slane %v7280_v18, 2  ;;  %v5220_v26 = vpop.f32.mrb[18].mxu0 }
 0x19a   : > { %v2802_v9 = vsel %vm2380_vm0, %v9577_v41, %v2801_v55  ;;  %v2703_v38 = vadd.f32 %v2628_v27, %v2529_v61  ;;  %v1809_v2 = vadd.f32 %v9518_v56, %v1708_v60  ;;  %5258 = vmatmul.mubr.msk.bf16.gmra.mrb[4].mxu1 %vm7284_vm10, %v5068_v34  ;;  %v2878_v47 = vadd.f32 %v2801_v55, %v2704_v30  ;;  %v1711_v39 = vpop.f32.mrb[19].mxu0 }
 0x19b   : > { %v9580_v27 = vrot.slane %v7027_v35, 1  ;;  %v9581_v52 = vmov %v9574_v54  ;;  %v2292_v61 = vadd.f32 %v2218_v0, %v2117_v44  ;;  %v1847_v1 = vmax.f32 %v1811_v8, 0.0  ;;  %5261 = vmatprep.mubr.msk.bf16.mxu1 %vm5521_vm4, %v9556_v63 }
 0x19c   : > { %v1812_v23 = vadd.f32 %v5220_v26, %v9518_v56  ;;  %v2877_v18 = vadd.f32 %v2802_v9, %v2703_v38  ;;  %v3214_v54 = vsel %vm2380_vm0, %v3211_v24, %v3213_v22  ;;  %v1845_v30 = vmax.f32 %v1809_v2, 0.0 }
 0x19d   : > { %v2220_v21 = vsel %vm2205_vm15, %v9581_v52, %v9580_v27  ;;  %v2942_v55 = vadd.f32 %v2912_v46, %v2878_v47  ;;  %v7330_v32 = vsel %vm7311_vm11, %v1847_v1, 0.0  ;;  %v1810_v8 = vadd.f32 %v9518_v56, %v1711_v39 }
 0x19e   : > { %v2293_v12 = vadd.f32 %v2220_v21, %v2118_v5  ;;  %v1848_v44 = vmax.f32 %v1812_v23, 0.0  ;;  %v2941_v0 = vadd.f32 %v2911_v20, %v2877_v18  ;;  %v7335_v41 = vmul.f32 %v6786_v40, %v7330_v32 }
 0x19f   : > { %v7339_v38 = vmul.f32 %v6790_v25, %v7330_v32  ;;  %v7343_v24 = vsel %vm7124_vm12, %v1845_v30, 0.0  ;;  %v2391_v46 = vrot.slane %v6895_v42, 2  ;;  %v7348_v5 = vmul.f32 %v6807_v37, %v7330_v32  ;;  %vm7406_vm12 = vmpackc.low %vm3315_vm6, %vm5519_vm1 }
 0x1a0   : > { %9582 = vst [vmem:[#allocation62_spill] sm:$0xff] %v7335_v41  ;;  %v7352_v20 = vmul.f32 %v6786_v40, %v7343_v24  ;;  %v7356_v9 = vmul.f32 %v6790_v25, %v7343_v24  ;;  %v7360_v60 = vsel %vm7274_vm7, %v1848_v44, 0.0  ;;  %v7365_v42 = vmul.f32 %v6795_v59, %v7343_v24 }
 0x1a1   : > { %9583 = vst [vmem:[#allocation63_spill] sm:$0xff] %v7339_v38  ;;  %v7369_v2 = vmul.f32 %v6786_v40, %v7360_v60  ;;  %v7373_v26 = vmul.f32 %v6790_v25, %v7360_v60  ;;  %vm1892_vm14 = vcmp.ge.s32.totalorder %v6850_v3, 0  ;;  %vm1904_vm2 = vcmp.lt.s32.totalorder %v6850_v3, 16 }
 0x1a2   : > { %9584 = vst [vmem:[#allocation64_spill] sm:$0xff] %v7365_v42  ;;  %v7384_v27 = vmul.f32 %v6807_v37, %v7360_v60  ;;  %v1846_v52 = vmax.f32 %v1810_v8, 0.0  ;;  %v3115_v21 = vadd.f32 %v3040_v33, %v2941_v0  ;;  %v3116_v23 = vadd.f32 %v3039_v36, %v2942_v55  ;;  %vm7447_vm1 = vmand %vm1892_vm14, %vm1904_vm2 }
 0x1a3   : > { %9585 = vst [vmem:[#allocation65_spill] sm:$0xff] %v7369_v2  ;;  %9586 = vst [vmem:[#allocation66_spill] sm:$0xff] %v7373_v26  ;;  %v2392_v39 = vrot.slane %v6926_v19, 2  ;;  %v2501_v29 = vmul.f32 %v6803_v17, %v7063_v7  ;;  %v2502_v19 = vmul.f32 %v6803_v17, %v6998_v11  ;;  %v9589_v55 = vmov 0 }
 0x1a4   : > { %v7390_v30 = vsel %vm1980_vm13, %v1846_v52, 0.0  ;;  %v3289_v44 = vadd.f32 %v3214_v54, %v3115_v21  ;;  %v3290_v36 = vadd.f32 %v3213_v22, %v3116_v23  ;;  %v9590_v55 = vsel %vm7406_vm12, 4294967295, %v9589_v55  ;;  %vm7473_vm5 = vmand %vm7447_vm1, %vm1962_vm8 }
 0x1a5   : > { %v7396_v47 = vmul.f32 %v6795_v59, %v7390_v30  ;;  %v7400_v33 = vmul.f32 %v6786_v40, %v7390_v30  ;;  %9591 = vst [vmem:[#allocation69_spill] sm:$0xff] %v9590_v55  ;;  %v2393_v54 = vsel %vm2380_vm0, %v2391_v46, %v2392_v39  ;;  %v2395_v8 = vsel %vm2380_vm0, %v2392_v39, %v9398_v4  ;;  %vm1945_vm11 = vmand %vm7447_vm1, %vm1921_vm9 }
 0x1a6   : > { %v2565_v0 = vmul.f32 %v6807_v37, %v7063_v7  ;;  %v2566_v22 = vmul.f32 %v6807_v37, %v6998_v11  ;;  %v7420_v52 = vmul.f32 %v6790_v25, %v7390_v30  ;;  %v5071_v21 = vpack.c.bf16 %v3290_v36, %v3289_v44 }
 0x1a7   : > { %9587 = vst [vmem:[#allocation67_spill] sm:$0xff] %v7396_v47  ;;  %9588 = vst [vmem:[#allocation68_spill] sm:$0xff] %v7400_v33  ;;  %v2467_v23 = vadd.f32 %v2393_v54, %v2292_v61  ;;  %v2468_v18 = vadd.f32 %v2395_v8, %v2293_v12  ;;  %v7424_v46 = vmul.f32 %v6807_v37, %v7029_v10  ;;  %vm1893_vm6 = vcmp.ge.s32.totalorder %v6853_v6, 0 }
 0x1a8   : > { %9592 = vst [vmem:[#allocation70_spill] sm:$0xff] %v7420_v52  ;;  %v2629_v1 = vrot.slane %v2565_v0, 1  ;;  %v2630_v34 = vrot.slane %v2566_v22, 1  ;;  %v2739_v39 = vmul.f32 %v6811_v31, %v7063_v7  ;;  %5262 = vmatmul.mubr.msk.bf16.gmra.mrb[8].mxu1 %vm7406_vm12, %v5071_v21  ;;  %v2740_v38 = vmul.f32 %v6811_v31, %v6998_v11  ;;  %v9626_v52 = vld [vmem:[#allocation60_spill] sm:$0xff] }
 0x1a9   : > { %v2531_v4 = vadd.f32 %v2501_v29, %v2467_v23  ;;  %v2532_v26 = vadd.f32 %v2502_v19, %v2468_v18  ;;  %v7434_v61 = vmul.f32 %v6811_v31, %v7029_v10  ;;  %v5223_v44 = vpop.f32.mrb[20].mxu0  ;;  %5265 = vmatprep.mubr.msk.bf16.mxu1 %vm5521_vm4, %v9556_v63  ;;  %v9399_v36 = vrot.slane %v7424_v46, 1 }
 0x1aa   : > { %v2631_v7 = vsel %vm2205_vm15, %v2629_v1, %v2630_v34  ;;  %v2803_v54 = vrot.slane %v2739_v39, 2  ;;  %v1815_v29 = vadd.f32 %v5223_v44, %v9518_v56  ;;  %v1724_v18 = vpop.f32.mrb[21].mxu0  ;;  %v2804_v11 = vrot.slane %v2740_v38, 2 }
 0x1ab   : > { %v2705_v19 = vadd.f32 %v2631_v7, %v2531_v4  ;;  %v9400_v8 = vrot.slane %v7434_v61, 2  ;;  %v1813_v1 = vadd.f32 %v9518_v56, %v1724_v18  ;;  %v5224_v22 = vpop.f32.mrb[22].mxu0  ;;  %v2633_v21 = vsel %vm2205_vm15, %v2630_v34, %v9399_v36 }
 0x1ac   : > { %v2913_v38 = vmul.f32 %v6832_v28, %v7185_v14  ;;  %v2914_v4 = vmul.f32 %v6832_v28, %v7232_v49  ;;  %v1851_v23 = vmax.f32 %v1815_v29, 0.0  ;;  %v1816_v39 = vadd.f32 %v5224_v22, %v9518_v56  ;;  %v1727_v44 = vpop.f32.mrb[23].mxu0 }
 0x1ad   : > { %v2706_v7 = vadd.f32 %v2633_v21, %v2532_v26  ;;  %v2805_v34 = vsel %vm2380_vm0, %v2803_v54, %v2804_v11  ;;  %v1849_v18 = vmax.f32 %v1813_v1, 0.0  ;;  %v2807_v13 = vsel %vm2380_vm0, %v2804_v11, %v9400_v8 }
 0x1ae   : > { %v2879_v12 = vadd.f32 %v2805_v34, %v2705_v19  ;;  %v2977_v22 = vmul.f32 %v6841_v51, %v7185_v14  ;;  %v7484_v26 = vsel %vm7447_vm1, %v1851_v23, 0.0  ;;  %v1852_v54 = vmax.f32 %v1816_v39, 0.0 }
 0x1af   : > { %v1814_v1 = vadd.f32 %v9518_v56, %v1727_v44  ;;  %vm1905_vm7 = vcmp.lt.s32.totalorder %v6853_v6, 16  ;;  %v2880_v21 = vadd.f32 %v2807_v13, %v2706_v7  ;;  %v7491_v36 = vmul.f32 %v6786_v40, %v7484_v26 }
 0x1b0   : > { %v7495_v19 = vmul.f32 %v6790_v25, %v7484_v26  ;;  %v7499_v11 = vsel %vm7463_vm3, %v1849_v18, 0.0  ;;  %v2978_v23 = vmul.f32 %v6841_v51, %v7232_v49  ;;  %v7505_v39 = vmul.f32 %v6795_v59, %v7484_v26  ;;  %vm7588_vm2 = vmand %vm1893_vm6, %vm1905_vm7 }
 0x1b1   : > { %9599 = vst [vmem:[#allocation71_spill] sm:$0xff] %v7491_v36  ;;  %v7509_v44 = vmul.f32 %v6795_v59, %v7499_v11  ;;  %v7513_v7 = vmul.f32 %v6786_v40, %v7499_v11  ;;  %v7517_v3 = vsel %vm7473_vm5, %v1852_v54, 0.0  ;;  %v7523_v13 = vmul.f32 %v6790_v25, %v7499_v11  ;;  %vm7618_vm1 = vmand %vm7588_vm2, %vm1962_vm8 }
 0x1b2   : > { %9600 = vst [vmem:[#allocation72_spill] sm:$0xff] %v7495_v19  ;;  %9601 = vst [vmem:[#allocation73_spill] sm:$0xff] %v7505_v39  ;;  %v7527_v8 = vmul.f32 %v6786_v40, %v7517_v3  ;;  %v7536_v54 = vmul.f32 %v6795_v59, %v7517_v3  ;;  %v1850_v18 = vmax.f32 %v1814_v1, 0.0  ;;  %vm1894_vm13 = vcmp.ge.s32.totalorder %v6856_v50, 0 }
 0x1b3   : > { %9602 = vst [vmem:[#allocation74_spill] sm:$0xff] %v7509_v44  ;;  %9603 = vst [vmem:[#allocation75_spill] sm:$0xff] %v7513_v7  ;;  %vm1906_vm14 = vcmp.lt.s32.totalorder %v6856_v50, 16  ;;  %v2943_v34 = vadd.f32 %v2913_v38, %v2879_v12  ;;  %v7542_v39 = vmul.f32 %v6790_v25, %v7517_v3  ;;  %v2944_v19 = vadd.f32 %v2914_v4, %v2880_v21 }
 0x1b4   : > { %9604 = vst [vmem:[#allocation76_spill] sm:$0xff] %v7517_v3  ;;  %9605 = vst [vmem:[#allocation77_spill] sm:$0xff] %v7523_v13  ;;  %v7546_v0 = vmul.f32 %v6841_v51, %v7171_v43  ;;  %v3041_v29 = vrot.slane %v2977_v22, 1  ;;  %v7548_v44 = vsel %vm1945_vm11, %v1850_v18, 0.0  ;;  %v3042_v36 = vrot.slane %v2978_v23, 1 }
 0x1b5   : > { %9606 = vst [vmem:[#allocation78_spill] sm:$0xff] %v7527_v8  ;;  %9607 = vst [vmem:[#allocation79_spill] sm:$0xff] %v7536_v54  ;;  %v3151_v1 = vmul.f32 %v6845_v48, %v7185_v14  ;;  %v3152_v54 = vmul.f32 %v6845_v48, %v7232_v49  ;;  %v7557_v38 = vmul.f32 %v6795_v59, %v7548_v44  ;;  %v9612_v2 = vrot.slane %v7006_v16, 1 }
 0x1b6   : > { %9608 = vst [vmem:[#allocation80_spill] sm:$0xff] %v7542_v39  ;;  %v7561_v4 = vmul.f32 %v6786_v40, %v7548_v44  ;;  %v9413_v22 = vrot.slane %v7546_v0, 1  ;;  %v3043_v21 = vsel %vm2205_vm15, %v3041_v29, %v3042_v36  ;;  %v7567_v23 = vmul.f32 %v6845_v48, %v7171_v43  ;;  %vm7633_vm3 = vmand %vm1894_vm13, %vm1906_vm14 }
 0x1b7   : > { %9609 = vst [vmem:[#allocation81_spill] sm:$0xff] %v7557_v38  ;;  %v3215_v18 = vrot.slane %v3151_v1, 2  ;;  %v3216_v39 = vrot.slane %v3152_v54, 2  ;;  %v7572_v8 = vmul.f32 %v6790_v25, %v7548_v44  ;;  %v3117_v13 = vadd.f32 %v3043_v21, %v2943_v34  ;;  %v9618_v21 = vld [vmem:[#allocation15_spill] sm:$0xff]  ;;  %vm7641_vm5 = vmand %vm7588_vm2, %vm1921_vm9 }
 0x1b8   : > { %9610 = vst [vmem:[#allocation82_spill] sm:$0xff] %v7561_v4  ;;  %v3045_v38 = vsel %vm2205_vm15, %v3042_v36, %v9413_v22  ;;  %v9613_v54 = vrot.slane %v7071_v62, 1  ;;  %v9617_v34 = vrot.slane %v7027_v35, 1  ;;  %v9619_v22 = vld [vmem:[#allocation23_spill] sm:$0xff]  ;;  %v9621_v62 = vld [vmem:[#allocation14_spill] sm:$0xff]  ;;  %v2503_v3 = vmul.f32 %v6803_v17, %v7029_v10  ;;  %vm1951_vm6 = vmand %vm7633_vm3, %vm1921_vm9 }
 0x1b9   : > { %9611 = vst [vmem:[#allocation83_spill] sm:$0xff] %v7572_v8  ;;  %v3118_v7 = vadd.f32 %v3045_v38, %v2944_v19  ;;  %v3217_v29 = vsel %vm2380_vm0, %v3215_v18, %v3216_v39  ;;  %v9616_v19 = vld [vmem:[#allocation25_spill] sm:$0xff]  ;;  %v9620_v41 = vrot.slane %v9619_v22, 2  ;;  %v9622_v4 = vrot.slane %v9621_v62, 2  ;;  %v9624_v35 = vld [vmem:[#allocation55_spill] sm:$0xff] }
 0x1ba   : > { %v2223_v1 = vsel %vm2205_vm15, %v9613_v54, %v9612_v2  ;;  %v3291_v36 = vadd.f32 %v3217_v29, %v3117_v13  ;;  %v2294_v38 = vadd.f32 %v9617_v34, %v9616_v19  ;;  %v9623_v54 = vrot.slane %v7567_v23, 2  ;;  %v5227_v19 = vpop.f32.mrb[24].mxu0 }
 0x1bb   : > { %v2295_v18 = vadd.f32 %v2223_v1, %v9618_v21  ;;  %v2398_v2 = vsel %vm2380_vm0, %v9622_v4, %v9620_v41  ;;  %v2504_v13 = vmul.f32 %v6803_v17, %v7185_v14  ;;  %v2634_v29 = vrot.slane %v9624_v35, 1 }
 0x1bc   : > { %v3219_v6 = vsel %vm2380_vm0, %v3216_v39, %v9623_v54  ;;  %v9625_v34 = vrot.slane %v7037_v45, 2  ;;  %v1819_v39 = vadd.f32 %v5227_v19, %v9518_v56  ;;  %v1740_v54 = vpop.f32.mrb[25].mxu0  ;;  %v2742_v45 = vmul.f32 %v6811_v31, %v7185_v14 }
 0x1bd   : > { %v3292_v1 = vadd.f32 %v3219_v6, %v3118_v7  ;;  %v2470_v62 = vadd.f32 %v2398_v2, %v2295_v18  ;;  %v7626_v7 = vmul.f32 %v6811_v31, %v7232_v49  ;;  %v5228_v18 = vpop.f32.mrb[26].mxu0  ;;  %v9633_v50 = vrot.slane %v9626_v52, 1 }
 0x1be   : > { %v2469_v21 = vadd.f32 %v9625_v34, %v2294_v38  ;;  %v1817_v38 = vadd.f32 %v9518_v56, %v1740_v54  ;;  %v1855_v34 = vmax.f32 %v1819_v39, 0.0  ;;  %v1820_v54 = vadd.f32 %v5228_v18, %v9518_v56  ;;  %v1743_v41 = vpop.f32.mrb[27].mxu0 }
 0x1bf   : > { %v3329_v6 = vpack.c.bf16 %v3292_v1, %v3291_v36  ;;  %v2534_v19 = vadd.f32 %v2504_v13, %v2470_v62  ;;  %v2636_v8 = vsel %vm2205_vm15, %v2634_v29, %v9633_v50  ;;  %v2808_v47 = vrot.slane %v2742_v45, 2  ;;  %v9636_v29 = vld [vmem:[#allocation20_spill] sm:$0xff] }
 0x1c0   : > { %v2533_v35 = vadd.f32 %v2503_v3, %v2469_v21  ;;  %v1853_v36 = vmax.f32 %v1817_v38, 0.0  ;;  %v1818_v3 = vadd.f32 %v9518_v56, %v1743_v41  ;;  %v9634_v13 = vrot.slane %v7424_v46, 1  ;;  %v9640_v38 = vld [vmem:[#allocation54_spill] sm:$0xff] }
 0x1c1   : > { %5266 = vmatmul.mubr.bf16.gmra.mrb[12].mxu1 %v3329_v6  ;;  %v2708_v21 = vadd.f32 %v2636_v8, %v2534_v19  ;;  %v7654_v62 = vsel %vm7618_vm1, %v1855_v34, 0.0  ;;  %v1856_v39 = vmax.f32 %v1820_v54, 0.0  ;;  %vm1895_vm7 = vcmp.ge.s32.totalorder %v9636_v29, 0 }
 0x1c2   : > { %v2707_v1 = vadd.f32 %v9634_v13, %v2533_v35  ;;  %9635 = vst [vmem:[#allocation25_spill] sm:$0xff] %v7654_v62  ;;  %5269 = vmatprep.mubr.msk.bf16.mxu1 %vm5521_vm4, %v9556_v63  ;;  %vm1907_vm11 = vcmp.lt.s32.totalorder %v9636_v29, 16  ;;  %v9420_v46 = vrot.slane %v7626_v7, 2  ;;  %v2915_v8 = vmul.f32 %v6832_v28, %v7171_v43 }
 0x1c3   : > { %v7669_v41 = vmul.f32 %v6795_v59, %v7654_v62  ;;  %v7673_v10 = vmul.f32 %v6786_v40, %v7654_v62  ;;  %v7677_v45 = vsel %vm7641_vm5, %v1853_v36, 0.0  ;;  %v2916_v18 = vmul.f32 %v6832_v28, %v9640_v38  ;;  %vm7764_vm13 = vmand %vm1895_vm7, %vm1907_vm11 }
 0x1c4   : > { %9639 = vst [vmem:[#allocation14_spill] sm:$0xff] %v7677_v45  ;;  %v7683_v6 = vmul.f32 %v6790_v25, %v7654_v62  ;;  %v7687_v35 = vmul.f32 %v6786_v40, %v7677_v45  ;;  %v7691_v19 = vmul.f32 %v6790_v25, %v7677_v45  ;;  %v7695_v4 = vmul.f32 %v6807_v37, %v7677_v45  ;;  %vm7783_vm14 = vmand %vm7764_vm13, %vm1921_vm9 }
 0x1c5   : > { %9637 = vst [vmem:[#allocation15_spill] sm:$0xff] %v7669_v41  ;;  %9638 = vst [vmem:[#allocation23_spill] sm:$0xff] %v7673_v10  ;;  %v7697_v34 = vsel %vm1951_vm6, %v1856_v39, 0.0  ;;  %v1854_v54 = vmax.f32 %v1818_v3, 0.0  ;;  %v2810_v50 = vsel %vm2380_vm0, %v2808_v47, %v9420_v46  ;;  %v9645_v36 = vrot.slane %v7434_v61, 2  ;;  %v9651_v10 = vld [vmem:[#allocation24_spill] sm:$0xff] }
 0x1c6   : > { %9641 = vst [vmem:[#allocation55_spill] sm:$0xff] %v7683_v6  ;;  %9642 = vst [vmem:[#allocation60_spill] sm:$0xff] %v7687_v35  ;;  %v2882_v6 = vadd.f32 %v2810_v50, %v2708_v21  ;;  %v7709_v62 = vmul.f32 %v6841_v51, %v7343_v24  ;;  %v3154_v47 = vmul.f32 %v6845_v48, %v9640_v38  ;;  %v9652_v35 = vrot.slane %v9651_v10, 1 }
 0x1c7   : > { %9643 = vst [vmem:[#allocation20_spill] sm:$0xff] %v7691_v19  ;;  %9644 = vst [vmem:[#allocation54_spill] sm:$0xff] %v7695_v4  ;;  %v2881_v13 = vadd.f32 %v9645_v36, %v2707_v1  ;;  %v2980_v19 = vmul.f32 %v6841_v51, %v9640_v38  ;;  %v7713_v3 = vsel %vm7588_vm2, %v1854_v54, 0.0  ;;  %v7719_v61 = vmul.f32 %v6845_v48, %v7343_v24  ;;  %v9658_v1 = vld [vmem:[#allocation13_spill] sm:$0xff] }
 0x1c8   : > { %9646 = vst [vmem:[#allocation84_spill] sm:$0xff] %v7713_v3  ;;  %v7724_v21 = vmul.f32 %v6786_v40, %v7713_v3  ;;  %v7728_v50 = vmul.f32 %v6790_v25, %v7713_v3  ;;  %v2946_v12 = vadd.f32 %v2916_v18, %v2882_v6  ;;  %v9649_v36 = vrot.slane %v7546_v0, 1  ;;  %v9654_v18 = vld [vmem:[#allocation42_spill] sm:$0xff]  ;;  %vm1992_vm2 = vmand %vm7633_vm3, %vm1962_vm8 }
 0x1c9   : > { %v2945_v39 = vadd.f32 %v2915_v8, %v2881_v13  ;;  %v3046_v54 = vrot.slane %v2980_v19, 1  ;;  %v9428_v8 = vrot.slane %v7709_v62, 1  ;;  %v3220_v41 = vrot.slane %v3154_v47, 2  ;;  %vm1995_vm5 = vmand %vm7764_vm13, %vm1962_vm8 }
 0x1ca   : > { %9647 = vst [vmem:[#allocation85_spill] sm:$0xff] %v7724_v21  ;;  %9648 = vst [vmem:[#allocation86_spill] sm:$0xff] %v7728_v50  ;;  %v7735_v46 = vmul.f32 %v6807_v37, %v7713_v3  ;;  %v9653_v4 = vrot.slane %v7006_v16, 1  ;;  %v9655_v6 = vmov %v9652_v35  ;;  %v2399_v3 = vrot.slane %v9658_v1, 2 }
 0x1cb   : > { %v3119_v13 = vadd.f32 %v9649_v36, %v2945_v39  ;;  %v2297_v19 = vadd.f32 %v9655_v6, %v9654_v18  ;;  %v3048_v0 = vsel %vm2205_vm15, %v3046_v54, %v9428_v8  ;;  %v9656_v39 = vrot.slane %v7567_v23, 2  ;;  %v9657_v36 = vld [vmem:[#allocation22_spill] sm:$0xff] }
 0x1cc   : > { %9650 = vst [vmem:[#allocation87_spill] sm:$0xff] %v7735_v46  ;;  %v2225_v50 = vsel %vm2205_vm15, %v9653_v4, %v9652_v35  ;;  %v3120_v45 = vadd.f32 %v3048_v0, %v2946_v12  ;;  %v9659_v16 = vrot.slane %v7719_v61, 2  ;;  %v2505_v10 = vmul.f32 %v6803_v17, %v7232_v49  ;;  %v5231_v18 = vpop.f32.mrb[28].mxu0 }
 0x1cd   : > { %v3293_v47 = vadd.f32 %v9656_v39, %v3119_v13  ;;  %v2296_v46 = vadd.f32 %v2225_v50, %v9657_v36  ;;  %v2506_v4 = vmul.f32 %v6803_v17, %v7171_v43  ;;  %v9662_v1 = vrot.slane %v9619_v22, 2  ;;  %v1756_v22 = vpop.f32.mrb[29].mxu0 }
 0x1ce   : > { %v3222_v35 = vsel %vm2380_vm0, %v3220_v41, %v9659_v16  ;;  %v2472_v12 = vadd.f32 %v2399_v3, %v2297_v19  ;;  %v2570_v41 = vmul.f32 %v6807_v37, %v7171_v43  ;;  %v2744_v54 = vmul.f32 %v6811_v31, %v7171_v43 }
 0x1cf   : > { %v2400_v50 = vsel %vm2380_vm0, %v9662_v1, %v2399_v3  ;;  %v3294_v6 = vadd.f32 %v3222_v35, %v3120_v45  ;;  %v2917_v0 = vmul.f32 %v6832_v28, %v7343_v24  ;;  %v1823_v39 = vadd.f32 %v5231_v18, %v9518_v56  ;;  %v5232_v45 = vpop.f32.mrb[30].mxu0 }
 0x1d0   : > { %v2471_v29 = vadd.f32 %v2400_v50, %v2296_v46  ;;  %v2536_v36 = vadd.f32 %v2506_v4, %v2472_v12  ;;  %v2637_v16 = vrot.slane %v2570_v41, 1  ;;  %v2811_v3 = vrot.slane %v2744_v54, 2  ;;  %v1759_v12 = vpop.f32.mrb[31].mxu0 }
 0x1d1   : > { %v5074_v19 = vpack.c.bf16 %v3294_v6, %v3293_v47  ;;  %v1821_v46 = vadd.f32 %v9518_v56, %v1756_v22  ;;  %v2982_v1 = vmul.f32 %v6841_v51, %v7390_v30  ;;  %v1859_v50 = vmax.f32 %v1823_v39, 0.0 }
 0x1d2   : > { %v2535_v35 = vadd.f32 %v2505_v10, %v2471_v29  ;;  %v1824_v4 = vadd.f32 %v5232_v45, %v9518_v56  ;;  %v9665_v41 = vrot.slane %v9626_v52, 1  ;;  %v2710_v18 = vadd.f32 %v2637_v16, %v2536_v36 }
 0x1d3   : > { %5270 = vmatmul.mubr.msk.bf16.gmra.mrb[16].mxu1 %vm7284_vm10, %v5074_v19  ;;  %v1857_v47 = vmax.f32 %v1821_v46, 0.0  ;;  %v1822_v6 = vadd.f32 %v9518_v56, %v1759_v12  ;;  %v9666_v10 = vrot.slane %v7626_v7, 2  ;;  %v7802_v39 = vsel %vm7783_vm14, %v1859_v50, 0.0 }
 0x1d4   : > { %v2638_v54 = vsel %vm2205_vm15, %v9665_v41, %v2637_v16  ;;  %9667 = vst [vmem:[#allocation24_spill] sm:$0xff] %v7802_v39  ;;  %v1860_v45 = vmax.f32 %v1824_v4, 0.0  ;;  %5273 = vmatprep.mubr.msk.bf16.mxu1 %vm5521_vm4, %v9556_v63  ;;  %v2884_v52 = vadd.f32 %v2811_v3, %v2710_v18  ;;  %v2918_v36 = vmul.f32 %v6832_v28, %v7390_v30  ;;  %v9677_v41 = vld [vmem:[#allocation52_spill] sm:$0xff] }
 0x1d5   : > { %v2709_v22 = vadd.f32 %v2638_v54, %v2535_v35  ;;  %v2812_v29 = vsel %vm2380_vm0, %v9666_v10, %v2811_v3  ;;  %v7810_v16 = vmul.f32 %v6807_v37, %v7802_v39  ;;  %v7814_v7 = vmul.f32 %v6811_v31, %v7802_v39 }
 0x1d6   : > { %v7818_v43 = vmul.f32 %v6841_v51, %v7802_v39  ;;  %v3049_v19 = vrot.slane %v2982_v1, 1  ;;  %v7822_v46 = vmul.f32 %v6803_v17, %v7802_v39  ;;  %v7826_v3 = vsel %vm7764_vm13, %v1860_v45, 0.0  ;;  %v9679_v45 = vld [vmem:[#allocation50_spill] sm:$0xff] }
 0x1d7   : > { %9668 = vst [vmem:[#allocation42_spill] sm:$0xff] %v7810_v16  ;;  %9669 = vst [vmem:[#allocation22_spill] sm:$0xff] %v7814_v7  ;;  %v1858_v35 = vmax.f32 %v1822_v6, 0.0  ;;  %v2883_v50 = vadd.f32 %v2812_v29, %v2709_v22  ;;  %v7833_v54 = vsel %vm7633_vm3, %v1857_v47, 0.0  ;;  %v7853_v47 = vmul.f32 %v6807_v37, %v7826_v3 }
 0x1d8   : > { %9670 = vst [vmem:[#allocation13_spill] sm:$0xff] %v7818_v43  ;;  %9671 = vst [vmem:[#allocation88_spill] sm:$0xff] %v7822_v46  ;;  %v7841_v1 = vmul.f32 %v6795_v59, %v7833_v54  ;;  %v7845_v18 = vmul.f32 %v6786_v40, %v7833_v54  ;;  %v7849_v6 = vmul.f32 %v6790_v25, %v7833_v54  ;;  %v9675_v43 = vrot.slane %v7709_v62, 1 }
 0x1d9   : > { %9672 = vst [vmem:[#allocation89_spill] sm:$0xff] %v7826_v3  ;;  %9673 = vst [vmem:[#allocation90_spill] sm:$0xff] %v7833_v54  ;;  %v7857_v2 = vmul.f32 %v6803_v17, %v7826_v3  ;;  %v7861_v22 = vmul.f32 %v6811_v31, %v7826_v3  ;;  %v7865_v10 = vmul.f32 %v6841_v51, %v7826_v3  ;;  %v7869_v13 = vsel %vm1992_vm2, %v1858_v35, 0.0  ;;  %v9683_v54 = vld [vmem:[#allocation59_spill] sm:$0xff] }
 0x1da   : > { %v2947_v29 = vadd.f32 %v2917_v0, %v2883_v50  ;;  %v2948_v12 = vadd.f32 %v2918_v36, %v2884_v52  ;;  %v3050_v39 = vsel %vm2205_vm15, %v9675_v43, %v3049_v19  ;;  %v3156_v3 = vmul.f32 %v6845_v48, %v7390_v30 }
 0x1db   : > { %9674 = vst [vmem:[#allocation91_spill] sm:$0xff] %v7857_v2  ;;  %v2123_v50 = vmul.f32 %v6795_v59, %v7185_v14  ;;  %v2124_v35 = vmul.f32 %v6795_v59, %v7232_v49  ;;  %v9676_v36 = vrot.slane %v7241_v53, 1  ;;  %v9678_v8 = vrot.slane %v9677_v41, 1  ;;  %v9684_v49 = vld [vmem:[#allocation51_spill] sm:$0xff] }
 0x1dc   : > { %v3121_v21 = vadd.f32 %v3050_v39, %v2947_v29  ;;  %v3122_v0 = vadd.f32 %v3049_v19, %v2948_v12  ;;  %v3223_v52 = vrot.slane %v3156_v3, 2  ;;  %v9680_v43 = vrot.slane %v9679_v45, 1  ;;  %v9682_v19 = vld [vmem:[#allocation53_spill] sm:$0xff] }
 0x1dd   : > { %v2228_v62 = vsel %vm2205_vm15, %v9678_v8, %v9676_v36  ;;  %v9681_v4 = vmov %v9676_v36  ;;  %v2401_v12 = vrot.slane %v9682_v19, 2  ;;  %v2402_v46 = vrot.slane %v9683_v54, 2 }
 0x1de   : > { %v2230_v39 = vsel %vm2205_vm15, %v9681_v4, %v9680_v43  ;;  %v2298_v29 = vadd.f32 %v2228_v62, %v2123_v50  ;;  %v9441_v3 = vrot.slane %v9684_v49, 2  ;;  %v9685_v42 = vrot.slane %v7719_v61, 2 }
 0x1df   : > { %v2299_v14 = vadd.f32 %v2230_v39, %v2124_v35  ;;  %v3296_v33 = vadd.f32 %v3223_v52, %v3122_v0  ;;  %v2507_v8 = vmul.f32 %v6803_v17, %v9640_v38  ;;  %v2508_v53 = vmul.f32 %v6803_v17, %v7343_v24 }
 0x1e0   : > { %v3224_v41 = vsel %vm2380_vm0, %v9685_v42, %v3223_v52  ;;  %v2403_v36 = vsel %vm2380_vm0, %v2401_v12, %v2402_v46  ;;  %v2405_v54 = vsel %vm2380_vm0, %v2402_v46, %v9441_v3  ;;  %v2571_v50 = vmul.f32 %v6807_v37, %v9640_v38  ;;  %v5235_v52 = vpop.f32.mrb[32].mxu0 }
 0x1e1   : > { %v3295_v4 = vadd.f32 %v3224_v41, %v3121_v21  ;;  %v2473_v61 = vadd.f32 %v2403_v36, %v2298_v29  ;;  %v2474_v35 = vadd.f32 %v2405_v54, %v2299_v14  ;;  %v2572_v42 = vmul.f32 %v6807_v37, %v7343_v24  ;;  %v1772_v39 = vpop.f32.mrb[33].mxu0 }
 0x1e2   : > { %v7912_v0 = vmul.f32 %v6807_v37, %v7390_v30  ;;  %v2639_v62 = vrot.slane %v2571_v50, 1  ;;  %v2745_v43 = vmul.f32 %v6811_v31, %v9640_v38  ;;  %v2746_v46 = vmul.f32 %v6811_v31, %v7343_v24  ;;  %v7919_v41 = vpop.f32.mrb[34].mxu0 }
 0x1e3   : > { %v5077_v21 = vpack.c.bf16 %v3296_v33, %v3295_v4  ;;  %v2537_v19 = vadd.f32 %v2507_v8, %v2473_v61  ;;  %v2538_v12 = vadd.f32 %v2508_v53, %v2474_v35  ;;  %v2640_v29 = vrot.slane %v2572_v42, 1  ;;  %v7929_v36 = vpop.f32.mrb[35].mxu0 }
 0x1e4   : > { %v9440_v14 = vrot.slane %v7912_v0, 1  ;;  %v7925_v33 = vmul.f32 %v6811_v31, %v7390_v30  ;;  %v2813_v4 = vrot.slane %v2745_v43, 2  ;;  %v2814_v38 = vrot.slane %v2746_v46, 2 }
 0x1e5   : > { %5274 = vmatmul.mubr.msk.bf16.gmra.mrb[20].mxu1 %vm7406_vm12, %v5077_v21  ;;  %v2919_v24 = vmul.f32 %v6832_v28, %v7330_v32  ;;  %v2641_v8 = vsel %vm2205_vm15, %v2639_v62, %v2640_v29  ;;  %v2920_v54 = vmul.f32 %v6832_v28, %v7360_v60  ;;  %v2983_v50 = vmul.f32 %v6841_v51, %v7330_v32 }
 0x1e6   : > { %5277 = vmatprep.mubr.msk.bf16.mxu1 %vm5521_vm4, %v9556_v63  ;;  %v2643_v53 = vsel %vm2205_vm15, %v2640_v29, %v9440_v14  ;;  %v2711_v61 = vadd.f32 %v2641_v8, %v2537_v19  ;;  %v2815_v42 = vsel %vm2380_vm0, %v2813_v4, %v2814_v38  ;;  %v9446_v21 = vrot.slane %v7925_v33, 2 }
 0x1e7   : > { %v2712_v35 = vadd.f32 %v2643_v53, %v2538_v12  ;;  %v2984_v43 = vmul.f32 %v6841_v51, %v7360_v60  ;;  %v7947_v62 = vmul.f32 %v6841_v51, %v7499_v11  ;;  %v3051_v46 = vrot.slane %v2983_v50, 1 }
 0x1e8   : > { %v3157_v29 = vmul.f32 %v6845_v48, %v7330_v32  ;;  %v2817_v19 = vsel %vm2380_vm0, %v2814_v38, %v9446_v21  ;;  %v2885_v12 = vadd.f32 %v2815_v42, %v2711_v61  ;;  %v3158_v4 = vmul.f32 %v6845_v48, %v7360_v60  ;;  %v9686_v21 = vld [vmem:[#allocation21_spill] sm:$0xff] }
 0x1e9   : > { %v7958_v8 = vmul.f32 %v6845_v48, %v7499_v11  ;;  %v2886_v53 = vadd.f32 %v2817_v19, %v2712_v35  ;;  %v3052_v14 = vrot.slane %v2984_v43, 1  ;;  %v3054_v3 = vrot.slane %v7947_v62, 1 }
 0x1ea   : > { %v3225_v50 = vrot.slane %v3157_v29, 2  ;;  %v2949_v55 = vadd.f32 %v2919_v24, %v2885_v12  ;;  %v3226_v7 = vrot.slane %v3158_v4, 2  ;;  %v1827_v2 = vadd.f32 %v5235_v52, %v9518_v56  ;;  %v9695_v4 = vld [vmem:[#allocation57_spill] sm:$0xff] }
 0x1eb   : > { %v3228_v16 = vrot.slane %v7958_v8, 2  ;;  %v2950_v38 = vadd.f32 %v2920_v54, %v2886_v53  ;;  %v3053_v61 = vsel %vm2205_vm15, %v3051_v46, %v3052_v14  ;;  %v3055_v42 = vsel %vm2205_vm15, %v3052_v14, %v3054_v3  ;;  %v9692_v46 = vld [vmem:[#allocation49_spill] sm:$0xff] }
 0x1ec   : > { %v1877_v57 = vadd.s32 11, %v9686_v21  ;;  %v3123_v35 = vadd.f32 %v3053_v61, %v2949_v55  ;;  %v3227_v43 = vsel %vm2380_vm0, %v3225_v50, %v3226_v7  ;;  %v1863_v29 = vmax.f32 %v1827_v2, 0.0  ;;  %v9690_v21 = vld [vmem:[#allocation56_spill] sm:$0xff]  ;;  %v9804_v55 = vld [vmem:[#allocation45_spill] sm:$0xff] }
 0x1ed   : > { %v3229_v24 = vsel %vm2380_vm0, %v3226_v7, %v3228_v16  ;;  %v3124_v19 = vadd.f32 %v3055_v42, %v2950_v38  ;;  %v1825_v52 = vadd.f32 %v9518_v56, %v1772_v39  ;;  %v9689_v54 = vrot.slane %v7352_v20, 1  ;;  %v9697_v42 = vld [vmem:[#allocation58_spill] sm:$0xff] }
 0x1ee   : > { %vm1896_vm1 = vcmp.ge.s32.totalorder %v1877_v57, 0  ;;  %vm1908_vm3 = vcmp.lt.s32.totalorder %v1877_v57, 16  ;;  %v3297_v14 = vadd.f32 %v3227_v43, %v3123_v35  ;;  %v9691_v7 = vrot.slane %v9690_v21, 1 }
 0x1ef   : > { %vm7977_vm6 = vmand %vm1896_vm1, %vm1908_vm3  ;;  %v9693_v57 = vrot.slane %v9679_v45, 1  ;;  %v9694_v12 = vrot.slane %v7356_v9, 2  ;;  %v9696_v23 = vrot.slane %v9695_v4, 2  ;;  %v3298_v50 = vadd.f32 %v3229_v24, %v3124_v19 }
 0x1f0   : > { %v2233_v2 = vsel %vm2205_vm15, %v9691_v7, %v9689_v54  ;;  %v2105_v38 = vsel %vm7977_vm6, %v1863_v29, 0.0  ;;  %v1861_v61 = vmax.f32 %v1825_v52, 0.0  ;;  %v9698_v21 = vrot.slane %v9684_v49, 2  ;;  %vm1998_vm7 = vmand %vm7977_vm6, %vm1962_vm8 }
 0x1f1   : > { %v2300_v39 = vadd.f32 %v9693_v57, %v9692_v46  ;;  %v2408_v53 = vsel %vm2380_vm0, %v9696_v23, %v9694_v12  ;;  %v2301_v35 = vadd.f32 %v2233_v2, %v9697_v42  ;;  %v7999_v54 = vmul.f32 %v6841_v51, %v2105_v38  ;;  %vm1957_vm8 = vmand %vm7977_vm6, %vm1921_vm9 }
 0x1f2   : > { %v8002_v45 = vmul.f32 %v6845_v48, %v2105_v38  ;;  %v3332_v46 = vpack.c.bf16 %v3298_v50, %v3297_v14  ;;  %v8006_v57 = vsel %vm1995_vm5, %v1861_v61, 0.0  ;;  %v2509_v29 = vmul.f32 %v6803_v17, %v7390_v30 }
 0x1f3   : > { %v2475_v7 = vadd.f32 %v9698_v21, %v2300_v39  ;;  %9699 = vst [vmem:[#allocation52_spill] sm:$0xff] %v8006_v57  ;;  %v2476_v24 = vadd.f32 %v2408_v53, %v2301_v35  ;;  %v8011_v19 = vmul.f32 %v6832_v28, %v2105_v38  ;;  %v8017_v12 = vmul.f32 %v6807_v37, %v8006_v57 }
 0x1f4   : > { %5278 = vmatmul.mubr.bf16.gmra.mrb[24].mxu1 %v3332_v46  ;;  %v8021_v49 = vmul.f32 %v6803_v17, %v8006_v57  ;;  %v8025_v14 = vmul.f32 %v6841_v51, %v8006_v57  ;;  %v2510_v30 = vmul.f32 %v6803_v17, %v7330_v32  ;;  %v2644_v23 = vrot.slane %v7348_v5, 1 }
 0x1f5   : > { %v2539_v39 = vadd.f32 %v2509_v29, %v2475_v7  ;;  %5281 = vmatprep.mubr.msk.bf16.mxu1 %vm5521_vm4, %v9556_v63  ;;  %v9450_v4 = vrot.slane %v8017_v12, 1  ;;  %v9449_v53 = vrot.slane %v7384_v27, 1  ;;  %v2748_v50 = vmul.f32 %v6811_v31, %v7330_v32 }
 0x1f6   : > { %9700 = vst [vmem:[#allocation50_spill] sm:$0xff] %v8025_v14  ;;  %v2540_v61 = vadd.f32 %v2510_v30, %v2476_v24  ;;  %v9701_v42 = vrot.slane %v7912_v0, 1  ;;  %v8041_v21 = vmul.f32 %v6811_v31, %v7360_v60  ;;  %v9702_v7 = vrot.slane %v7853_v47, 1 }
 0x1f7   : > { %v2646_v46 = vsel %vm2205_vm15, %v2644_v23, %v9449_v53  ;;  %v2818_v29 = vrot.slane %v2748_v50, 2  ;;  %v2921_v0 = vmul.f32 %v6832_v28, %v7499_v11  ;;  %v2922_v38 = vmul.f32 %v6832_v28, %v7548_v44 }
 0x1f8   : > { %v2713_v35 = vadd.f32 %v9701_v42, %v2539_v39  ;;  %v8048_v5 = vsel %vm2205_vm15, %v9702_v7, %v9450_v4  ;;  %v2714_v24 = vadd.f32 %v2646_v46, %v2540_v61  ;;  %v9451_v30 = vrot.slane %v8041_v21, 2 }
 0x1f9   : > { %v9703_v39 = vrot.slane %v7925_v33, 2  ;;  %v2986_v7 = vmul.f32 %v6841_v51, %v7548_v44  ;;  %v8064_v43 = vmul.f32 %v6841_v51, %v7484_v26  ;;  %v3160_v23 = vmul.f32 %v6845_v48, %v7548_v44 }
 0x1fa   : > { %v8070_v50 = vmul.f32 %v6845_v48, %v7484_v26  ;;  %v2820_v33 = vsel %vm2380_vm0, %v2818_v29, %v9451_v30  ;;  %v2140_v46 = vmul.f32 %v6795_v59, %v7869_v13  ;;  %v2349_v58 = vmul.f32 %v6790_v25, %v7869_v13 }
 0x1fb   : > { %v2887_v42 = vadd.f32 %v9703_v39, %v2713_v35  ;;  %v1828_v35 = vadd.f32 %v7919_v41, %v9518_v56  ;;  %v2888_v39 = vadd.f32 %v2820_v33, %v2714_v24  ;;  %v3056_v53 = vrot.slane %v2986_v7, 1 }
 0x1fc   : > { %v9452_v4 = vrot.slane %v8064_v43, 1  ;;  %v3230_v2 = vrot.slane %v3160_v23, 2  ;;  %v2174_v41 = vmul.f32 %v6786_v40, %v7869_v13  ;;  %v2762_v7 = vmul.f32 %v6811_v31, %v8006_v57 }
 0x1fd   : > { %v2951_v61 = vadd.f32 %v2921_v0, %v2887_v42  ;;  %v3231_v0 = vrot.slane %v8070_v50, 2  ;;  %v1864_v42 = vmax.f32 %v1828_v35, 0.0  ;;  %v2952_v30 = vadd.f32 %v2922_v38, %v2888_v39 }
 0x1fe   : > { %v3058_v24 = vsel %vm2205_vm15, %v3056_v53, %v9452_v4  ;;  %v2254_v33 = vrot.slane %v2174_v41, 1  ;;  %v2841_v35 = vrot.slane %v2762_v7, 2  ;;  %v9704_v39 = vrot.slane %v7845_v18, 1 }
 0x1ff   : > { %v3125_v29 = vadd.f32 %v3054_v3, %v2951_v61  ;;  %v3232_v3 = vsel %vm2380_vm0, %v3230_v2, %v3231_v0  ;;  %v2106_v23 = vsel %vm1998_vm7, %v1864_v42, 0.0  ;;  %v3126_v38 = vadd.f32 %v3058_v24, %v2952_v30 }
 0x200   : > { %v2429_v61 = vrot.slane %v2349_v58, 2  ;;  %v2936_v53 = vmul.f32 %v6832_v28, %v2106_v23  ;;  %v2255_v4 = vsel %vm2205_vm15, %v9704_v39, %v2254_v33  ;;  %v2315_v52 = vadd.f32 %v2254_v33, %v2140_v46 }
 0x201   : > { %v3299_v62 = vadd.f32 %v3228_v16, %v3125_v29  ;;  %v3000_v57 = vmul.f32 %v6841_v51, %v2106_v23  ;;  %v3174_v14 = vmul.f32 %v6845_v48, %v2106_v23  ;;  %v3300_v2 = vadd.f32 %v3232_v3, %v3126_v38  ;;  %v9710_v3 = vld [vmem:[#allocation91_spill] sm:$0xff]  ;;  %v9712_v38 = vld [vmem:[#allocation42_spill] sm:$0xff] }
 0x202   : > { %v2314_v8 = vadd.f32 %v2255_v4, %v7841_v1  ;;  %v9705_v16 = vrot.slane %v7849_v6, 2  ;;  %v9706_v29 = vrot.slane %v7861_v22, 2  ;;  %v2490_v41 = vadd.f32 %v2429_v61, %v2315_v52 }
 0x203   : > { %v3079_v24 = vrot.slane %v3000_v57, 1  ;;  %v3253_v58 = vrot.slane %v3174_v14, 2  ;;  %v1826_v46 = vadd.f32 %v9518_v56, %v7929_v36  ;;  %v5080_v7 = vpack.c.bf16 %v3300_v2, %v3299_v62 }
 0x204   : > { %v2430_v30 = vsel %vm2380_vm0, %v9705_v16, %v2429_v61  ;;  %v2842_v42 = vsel %vm2380_vm0, %v9706_v29, %v2841_v35  ;;  %v2138_v1 = vmul.f32 %v6795_v59, %v7697_v34  ;;  %v2172_v4 = vmul.f32 %v6786_v40, %v7697_v34 }
 0x205   : > { %v2489_v33 = vadd.f32 %v2430_v30, %v2314_v8  ;;  %v2554_v52 = vadd.f32 %v8021_v49, %v2490_v41  ;;  %v9707_v57 = vrot.slane %v7999_v54, 1  ;;  %v9708_v56 = vrot.slane %v8002_v45, 2  ;;  %5282 = vmatmul.mubr.msk.bf16.gmra.mrb[28].mxu1 %vm7284_vm10, %v5080_v7 }
 0x206   : > { %v1862_v15 = vmax.f32 %v1826_v46, 0.0  ;;  %v2251_v23 = vrot.slane %v2172_v4, 1  ;;  %v2347_v40 = vmul.f32 %v6790_v25, %v7697_v34  ;;  %v9711_v49 = vrot.slane %v7853_v47, 1  ;;  %5285 = vmatprep.mubr.msk.bf16.mxu1 %vm5521_vm4, %v9556_v63  ;;  %v9718_v25 = vld [vmem:[#allocation68_spill] sm:$0xff] }
 0x207   : > { %v3080_v14 = vsel %vm2205_vm15, %v9707_v57, %v3079_v24  ;;  %v8131_v36 = vsel %vm2380_vm0, %v9708_v56, %v3253_v58  ;;  %v2553_v62 = vadd.f32 %v9710_v3, %v2489_v33  ;;  %v9713_v61 = vrot.slane %v9712_v38, 1 }
 0x208   : > { %v9714_v2 = vrot.slane %v8017_v12, 1  ;;  %v2104_v16 = vsel %vm1957_vm8, %v1862_v15, 0.0  ;;  %v9715_v30 = vmov %v9706_v29  ;;  %v9716_v29 = vld [vmem:[#allocation22_spill] sm:$0xff]  ;;  %v9719_v7 = vrot.slane %v9718_v25, 1 }
 0x209   : > { %v2666_v39 = vsel %vm2205_vm15, %v9713_v61, %v9711_v49  ;;  %v9717_v41 = vrot.slane %v9716_v29, 2  ;;  %v9720_v47 = vrot.slane %v7352_v20, 1  ;;  %v2727_v4 = vadd.f32 %v8048_v5, %v2553_v62  ;;  %v9724_v62 = vld [vmem:[#allocation67_spill] sm:$0xff] }
 0x20a   : > { %v2728_v8 = vadd.f32 %v9714_v2, %v2554_v52  ;;  %v9721_v12 = vrot.slane %v7845_v18, 1  ;;  %v2426_v22 = vrot.slane %v2347_v40, 2  ;;  %v2934_v57 = vmul.f32 %v6832_v28, %v2104_v16  ;;  %v9723_v2 = vld [vmem:[#allocation64_spill] sm:$0xff] }
 0x20b   : > { %v2840_v46 = vsel %vm2380_vm0, %v9717_v41, %v9715_v30  ;;  %v2235_v33 = vsel %vm2205_vm15, %v9720_v47, %v9719_v7  ;;  %v2998_v3 = vmul.f32 %v6841_v51, %v2104_v16  ;;  %v3172_v49 = vmul.f32 %v6845_v48, %v2104_v16 }
 0x20c   : > { %v2253_v52 = vsel %vm2205_vm15, %v2251_v23, %v9721_v12  ;;  %v2902_v56 = vadd.f32 %v2841_v35, %v2728_v8  ;;  %v2901_v38 = vadd.f32 %v2842_v42, %v2727_v4  ;;  %v9722_v20 = vrot.slane %v7849_v6, 2  ;;  %v9726_v8 = vld [vmem:[#allocation70_spill] sm:$0xff] }
 0x20d   : > { %v2313_v15 = vadd.f32 %v2253_v52, %v2138_v1  ;;  %v2302_v5 = vadd.f32 %v2235_v33, %v9723_v2  ;;  %v9725_v18 = vmov %v9719_v7  ;;  %v3076_v29 = vrot.slane %v2998_v3, 1  ;;  %v9727_v7 = vld [vmem:[#allocation88_spill] sm:$0xff] }
 0x20e   : > { %v2428_v61 = vsel %vm2380_vm0, %v2426_v22, %v9722_v20  ;;  %v2303_v23 = vadd.f32 %v9725_v18, %v9724_v62  ;;  %v2966_v40 = vadd.f32 %v2936_v53, %v2902_v56  ;;  %v3250_v35 = vrot.slane %v3172_v49, 2 }
 0x20f   : > { %v2488_v30 = vadd.f32 %v2428_v61, %v2313_v15  ;;  %v2965_v1 = vadd.f32 %v8011_v19, %v2901_v38  ;;  %v2409_v41 = vrot.slane %v9726_v8, 2  ;;  %v2511_v42 = vmul.f32 %v6803_v17, %v7360_v60  ;;  %v9731_v38 = vld [vmem:[#allocation76_spill] sm:$0xff]  ;;  %v9734_v8 = vld [vmem:[#allocation65_spill] sm:$0xff] }
 0x210   : > { %v2512_v6 = vmul.f32 %v6803_v17, %v7499_v11  ;;  %v3140_v16 = vadd.f32 %v3079_v24, %v2966_v40  ;;  %v9728_v25 = vrot.slane %v7999_v54, 1  ;;  %v9729_v33 = vrot.slane %v8002_v45, 2 }
 0x211   : > { %v2552_v47 = vadd.f32 %v9727_v7, %v2488_v30  ;;  %v8186_v19 = vadd.f32 %v3080_v14, %v2965_v1  ;;  %v9730_v12 = vrot.slane %v7356_v9, 2  ;;  %v2478_v22 = vadd.f32 %v2409_v41, %v2303_v23 }
 0x212   : > { %v3078_v53 = vsel %vm2205_vm15, %v3076_v29, %v9728_v25  ;;  %v8184_v4 = vsel %vm2380_vm0, %v3250_v35, %v9729_v33  ;;  %v2576_v24 = vmul.f32 %v6807_v37, %v7499_v11  ;;  %v8193_v56 = vadd.f32 %v3253_v58, %v3140_v16 }
 0x213   : > { %v2410_v52 = vsel %vm2380_vm0, %v9730_v12, %v2409_v41  ;;  %v2726_v54 = vadd.f32 %v2666_v39, %v2552_v47  ;;  %v2750_v45 = vmul.f32 %v6811_v31, %v7499_v11  ;;  %v2542_v3 = vadd.f32 %v2512_v6, %v2478_v22  ;;  %v9739_v47 = vld [vmem:[#allocation75_spill] sm:$0xff] }
 0x214   : > { %v2477_v15 = vadd.f32 %v2410_v52, %v2302_v5  ;;  %v2647_v49 = vrot.slane %v2576_v24, 1  ;;  %v2923_v14 = vmul.f32 %v6832_v28, %v7484_v26  ;;  %v2924_v9 = vmul.f32 %v6832_v28, %v9731_v38 }
 0x215   : > { %v2900_v20 = vadd.f32 %v2840_v46, %v2726_v54  ;;  %v2821_v2 = vrot.slane %v2750_v45, 2  ;;  %v2988_v58 = vmul.f32 %v6841_v51, %v9731_v38  ;;  %v9732_v39 = vrot.slane %v7384_v27, 1  ;;  %v9742_v54 = vld [vmem:[#allocation63_spill] sm:$0xff]  ;;  %v9743_v45 = vld [vmem:[#allocation66_spill] sm:$0xff] }
 0x216   : > { %v2541_v61 = vadd.f32 %v2511_v42, %v2477_v15  ;;  %v2716_v62 = vadd.f32 %v2647_v49, %v2542_v3  ;;  %v3162_v11 = vmul.f32 %v6845_v48, %v9731_v38  ;;  %v2129_v18 = vmul.f32 %v6795_v59, %v7330_v32  ;;  %v9736_v42 = vld [vmem:[#allocation62_spill] sm:$0xff]  ;;  %v9744_v3 = vld [vmem:[#allocation77_spill] sm:$0xff] }
 0x217   : > { %v2648_v5 = vsel %vm2205_vm15, %v9732_v39, %v2647_v49  ;;  %v2964_v23 = vadd.f32 %v2934_v57, %v2900_v20  ;;  %v9733_v46 = vrot.slane %v8041_v21, 2  ;;  %v3059_v29 = vrot.slane %v2988_v58, 1 }
 0x218   : > { %v2715_v40 = vadd.f32 %v2648_v5, %v2541_v61  ;;  %v2890_v35 = vadd.f32 %v2821_v2, %v2716_v62  ;;  %v3233_v1 = vrot.slane %v3162_v11, 2  ;;  %v2130_v27 = vmul.f32 %v6795_v59, %v7360_v60 }
 0x219   : > { %v2822_v30 = vsel %vm2380_vm0, %v9733_v46, %v2821_v2  ;;  %v9735_v41 = vrot.slane %v9734_v8, 1  ;;  %v9737_v6 = vrot.slane %v9736_v42, 1  ;;  %v8220_v7 = vadd.f32 %v3078_v53, %v2964_v23 }
 0x21a   : > { %v2889_v32 = vadd.f32 %v2822_v30, %v2715_v40  ;;  %v9738_v57 = vrot.slane %v8064_v43, 1  ;;  %v9740_v25 = vrot.slane %v9739_v47, 1  ;;  %v2954_v60 = vadd.f32 %v2924_v9, %v2890_v35 }
 0x21b   : > { %v2238_v16 = vsel %vm2205_vm15, %v9737_v6, %v9735_v41  ;;  %v9741_v33 = vmov %v9735_v41  ;;  %v3234_v52 = vsel %vm2380_vm0, %v3231_v0, %v3233_v1  ;;  %v2411_v15 = vrot.slane %v9742_v54, 2 }
 0x21c   : > { %v3060_v21 = vsel %vm2205_vm15, %v9738_v57, %v3059_v29  ;;  %v2240_v12 = vsel %vm2205_vm15, %v9741_v33, %v9740_v25  ;;  %v2304_v22 = vadd.f32 %v2238_v16, %v2129_v18  ;;  %v2953_v53 = vadd.f32 %v2923_v14, %v2889_v32  ;;  %v9747_v33 = vld [vmem:[#allocation84_spill] sm:$0xff] }
 0x21d   : > { %v2305_v24 = vadd.f32 %v2240_v12, %v2130_v27  ;;  %v2412_v43 = vrot.slane %v9743_v45, 2  ;;  %v2414_v49 = vrot.slane %v9744_v3, 2  ;;  %v3128_v20 = vadd.f32 %v3059_v29, %v2954_v60 }
 0x21e   : > { %v2513_v61 = vmul.f32 %v6803_v17, %v7548_v44  ;;  %v2514_v9 = vmul.f32 %v6803_v17, %v7484_v26  ;;  %v2577_v50 = vmul.f32 %v6807_v37, %v7548_v44  ;;  %v3127_v0 = vadd.f32 %v3060_v21, %v2953_v53  ;;  %v9809_v21 = vld [vmem:[#allocation39_spill] sm:$0xff] }
 0x21f   : > { %v2413_v2 = vsel %vm2380_vm0, %v2411_v15, %v2412_v43  ;;  %v2415_v14 = vsel %vm2380_vm0, %v2412_v43, %v2414_v49  ;;  %v2578_v58 = vmul.f32 %v6807_v37, %v7484_v26  ;;  %v3302_v39 = vadd.f32 %v3233_v1, %v3128_v20 }
 0x220   : > { %v2479_v5 = vadd.f32 %v2413_v2, %v2304_v22  ;;  %v2480_v62 = vadd.f32 %v2415_v14, %v2305_v24  ;;  %v8250_v11 = vmul.f32 %v6807_v37, %v9731_v38  ;;  %v3301_v18 = vadd.f32 %v3234_v52, %v3127_v0  ;;  %v9748_v24 = vld [vmem:[#allocation25_spill] sm:$0xff] }
 0x221   : > { %v2649_v23 = vrot.slane %v2577_v50, 1  ;;  %v2650_v40 = vrot.slane %v2578_v58, 1  ;;  %v2751_v46 = vmul.f32 %v6811_v31, %v7548_v44  ;;  %v2752_v27 = vmul.f32 %v6811_v31, %v7484_v26  ;;  %v9745_v44 = vld [vmem:[#allocation14_spill] sm:$0xff] }
 0x222   : > { %v2543_v30 = vadd.f32 %v2513_v61, %v2479_v5  ;;  %v2544_v29 = vadd.f32 %v2514_v9, %v2480_v62  ;;  %v2652_v35 = vrot.slane %v8250_v11, 1  ;;  %v5083_v1 = vpack.c.bf16 %v3302_v39, %v3301_v18  ;;  %v9749_v39 = vld [vmem:[#allocation71_spill] sm:$0xff]  ;;  %v9751_v62 = vld [vmem:[#allocation82_spill] sm:$0xff] }
 0x223   : > { %v2651_v8 = vsel %vm2205_vm15, %v2649_v23, %v2650_v40  ;;  %v8260_v41 = vmul.f32 %v6811_v31, %v9731_v38  ;;  %v2823_v42 = vrot.slane %v2751_v46, 2  ;;  %v2824_v32 = vrot.slane %v2752_v27, 2 }
 0x224   : > { %v2653_v6 = vsel %vm2205_vm15, %v2650_v40, %v2652_v35  ;;  %v2717_v16 = vadd.f32 %v2651_v8, %v2543_v30  ;;  %v2925_v57 = vmul.f32 %v6832_v28, %v9745_v44  ;;  %5286 = vmatmul.mubr.msk.bf16.gmra.mrb[32].mxu1 %vm7406_vm12, %v5083_v1  ;;  %v2926_v12 = vmul.f32 %v6832_v28, %v9747_v33  ;;  %v9753_v1 = vld [vmem:[#allocation74_spill] sm:$0xff] }
 0x225   : > { %v2718_v25 = vadd.f32 %v2653_v6, %v2544_v29  ;;  %v2826_v26 = vrot.slane %v8260_v41, 2  ;;  %v2989_v60 = vmul.f32 %v6841_v51, %v9745_v44  ;;  %5289 = vmatprep.mubr.msk.bf16.mxu1 %vm5521_vm4, %v9556_v63  ;;  %v2825_v52 = vsel %vm2380_vm0, %v2823_v42, %v2824_v32  ;;  %v9755_v42 = vld [vmem:[#allocation81_spill] sm:$0xff] }
 0x226   : > { %v2990_v22 = vmul.f32 %v6841_v51, %v9747_v33  ;;  %v8279_v53 = vmul.f32 %v6841_v51, %v9748_v24  ;;  %v3163_v54 = vmul.f32 %v6845_v48, %v9745_v44  ;;  %v2891_v45 = vadd.f32 %v2825_v52, %v2717_v16 }
 0x227   : > { %v2827_v15 = vsel %vm2380_vm0, %v2824_v32, %v2826_v26  ;;  %v3061_v43 = vrot.slane %v2989_v60, 1  ;;  %v3164_v20 = vmul.f32 %v6845_v48, %v9747_v33  ;;  %v8289_v0 = vmul.f32 %v6845_v48, %v9748_v24 }
 0x228   : > { %v2892_v61 = vadd.f32 %v2827_v15, %v2718_v25  ;;  %v3062_v9 = vrot.slane %v2990_v22, 1  ;;  %v3064_v50 = vrot.slane %v8279_v53, 1  ;;  %v2955_v2 = vadd.f32 %v2925_v57, %v2891_v45  ;;  %v9756_v57 = vld [vmem:[#allocation72_spill] sm:$0xff] }
 0x229   : > { %v3235_v14 = vrot.slane %v3163_v54, 2  ;;  %v3236_v58 = vrot.slane %v3164_v20, 2  ;;  %v9750_v5 = vrot.slane %v9749_v39, 1  ;;  %v9752_v11 = vrot.slane %v9751_v62, 1 }
 0x22a   : > { %v2956_v23 = vadd.f32 %v2926_v12, %v2892_v61  ;;  %v3063_v40 = vsel %vm2205_vm15, %v3061_v43, %v3062_v9  ;;  %v3065_v46 = vsel %vm2205_vm15, %v3062_v9, %v3064_v50  ;;  %v3238_v30 = vrot.slane %v8289_v0, 2  ;;  %v9758_v12 = vld [vmem:[#allocation83_spill] sm:$0xff]  ;;  %v9760_v43 = vld [vmem:[#allocation54_spill] sm:$0xff] }
 0x22b   : > { %v2243_v18 = vsel %vm2205_vm15, %v9752_v11, %v9750_v5  ;;  %v3129_v29 = vadd.f32 %v3063_v40, %v2955_v2  ;;  %v3237_v27 = vsel %vm2380_vm0, %v3235_v14, %v3236_v58  ;;  %v9754_v8 = vrot.slane %v9739_v47, 1  ;;  %v9761_v61 = vld [vmem:[#allocation87_spill] sm:$0xff] }
 0x22c   : > { %v2307_v6 = vadd.f32 %v2243_v18, %v9755_v42  ;;  %v3130_v16 = vadd.f32 %v3065_v46, %v2956_v23  ;;  %v3239_v32 = vsel %vm2380_vm0, %v3236_v58, %v3238_v30  ;;  %v9757_v25 = vrot.slane %v9756_v57, 2  ;;  %v9762_v46 = vld [vmem:[#allocation90_spill] sm:$0xff] }
 0x22d   : > { %v2306_v41 = vadd.f32 %v9754_v8, %v9753_v1  ;;  %v9759_v60 = vrot.slane %v9758_v12, 2  ;;  %v2515_v22 = vmul.f32 %v6803_v17, %v9731_v38  ;;  %v3303_v53 = vadd.f32 %v3237_v27, %v3129_v29  ;;  %v9763_v8 = vld [vmem:[#allocation78_spill] sm:$0xff] }
 0x22e   : > { %v2516_v15 = vmul.f32 %v6803_v17, %v9745_v44  ;;  %v3304_v45 = vadd.f32 %v3239_v32, %v3130_v16  ;;  %v2654_v20 = vrot.slane %v9760_v43, 1  ;;  %v2655_v9 = vrot.slane %v9761_v61, 1 }
 0x22f   : > { %v2418_v52 = vsel %vm2380_vm0, %v9759_v60, %v9757_v25  ;;  %v2481_v54 = vadd.f32 %v2414_v49, %v2306_v41  ;;  %v2754_v0 = vmul.f32 %v6811_v31, %v9745_v44  ;;  %v2755_v38 = vmul.f32 %v6811_v31, %v9747_v33  ;;  %v9766_v25 = vld [vmem:[#allocation73_spill] sm:$0xff] }
 0x230   : > { %v2482_v47 = vadd.f32 %v2418_v52, %v2307_v6  ;;  %v2927_v3 = vmul.f32 %v6832_v28, %v9748_v24  ;;  %v3335_v49 = vpack.c.bf16 %v3304_v45, %v3303_v53  ;;  %v2656_v58 = vsel %vm2205_vm15, %v2654_v20, %v2655_v9  ;;  %v9769_v45 = vld [vmem:[#allocation80_spill] sm:$0xff] }
 0x231   : > { %v2545_v2 = vadd.f32 %v2515_v22, %v2481_v54  ;;  %v2828_v5 = vrot.slane %v2754_v0, 2  ;;  %v2928_v62 = vmul.f32 %v6832_v28, %v7697_v34  ;;  %v2829_v23 = vrot.slane %v2755_v38, 2 }
 0x232   : > { %v2546_v14 = vadd.f32 %v2516_v15, %v2482_v47  ;;  %v2992_v40 = vmul.f32 %v6841_v51, %v7697_v34  ;;  %5290 = vmatmul.mubr.bf16.gmra.mrb[36].mxu1 %v3335_v49  ;;  %v2993_v29 = vmul.f32 %v6841_v51, %v9762_v46  ;;  %v3166_v27 = vmul.f32 %v6845_v48, %v7697_v34  ;;  %v9767_v47 = vld [vmem:[#allocation79_spill] sm:$0xff] }
 0x233   : > { %v2719_v11 = vadd.f32 %v2652_v35, %v2545_v2  ;;  %v3167_v1 = vmul.f32 %v6845_v48, %v9762_v46  ;;  %v9764_v41 = vrot.slane %v9763_v8, 1  ;;  %v9765_v42 = vrot.slane %v9749_v39, 1  ;;  %5293 = vmatprep.mubr.msk.bf16.mxu1 %vm5521_vm4, %v9556_v63 }
 0x234   : > { %v2720_v18 = vadd.f32 %v2656_v58, %v2546_v14  ;;  %v2830_v6 = vsel %vm2380_vm0, %v2828_v5, %v2829_v23  ;;  %v3066_v32 = vrot.slane %v2992_v40, 1  ;;  %v3067_v52 = vrot.slane %v2993_v29, 1 }
 0x235   : > { %v2245_v35 = vsel %vm2205_vm15, %v9765_v42, %v9764_v41  ;;  %v2893_v16 = vadd.f32 %v2826_v26, %v2719_v11  ;;  %v3240_v22 = vrot.slane %v3166_v27, 2  ;;  %v3241_v53 = vrot.slane %v3167_v1, 2 }
 0x236   : > { %v2308_v12 = vadd.f32 %v2245_v35, %v9766_v25  ;;  %v2894_v60 = vadd.f32 %v2830_v6, %v2720_v18  ;;  %v9768_v15 = vmov %v9764_v41  ;;  %v2419_v43 = vrot.slane %v9769_v45, 2  ;;  %v9775_v45 = vld [vmem:[#allocation23_spill] sm:$0xff] }
 0x237   : > { %v2957_v54 = vadd.f32 %v2927_v3, %v2893_v16  ;;  %v2309_v39 = vadd.f32 %v9768_v15, %v9767_v47  ;;  %v2517_v20 = vmul.f32 %v6803_v17, %v9747_v33  ;;  %v3068_v26 = vsel %vm2205_vm15, %v3066_v32, %v3067_v52 }
 0x238   : > { %v2958_v61 = vadd.f32 %v2928_v62, %v2894_v60  ;;  %v3242_v0 = vsel %vm2380_vm0, %v3240_v22, %v3241_v53  ;;  %v2518_v2 = vmul.f32 %v6803_v17, %v9748_v24  ;;  %v9770_v38 = vrot.slane %v9756_v57, 2 }
 0x239   : > { %v3131_v14 = vadd.f32 %v3064_v50, %v2957_v54  ;;  %v2484_v49 = vadd.f32 %v2419_v43, %v2309_v39  ;;  %v2582_v58 = vmul.f32 %v6807_v37, %v9748_v24  ;;  %v2756_v62 = vmul.f32 %v6811_v31, %v9748_v24 }
 0x23a   : > { %v2420_v3 = vsel %vm2380_vm0, %v9770_v38, %v2419_v43  ;;  %v3132_v5 = vadd.f32 %v3068_v26, %v2958_v61  ;;  %v2929_v18 = vmul.f32 %v6832_v28, %v9762_v46  ;;  %v2930_v50 = vmul.f32 %v6832_v28, %v7869_v13  ;;  %v9779_v38 = vld [vmem:[#allocation86_spill] sm:$0xff] }
 0x23b   : > { %v2483_v11 = vadd.f32 %v2420_v3, %v2308_v12  ;;  %v3305_v40 = vadd.f32 %v3238_v30, %v3131_v14  ;;  %v2548_v29 = vadd.f32 %v2518_v2, %v2484_v49  ;;  %v2657_v27 = vrot.slane %v2582_v58, 1 }
 0x23c   : > { %v3306_v57 = vadd.f32 %v3242_v0, %v3132_v5  ;;  %v2831_v8 = vrot.slane %v2756_v62, 2  ;;  %v2994_v41 = vmul.f32 %v6841_v51, %v7869_v13  ;;  %v3168_v24 = vmul.f32 %v6845_v48, %v7869_v13  ;;  %v9771_v51 = vld [vmem:[#allocation85_spill] sm:$0xff]  ;;  %v9778_v0 = vld [vmem:[#allocation20_spill] sm:$0xff] }
 0x23d   : > { %v2547_v1 = vadd.f32 %v2517_v20, %v2483_v11  ;;  %v2658_v42 = vsel %vm2205_vm15, %v2655_v9, %v2657_v27  ;;  %v2722_v35 = vadd.f32 %v2657_v27, %v2548_v29  ;;  %v2135_v30 = vmul.f32 %v6795_v59, %v9745_v44  ;;  %v9773_v9 = vld [vmem:[#allocation60_spill] sm:$0xff] }
 0x23e   : > { %v5086_v6 = vpack.c.bf16 %v3306_v57, %v3305_v40  ;;  %v2832_v32 = vsel %vm2380_vm0, %v2829_v23, %v2831_v8  ;;  %v3069_v25 = vrot.slane %v2994_v41, 1  ;;  %v3243_v60 = vrot.slane %v3168_v24, 2 }
 0x23f   : > { %v2721_v16 = vadd.f32 %v2658_v42, %v2547_v1  ;;  %v2896_v12 = vadd.f32 %v2831_v8, %v2722_v35  ;;  %v2136_v22 = vmul.f32 %v6795_v59, %v9747_v33  ;;  %v9772_v54 = vrot.slane %v9771_v51, 1 }
 0x240   : > { %v9774_v47 = vrot.slane %v9773_v9, 1  ;;  %5294 = vmatmul.mubr.msk.bf16.gmra.mrb[40].mxu1 %vm7284_vm10, %v5086_v6  ;;  %v3070_v39 = vsel %vm2205_vm15, %v3067_v52, %v3069_v25  ;;  %v9776_v23 = vrot.slane %v9775_v45, 1  ;;  %v3244_v33 = vsel %vm2380_vm0, %v3241_v53, %v3243_v60  ;;  %v9780_v52 = vld [vmem:[#allocation55_spill] sm:$0xff] }
 0x241   : > { %v2895_v44 = vadd.f32 %v2832_v32, %v2721_v16  ;;  %v9777_v43 = vmov %v9772_v54  ;;  %5297 = vmatprep.mubr.msk.bf16.mxu1 %vm5521_vm4, %v9556_v63  ;;  %v2960_v59 = vadd.f32 %v2930_v50, %v2896_v12  ;;  %v2421_v2 = vrot.slane %v9778_v0, 2 }
 0x242   : > { %v2248_v15 = vsel %vm2205_vm15, %v9774_v47, %v9772_v54  ;;  %v2250_v20 = vsel %vm2205_vm15, %v9777_v43, %v9776_v23  ;;  %v2422_v3 = vrot.slane %v9779_v38, 2  ;;  %v2424_v49 = vrot.slane %v9780_v52, 2  ;;  %v9786_v43 = vld [vmem:[#allocation50_spill] sm:$0xff]  ;;  %v9790_v52 = vld [vmem:[#allocation15_spill] sm:$0xff] }
 0x243   : > { %v2310_v61 = vadd.f32 %v2248_v15, %v2135_v30  ;;  %v2311_v26 = vadd.f32 %v2250_v20, %v2136_v22  ;;  %v2959_v14 = vadd.f32 %v2929_v18, %v2895_v44  ;;  %v2519_v58 = vmul.f32 %v6803_v17, %v7697_v34  ;;  %v9784_v44 = vld [vmem:[#allocation13_spill] sm:$0xff] }
 0x244   : > { %v3134_v5 = vadd.f32 %v3069_v25, %v2960_v59  ;;  %v2520_v11 = vmul.f32 %v6803_v17, %v9762_v46  ;;  %v2583_v62 = vmul.f32 %v6807_v37, %v7697_v34  ;;  %v2584_v53 = vmul.f32 %v6807_v37, %v9762_v46 }
 0x245   : > { %v3133_v40 = vadd.f32 %v3070_v39, %v2959_v14  ;;  %v2423_v18 = vsel %vm2380_vm0, %v2421_v2, %v2422_v3  ;;  %v2425_v29 = vsel %vm2380_vm0, %v2422_v3, %v2424_v49  ;;  %v2585_v27 = vmul.f32 %v6807_v37, %v7869_v13  ;;  %v9789_v3 = vld [vmem:[#allocation52_spill] sm:$0xff] }
 0x246   : > { %v3308_v50 = vadd.f32 %v3243_v60, %v3134_v5  ;;  %v2485_v57 = vadd.f32 %v2423_v18, %v2310_v61  ;;  %v2486_v1 = vadd.f32 %v2425_v29, %v2311_v26  ;;  %v2659_v8 = vrot.slane %v2583_v62, 1 }
 0x247   : > { %v3307_v41 = vadd.f32 %v3244_v33, %v3133_v40  ;;  %v2660_v42 = vrot.slane %v2584_v53, 1  ;;  %v2662_v35 = vrot.slane %v2585_v27, 1  ;;  %v2757_v24 = vmul.f32 %v6811_v31, %v7697_v34  ;;  %v9781_v34 = vld [vmem:[#allocation24_spill] sm:$0xff] }
 0x248   : > { %v2549_v30 = vadd.f32 %v2519_v58, %v2485_v57  ;;  %v2550_v6 = vadd.f32 %v2520_v11, %v2486_v1  ;;  %v2758_v16 = vmul.f32 %v6811_v31, %v9762_v46  ;;  %v2759_v32 = vmul.f32 %v6811_v31, %v7869_v13  ;;  %v9782_v46 = vld [vmem:[#allocation89_spill] sm:$0xff] }
 0x249   : > { %v5089_v25 = vpack.c.bf16 %v3308_v50, %v3307_v41  ;;  %v2661_v37 = vsel %vm2205_vm15, %v2659_v8, %v2660_v42  ;;  %v2663_v12 = vsel %vm2205_vm15, %v2660_v42, %v2662_v35  ;;  %v2833_v60 = vrot.slane %v2757_v24, 2 }
 0x24a   : > { %v2723_v22 = vadd.f32 %v2661_v37, %v2549_v30  ;;  %v2724_v51 = vadd.f32 %v2663_v12, %v2550_v6  ;;  %v2834_v54 = vrot.slane %v2758_v16, 2  ;;  %v2836_v9 = vrot.slane %v2759_v32, 2  ;;  %v9792_v6 = vld [vmem:[#allocation27_spill] sm:$0xff]  ;;  %v9793_v16 = vld [vmem:[#allocation26_spill] sm:$0xff]  ;;  %v9795_v32 = vld [vmem:[#allocation28_spill] sm:$0xff] }
 0x24b   : > { %5298 = vmatmul.mubr.msk.bf16.gmra.mrb[44].mxu1 %vm7406_vm12, %v5089_v25  ;;  %v2931_v47 = vmul.f32 %v6832_v28, %v9781_v34  ;;  %v2932_v15 = vmul.f32 %v6832_v28, %v9782_v46  ;;  %v9783_v31 = vrot.slane %v7865_v10, 1  ;;  %v9785_v39 = vrot.slane %v9784_v44, 1  ;;  %v9797_v37 = vld [vmem:[#allocation31_spill] sm:$0xff]  ;;  %v9798_v12 = vld [vmem:[#allocation30_spill] sm:$0xff]  ;;  %v9805_v44 = vld [vmem:[#allocation37_spill] sm:$0xff] }
 0x24c   : > { %v9787_v20 = vrot.slane %v9786_v43, 1  ;;  %5301 = vmatprep.mubr.msk.bf16.mxu1 %vm5521_vm4, %v9556_v63  ;;  %v2835_v33 = vsel %vm2380_vm0, %v2833_v60, %v2834_v54  ;;  %v2837_v26 = vsel %vm2380_vm0, %v2834_v54, %v2836_v9  ;;  %v3169_v0 = vmul.f32 %v6845_v48, %v9781_v34  ;;  %v9800_v54 = vld [vmem:[#allocation32_spill] sm:$0xff]  ;;  %v9802_v34 = vld [vmem:[#allocation35_spill] sm:$0xff]  ;;  %v9810_v43 = vld [vmem:[#allocation38_spill] sm:$0xff] }
 0x24d   : > { %v3073_v23 = vsel %vm2205_vm15, %v9785_v39, %v9783_v31  ;;  %v9788_v61 = vmov %v9783_v31  ;;  %v3170_v2 = vmul.f32 %v6845_v48, %v9782_v46  ;;  %v2897_v14 = vadd.f32 %v2835_v33, %v2723_v22  ;;  %v9806_v39 = vld [vmem:[#allocation36_spill] sm:$0xff] }
 0x24e   : > { %v3075_v59 = vsel %vm2205_vm15, %v9788_v61, %v9787_v20  ;;  %v2898_v38 = vadd.f32 %v2837_v26, %v2724_v51  ;;  %v3171_v10 = vmul.f32 %v6845_v48, %v9789_v3  ;;  %v9791_v58 = vrot.slane %v9775_v45, 1  ;;  %v9799_v51 = vld [vmem:[#allocation33_spill] sm:$0xff] }
 0x24f   : > { %v3245_v11 = vrot.slane %v3169_v0, 2  ;;  %v3246_v62 = vrot.slane %v3170_v2, 2  ;;  %v2521_v53 = vmul.f32 %v6803_v17, %v7869_v13  ;;  %v3312_v40 = vadd.f32 %v8184_v4, %v8220_v7  ;;  %v9812_v0 = vld [vmem:[#allocation47_spill] sm:$0xff]  ;;  %v9813_v2 = vld [vmem:[#allocation16_spill] sm:$0xff] }
 0x250   : > { %v2312_v5 = vadd.f32 %v9791_v58, %v9790_v52  ;;  %v2961_v18 = vadd.f32 %v2931_v47, %v2897_v14  ;;  %v2962_v29 = vadd.f32 %v2932_v15, %v2898_v38  ;;  %v3248_v27 = vrot.slane %v3171_v10, 2  ;;  %v9803_v47 = vld [vmem:[#allocation34_spill] sm:$0xff]  ;;  %v9814_v10 = vld [vmem:[#allocation48_spill] sm:$0xff] }
 0x251   : > { %v3247_v57 = vsel %vm2380_vm0, %v3245_v11, %v3246_v62  ;;  %v3313_v48 = vadd.f32 %v8131_v36, %v8186_v19  ;;  %v2933_v17 = vmul.f32 %v6832_v28, %v9789_v3  ;;  %v5102_v36 = vcombine.low %v9793_v16, %v9792_v6  ;;  %v9794_v19 = vld [vmem:[#allocation29_spill] sm:$0xff] }
 0x252   : > { %v2487_v50 = vadd.f32 %v2424_v49, %v2312_v5  ;;  %v3135_v1 = vadd.f32 %v3073_v23, %v2961_v18  ;;  %v3136_v45 = vadd.f32 %v3075_v59, %v2962_v29  ;;  %v3249_v8 = vsel %vm2380_vm0, %v3246_v62, %v3248_v27  ;;  %v9811_v59 = vld [vmem:[#allocation43_spill] sm:$0xff]  ;;  %v9815_v11 = vld [vmem:[#allocation41_spill] sm:$0xff]  ;;  %v9816_v62 = vld [vmem:[#allocation40_spill] sm:$0xff] }
 0x253   : > { %v5095_v42 = vpack.c.bf16 %v8193_v56, %v3313_v48  ;;  %v5103_v25 = vcombine.low %v9795_v32, %v9794_v19  ;;  %v9796_v56 = vmov %v9787_v20  ;;  %5313 = vmatprep.subr.bf16.mxu0 %v5102_v36  ;;  %v5104_v60 = vcombine.low %v9798_v12, %v9797_v37 }
 0x254   : > { %v2551_v41 = vadd.f32 %v2521_v53, %v2487_v50  ;;  %v3309_v13 = vadd.f32 %v3247_v57, %v3135_v1  ;;  %v3310_v4 = vadd.f32 %v3249_v8, %v3136_v45  ;;  %5314 = vmatpush3.bf16.msra.mxu0 %v5102_v36  ;;  %v5106_v46 = vcombine.low %v9803_v47, %v9802_v34 }
 0x255   : > { %5315 = vmatprep.subr.bf16.mxu0 %v5103_v25  ;;  %v8474_v15 = vstv %s5098_s12  ;;  %v8479_v31 = vadd.s32 4294967295, %v9804_v55  ;;  %v5108_v20 = vcombine.low %v9810_v43, %v9809_v21  ;;  %v8499_v14 = vrot.slane %v9813_v2, %v9812_v0  ;;  %s5427_s12 = scalar_lea.vmem %s5426_s0, 4096 }
 0x256   : > { %v2725_v7 = vadd.f32 %v2662_v35, %v2551_v41  ;;  %v3338_v24 = vpack.c.bf16 %v3310_v4, %v3309_v13  ;;  %vm3632_vm9 = vcmp.lt.s32.totalorder %v8474_v15, 16  ;;  %v8503_v52 = vrot.slane %v9813_v2, %v9814_v10  ;;  %p5429_p2 = scmp.lt.s32.totalorder %s5427_s12, %s5421_s30 }
 0x257   : > { %vm3652_vm11 = vcmp.ge.s32.totalorder %v8479_v31, 0  ;;  %v5109_v53 = vcombine.low %v9816_v62, %v9815_v11  ;;  %v3610_v8 = vadd.s32 1, %v8474_v15 }
 0x258   : > { %v2899_v49 = vadd.f32 %v2836_v9, %v2725_v7  ;;  %5302 = vmatmul.mubr.bf16.gmra.mrb[48].mxu1 %v3338_v24  ;;  %5316 = vmatpush3.bf16.msra.mxu0 %v5103_v25  ;;  %v5105_v9 = vcombine.low %v9800_v54, %v9799_v51  ;;  %p5430_p4 = por %p5429_p2, %p5428_p1 }
 0x259   : > { %5305 = vmatprep.mubr.msk.bf16.mxu1 %vm5521_vm4, %v9556_v63  ;;  %5317 = vmatprep.subr.bf16.mxu0 %v5104_v60  ;;  %vm3623_vm13 = vcmp.ge.s32.totalorder %v3610_v8, 0  ;;  %vm3633_vm14 = vcmp.lt.s32.totalorder %v3610_v8, 16 }
 0x25a   : > { %v2963_v30 = vadd.f32 %v2933_v17, %v2899_v49  ;;  %v9818_v17 = vld [vmem:[#allocation19_spill] sm:$0xff]  ;;  %vm8527_vm1 = vmand %vm3623_vm13, %vm3633_vm14  ;;  %p5431_p5 = pnand %p5430_p4, %p5424_p0 }
 0x25b   : > { %v3423_v61 = vpop.f32.mrb[0].mxu1  ;;  %v8520_v13 = vadd.s32 4294967295, %v9818_v17  ;;  %vm3658_vm5 = vmand %vm8527_vm1, %vm3652_vm11 }
 0x25c   : > { %v3137_v28 = vadd.f32 %v9796_v56, %v2963_v30  ;;  %5318 = vmatpush3.bf16.msra.mxu0 %v5104_v60  ;;  %v3548_v33 = vadd.f32 %v9811_v59, %v3423_v61  ;;  %v5255_v26 = vpop.f32.mrb[1].mxu1 }
 0x25d   : > { %5319 = vmatprep.subr.bf16.mxu0 %v5105_v9  ;;  %v3426_v38 = vpop.f32.mrb[2].mxu1  ;;  %vm3687_vm2 = vcmp.lt.s32.totalorder %v8520_v13, 16 }
 0x25e   : > { %v3311_v35 = vadd.f32 %v3248_v27, %v3137_v28  ;;  %v3578_v3 = vmax.f32 %v3548_v33, 0.0  ;;  %v3549_v58 = vadd.f32 %v9811_v59, %v3426_v38  ;;  %v5256_v5 = vpop.f32.mrb[3].mxu1  ;;  %v9817_v27 = vld [vmem:[#allocation46_spill] sm:$0xff]  ;;  %vm3693_vm6 = vmand %vm8527_vm1, %vm3687_vm2 }
 0x25f   : > { %v8511_v50 = vrot.slane %v9813_v2, %v9817_v27 }
 0x260   : > { %v5092_v22 = vpack.c.bf16 %v3312_v40, %v3311_v35  ;;  %5320 = vmatpush3.bf16.msra.mxu0 %v5105_v9  ;;  %v3579_v18 = vmax.f32 %v3549_v58, 0.0 }
 0x261   : > { %5321 = vmatprep.subr.bf16.mxu0 %v5106_v46 }
 0x262   : > { %5306 = vmatmul.mubr.msk.bf16.gmra.mrb[52].mxu1 %vm7284_vm10, %v5092_v22  ;;  %v9821_v22 = vld [vmem:[#allocation17_spill] sm:$0xff] }
 0x263   : > { %5309 = vmatprep.mubr.msk.bf16.mxu1 %vm5521_vm4, %v9556_v63  ;;  %v5107_v63 = vcombine.low %v9806_v39, %v9805_v44  ;;  %vm3622_vm4 = vcmp.ge.s32.totalorder %v8474_v15, 0  ;;  %v8542_v51 = vrot.slane %v9821_v22, %v9817_v27  ;;  %v8552_v43 = vrot.slane %v9821_v22, %v9812_v0 }
 0x264   : > { %5322 = vmatpush3.bf16.msra.mxu0 %v5106_v46  ;;  %vm8485_vm10 = vmand %vm3622_vm4, %vm3632_vm9 }
 0x265   : > { %5323 = vmatprep.subr.bf16.mxu0 %v5107_v63  ;;  %v3779_v48 = vsel %vm8485_vm10, %v3579_v18, 0.0  ;;  %vm3690_vm3 = vmand %vm8485_vm10, %vm3687_vm2 }
 0x266   : > { %v3833_v1 = vmul.f32 %v8499_v14, %v3779_v48  ;;  %v3957_v45 = vmul.f32 %v8503_v52, %v3779_v48  ;;  %v3813_v55 = vmul.f32 %v8511_v50, %v3779_v48 }
 0x268   : > { %5324 = vmatpush3.bf16.msra.mxu0 %v5107_v63  ;;  %v4005_v24 = vrot.slane %v3957_v45, 2 }
 0x269   : > { %5325 = vmatprep.subr.bf16.mxu0 %v5108_v20 }
 0x26a   : > { %5310 = vmatmul.mubr.msk.bf16.gmra.mrb[56].mxu1 %vm7406_vm12, %v5095_v42  ;;  %vm3655_vm12 = vmand %vm8485_vm10, %vm3652_vm11  ;;  %v3881_v42 = vrot.slane %v3833_v1, 1 }
 0x26b   : > { %v3778_v40 = vsel %vm3655_vm12, %v3578_v3, 0.0 }
 0x26c   : > { %v3832_v29 = vmul.f32 %v8499_v14, %v3778_v40  ;;  %5326 = vmatpush3.bf16.msra.mxu0 %v5108_v20  ;;  %v3956_v57 = vmul.f32 %v8503_v52, %v3778_v40  ;;  %v3812_v4 = vmul.f32 %v8511_v50, %v3778_v40  ;;  %v8556_v20 = vrot.slane %v9821_v22, %v9814_v10 }
 0x26d   : > { %5327 = vmatprep.subr.bf16.mxu0 %v5109_v53  ;;  %v3431_v36 = vpop.f32.mrb[4].mxu1 }
 0x26e   : > { %v3880_v41 = vrot.slane %v3832_v29, 1  ;;  %v4004_v7 = vrot.slane %v3956_v57, 2  ;;  %v3550_v19 = vadd.f32 %v9811_v59, %v3431_v36  ;;  %v5259_v32 = vpop.f32.mrb[5].mxu1 }
 0x26f   : > { %v3434_v56 = vpop.f32.mrb[6].mxu1 }
 0x270   : > { %5328 = vmatpush3.bf16.msra.mxu0 %v5109_v53  ;;  %v3882_v49 = vsel %vm2205_vm15, %v3880_v41, %v3881_v42  ;;  %v4006_v6 = vsel %vm2380_vm0, %v4004_v7, %v4005_v24  ;;  %v3580_v28 = vmax.f32 %v3550_v19, 0.0  ;;  %v3551_v35 = vadd.f32 %v9811_v59, %v3434_v56  ;;  %v5260_v37 = vpop.f32.mrb[7].mxu1 }
 0x271   : > { %v3936_v30 = vadd.f32 %v3882_v49, %v3812_v4 }
 0x272   : > { %v3780_v12 = vsel %vm3690_vm3, %v3580_v28, 0.0  ;;  %v3581_v60 = vmax.f32 %v3551_v35, 0.0 }
 0x273   : > { %v4060_v16 = vadd.f32 %v4006_v6, %v3936_v30  ;;  %v3834_v54 = vmul.f32 %v8499_v14, %v3780_v12  ;;  %v3958_v9 = vmul.f32 %v8503_v52, %v3780_v12 }
 0x274   : > { %v3781_v34 = vsel %vm3658_vm5, %v3581_v60, 0.0 }
 0x275   : > { %v3883_v47 = vrot.slane %v3834_v54, 1  ;;  %v4007_v46 = vrot.slane %v3958_v9, 2  ;;  %v4080_v44 = vmul.f32 %v8542_v51, %v3781_v34  ;;  %v3835_v33 = vmul.f32 %v8499_v14, %v3781_v34 }
 0x276   : > { %v3959_v2 = vmul.f32 %v8503_v52, %v3781_v34  ;;  %v4116_v38 = vmul.f32 %v8552_v43, %v3781_v34  ;;  %v4240_v5 = vmul.f32 %v8556_v20, %v3781_v34  ;;  %v3814_v18 = vmul.f32 %v8511_v50, %v3781_v34 }
 0x277   : > { %v3884_v39 = vsel %vm2205_vm15, %v3881_v42, %v3883_v47  ;;  %v4008_v63 = vsel %vm2380_vm0, %v4005_v24, %v4007_v46  ;;  %v4096_v21 = vadd.f32 %v4080_v44, %v4060_v16  ;;  %v3885_v29 = vrot.slane %v3835_v33, 1 }
 0x278   : > { %v3937_v23 = vadd.f32 %v3884_v39, %v3813_v55  ;;  %v4009_v57 = vrot.slane %v3959_v2, 2  ;;  %v4164_v48 = vrot.slane %v4116_v38, 1  ;;  %v4288_v8 = vrot.slane %v4240_v5, 2 }
 0x279   : > { %v3611_v38 = vadd.s32 2, %v8474_v15 }
 0x27a   : > { %v4061_v61 = vadd.f32 %v4008_v63, %v3937_v23 }
 0x27b   : > { %v3439_v26 = vpop.f32.mrb[8].mxu1  ;;  %vm3624_vm7 = vcmp.ge.s32.totalorder %v3611_v38, 0  ;;  %vm3634_vm8 = vcmp.lt.s32.totalorder %v3611_v38, 16 }
 0x27c   : > { %v3552_v3 = vadd.f32 %v9811_v59, %v3439_v26  ;;  %v5263_v58 = vpop.f32.mrb[9].mxu1  ;;  %vm8590_vm4 = vmand %vm3624_vm7, %vm3634_vm8 }
 0x27d   : > { %v3442_v11 = vpop.f32.mrb[10].mxu1  ;;  %vm3661_vm9 = vmand %vm8590_vm4, %vm3652_vm11 }
 0x27e   : > { %v3582_v62 = vmax.f32 %v3552_v3, 0.0  ;;  %v3553_v53 = vadd.f32 %v9811_v59, %v3442_v11  ;;  %v5264_v40 = vpop.f32.mrb[11].mxu1  ;;  %vm3696_vm13 = vmand %vm8590_vm4, %vm3687_vm2 }
 0x280   : > { %v3782_v1 = vsel %vm8527_vm1, %v3582_v62, 0.0  ;;  %v3583_v45 = vmax.f32 %v3553_v53, 0.0 }
 0x281   : > { %v3836_v41 = vmul.f32 %v8499_v14, %v3782_v1  ;;  %v3960_v42 = vmul.f32 %v8503_v52, %v3782_v1  ;;  %v4081_v17 = vmul.f32 %v8542_v51, %v3782_v1  ;;  %v3815_v4 = vmul.f32 %v8511_v50, %v3782_v1 }
 0x282   : > { %v4117_v7 = vmul.f32 %v8552_v43, %v3782_v1  ;;  %v4241_v24 = vmul.f32 %v8556_v20, %v3782_v1  ;;  %v3783_v49 = vsel %vm3693_vm6, %v3583_v45, 0.0 }
 0x283   : > { %v3886_v30 = vrot.slane %v3836_v41, 1  ;;  %v4010_v6 = vrot.slane %v3960_v42, 2  ;;  %v4097_v16 = vadd.f32 %v4081_v17, %v4061_v61  ;;  %v3837_v36 = vmul.f32 %v8499_v14, %v3783_v49 }
 0x284   : > { %v4165_v19 = vrot.slane %v4117_v7, 1  ;;  %v4289_v32 = vrot.slane %v4241_v24, 2  ;;  %v3961_v25 = vmul.f32 %v8503_v52, %v3783_v49  ;;  %v4118_v56 = vmul.f32 %v8552_v43, %v3783_v49 }
 0x285   : > { %v3887_v28 = vsel %vm2205_vm15, %v3885_v29, %v3886_v30  ;;  %v4011_v35 = vsel %vm2380_vm0, %v4009_v57, %v4010_v6  ;;  %v3888_v37 = vrot.slane %v3837_v36, 1  ;;  %v4242_v12 = vmul.f32 %v8556_v20, %v3783_v49  ;;  %v9824_v29 = vld [vmem:[#allocation18_spill] sm:$0xff] }
 0x286   : > { %v3938_v60 = vadd.f32 %v3887_v28, %v3814_v18  ;;  %v4012_v22 = vrot.slane %v3961_v25, 2  ;;  %v4167_v54 = vrot.slane %v4118_v56, 1  ;;  %v4166_v9 = vsel %vm2205_vm15, %v4164_v48, %v4165_v19 }
 0x287   : > { %v3889_v34 = vsel %vm2205_vm15, %v3886_v30, %v3888_v37  ;;  %v4291_v47 = vrot.slane %v4242_v12, 2  ;;  %v4220_v46 = vadd.f32 %v4166_v9, %v4096_v21  ;;  %v4290_v55 = vsel %vm2380_vm0, %v4288_v8, %v4289_v32 }
 0x288   : > { %v4062_v44 = vadd.f32 %v4011_v35, %v3938_v60  ;;  %v3939_v39 = vadd.f32 %v3889_v34, %v3815_v4  ;;  %v4013_v63 = vsel %vm2380_vm0, %v4010_v6, %v4012_v22  ;;  %v4168_v23 = vsel %vm2205_vm15, %v4165_v19, %v4167_v54 }
 0x289   : > { %v4221_v61 = vadd.f32 %v4168_v23, %v4097_v16  ;;  %v4292_v33 = vsel %vm2380_vm0, %v4289_v32, %v4291_v47  ;;  %v4344_v26 = vadd.f32 %v4290_v55, %v4220_v46  ;;  %v8602_v57 = vrot.slane %v9824_v29, %v9817_v27 }
 0x28a   : > { %v4063_v2 = vadd.f32 %v4013_v63, %v3939_v39  ;;  %v8606_v48 = vrot.slane %v9824_v29, %v9812_v0  ;;  %v3612_v8 = vadd.s32 3, %v8474_v15  ;;  %v8614_v4 = vrot.slane %v9824_v29, %v9814_v10 }
 0x28b   : > { %v4345_v3 = vadd.f32 %v4292_v33, %v4221_v61 }
 0x28c   : > { %vm3625_vm10 = vcmp.ge.s32.totalorder %v3612_v8, 0  ;;  %vm3635_vm12 = vcmp.lt.s32.totalorder %v3612_v8, 16 }
 0x28d   : > { %vm8667_vm14 = vmand %vm3625_vm10, %vm3635_vm12 }
 0x28e   : > { %vm3664_vm1 = vmand %vm8667_vm14, %vm3652_vm11 }
 0x28f   : > { %vm3699_vm6 = vmand %vm8667_vm14, %vm3687_vm2 }
 0x294   : > { %v3447_v58 = vpop.f32.mrb[12].mxu1 }
 0x295   : > { %v3554_v5 = vadd.f32 %v9811_v59, %v3447_v58  ;;  %v5267_v11 = vpop.f32.mrb[13].mxu1 }
 0x296   : > { %v3450_v62 = vpop.f32.mrb[14].mxu1 }
 0x297   : > { %v3584_v53 = vmax.f32 %v3554_v5, 0.0  ;;  %v3555_v40 = vadd.f32 %v9811_v59, %v3450_v62  ;;  %v5268_v18 = vpop.f32.mrb[15].mxu1 }
 0x299   : > { %v3784_v1 = vsel %vm3661_vm9, %v3584_v53, 0.0  ;;  %v3585_v45 = vmax.f32 %v3555_v40, 0.0 }
 0x29a   : > { %v3838_v41 = vmul.f32 %v8499_v14, %v3784_v1  ;;  %v3962_v42 = vmul.f32 %v8503_v52, %v3784_v1  ;;  %v4119_v17 = vmul.f32 %v8552_v43, %v3784_v1  ;;  %v4082_v27 = vmul.f32 %v8542_v51, %v3784_v1 }
 0x29b   : > { %v4243_v7 = vmul.f32 %v8556_v20, %v3784_v1  ;;  %v8620_v0 = vsel %vm8590_vm4, %v3585_v45, 0.0  ;;  %v4364_v24 = vmul.f32 %v8602_v57, %v3784_v1  ;;  %v4400_v16 = vmul.f32 %v8606_v48, %v3784_v1 }
 0x29c   : > { %v3890_v49 = vrot.slane %v3838_v41, 1  ;;  %v4169_v30 = vrot.slane %v4119_v17, 1  ;;  %v8625_v6 = vmul.f32 %v8499_v14, %v8620_v0  ;;  %v8630_v36 = vmul.f32 %v8503_v52, %v8620_v0 }
 0x29d   : > { %v4293_v10 = vrot.slane %v4243_v7, 2  ;;  %v4083_v19 = vmul.f32 %v8542_v51, %v8620_v0  ;;  %v8636_v32 = vmul.f32 %v8552_v43, %v8620_v0  ;;  %v8641_v56 = vmul.f32 %v8556_v20, %v8620_v0 }
 0x29e   : > { %v3891_v25 = vrot.slane %v8625_v6, 1  ;;  %v4365_v28 = vmul.f32 %v8602_v57, %v8620_v0  ;;  %v4380_v35 = vadd.f32 %v4364_v24, %v4344_v26  ;;  %v4015_v37 = vrot.slane %v8630_v36, 2 }
 0x29f   : > { %v4099_v12 = vadd.f32 %v4083_v19, %v4063_v2  ;;  %v4170_v60 = vrot.slane %v8636_v32, 1  ;;  %v4401_v22 = vmul.f32 %v8606_v48, %v8620_v0  ;;  %v4294_v54 = vrot.slane %v8641_v56, 2 }
 0x2a0   : > { %v4381_v9 = vadd.f32 %v4365_v28, %v4345_v3  ;;  %v4448_v34 = vrot.slane %v4400_v16, 1  ;;  %v4524_v47 = vmul.f32 %v8614_v4, %v3784_v1  ;;  %v4525_v55 = vmul.f32 %v8614_v4, %v8620_v0 }
 0x2a1   : > { %v4449_v46 = vrot.slane %v4401_v22, 1  ;;  %v4098_v39 = vadd.f32 %v4082_v27, %v4062_v44  ;;  %v4171_v63 = vsel %vm2205_vm15, %v4169_v30, %v4170_v60  ;;  %v4295_v61 = vsel %vm2380_vm0, %v4293_v10, %v4294_v54 }
 0x2a2   : > { %v4572_v23 = vrot.slane %v4524_v47, 2  ;;  %v3816_v33 = vmul.f32 %v8511_v50, %v3784_v1  ;;  %v3892_v26 = vsel %vm2205_vm15, %v3890_v49, %v3891_v25  ;;  %v4573_v38 = vrot.slane %v4525_v55, 2 }
 0x2a3   : > { %v4450_v2 = vsel %vm2205_vm15, %v4448_v34, %v4449_v46  ;;  %v4222_v3 = vadd.f32 %v4171_v63, %v4098_v39  ;;  %v4014_v58 = vrot.slane %v3962_v42, 2  ;;  %v3817_v28 = vmul.f32 %v8511_v50, %v8620_v0 }
 0x2a4   : > { %v4504_v5 = vadd.f32 %v4450_v2, %v4380_v35  ;;  %v3940_v11 = vadd.f32 %v3892_v26, %v3816_v33  ;;  %v4574_v44 = vsel %vm2380_vm0, %v4572_v23, %v4573_v38 }
 0x2a5   : > { %v4346_v53 = vadd.f32 %v4295_v61, %v4222_v3  ;;  %v4016_v40 = vsel %vm2380_vm0, %v4014_v58, %v4015_v37 }
 0x2a6   : > { %v3455_v62 = vpop.f32.mrb[16].mxu1  ;;  %v4628_v1 = vadd.f32 %v4574_v44, %v4504_v5  ;;  %v4064_v45 = vadd.f32 %v4016_v40, %v3940_v11 }
 0x2a7   : > { %v3556_v18 = vadd.f32 %v9811_v59, %v3455_v62  ;;  %v5271_v29 = vpop.f32.mrb[17].mxu1 }
 0x2a8   : > { %v3458_v41 = vpop.f32.mrb[18].mxu1 }
 0x2a9   : > { %v3586_v42 = vmax.f32 %v3556_v18, 0.0  ;;  %v3557_v17 = vadd.f32 %v9811_v59, %v3458_v41  ;;  %v5272_v7 = vpop.f32.mrb[19].mxu1 }
 0x2ab   : > { %v3786_v24 = vsel %vm3696_vm13, %v3586_v42, 0.0  ;;  %v3587_v49 = vmax.f32 %v3557_v17, 0.0 }
 0x2ac   : > { %v3840_v30 = vmul.f32 %v8499_v14, %v3786_v24  ;;  %v3964_v6 = vmul.f32 %v8503_v52, %v3786_v24  ;;  %v4121_v16 = vmul.f32 %v8552_v43, %v3786_v24  ;;  %v4245_v21 = vmul.f32 %v8556_v20, %v3786_v24 }
 0x2ad   : > { %v4402_v8 = vmul.f32 %v8606_v48, %v3786_v24  ;;  %v4526_v10 = vmul.f32 %v8614_v4, %v3786_v24  ;;  %v3787_v22 = vsel %vm3664_vm1, %v3587_v49, 0.0 }
 0x2ae   : > { %v3893_v36 = vrot.slane %v3840_v30, 1  ;;  %v4017_v19 = vrot.slane %v3964_v6, 2  ;;  %v4172_v32 = vrot.slane %v4121_v16, 1  ;;  %v4296_v56 = vrot.slane %v4245_v21, 2 }
 0x2af   : > { %v4451_v35 = vrot.slane %v4402_v8, 1  ;;  %v4575_v34 = vrot.slane %v4526_v10, 2  ;;  %v4366_v0 = vmul.f32 %v8602_v57, %v3787_v22  ;;  %v8702_v62 = vmul.f32 %v8503_v52, %v3787_v22 }
 0x2b0   : > { %v3894_v47 = vsel %vm2205_vm15, %v3891_v25, %v3893_v36  ;;  %v4018_v55 = vsel %vm2380_vm0, %v4015_v37, %v4017_v19  ;;  %v4173_v39 = vsel %vm2205_vm15, %v4170_v60, %v4172_v32  ;;  %v4297_v63 = vsel %vm2380_vm0, %v4294_v54, %v4296_v56 }
 0x2b1   : > { %v3941_v23 = vadd.f32 %v3894_v47, %v3817_v28  ;;  %v4223_v61 = vadd.f32 %v4173_v39, %v4099_v12  ;;  %v4452_v33 = vsel %vm2205_vm15, %v4449_v46, %v4451_v35  ;;  %v4576_v2 = vsel %vm2380_vm0, %v4573_v38, %v4575_v34 }
 0x2b2   : > { %v4505_v26 = vadd.f32 %v4452_v33, %v4381_v9  ;;  %v4084_v25 = vmul.f32 %v8542_v51, %v3787_v22  ;;  %v4382_v37 = vadd.f32 %v4366_v0, %v4346_v53  ;;  %v8696_v60 = vmul.f32 %v8499_v14, %v3787_v22 }
 0x2b3   : > { %v4347_v3 = vadd.f32 %v4297_v63, %v4223_v61  ;;  %v8690_v58 = vadd.f32 %v4018_v55, %v3941_v23  ;;  %v3613_v12 = vadd.s32 4, %v8474_v15  ;;  %v4403_v46 = vmul.f32 %v8606_v48, %v3787_v22 }
 0x2b4   : > { %v4629_v5 = vadd.f32 %v4576_v2, %v4505_v26  ;;  %v8693_v11 = vadd.f32 %v4084_v25, %v4064_v45  ;;  %v4527_v38 = vmul.f32 %v8614_v4, %v3787_v22  ;;  %v8706_v53 = vmul.f32 %v8552_v43, %v3787_v22 }
 0x2b5   : > { %v3895_v29 = vrot.slane %v8696_v60, 1  ;;  %vm3626_vm3 = vcmp.ge.s32.totalorder %v3613_v12, 0  ;;  %vm3636_vm5 = vcmp.lt.s32.totalorder %v3613_v12, 16  ;;  %v4453_v42 = vrot.slane %v4403_v46, 1 }
 0x2b6   : > { %v4644_v54 = vpack.c.bf16 %v4629_v5, %v4628_v1  ;;  %v4577_v17 = vrot.slane %v4527_v38, 2  ;;  %v8715_v7 = vmul.f32 %v8556_v20, %v3787_v22  ;;  %v3818_v24 = vmul.f32 %v8511_v50, %v3787_v22  ;;  %vm8742_vm7 = vmand %vm3626_vm3, %vm3636_vm5 }
 0x2b7   : > { %v4174_v6 = vrot.slane %v8706_v53, 1  ;;  %v4019_v16 = vrot.slane %v8702_v62, 2  ;;  %vm3667_vm8 = vmand %vm8742_vm7, %vm3652_vm11 }
 0x2b8   : > { %v3463_v9 = vpop.f32.mrb[20].mxu1  ;;  %5329 = vmatprep.mubr.bf16.mxu0 %v4644_v54  ;;  %vm3702_vm10 = vmand %vm8742_vm7, %vm3687_vm2 }
 0x2b9   : > { %v3558_v44 = vadd.f32 %v9811_v59, %v3463_v9  ;;  %v5275_v40 = vpop.f32.mrb[21].mxu1 }
 0x2ba   : > { %v3466_v18 = vpop.f32.mrb[22].mxu1 }
 0x2bb   : > { %v3588_v45 = vmax.f32 %v3558_v44, 0.0  ;;  %v3559_v1 = vadd.f32 %v9811_v59, %v3466_v18  ;;  %v5276_v41 = vpop.f32.mrb[23].mxu1 }
 0x2bd   : > { %v3788_v49 = vsel %vm8667_vm14, %v3588_v45, 0.0  ;;  %v3589_v30 = vmax.f32 %v3559_v1, 0.0 }
 0x2be   : > { %v3819_v21 = vmul.f32 %v8511_v50, %v3788_v49  ;;  %v3842_v8 = vmul.f32 %v8499_v14, %v3788_v49  ;;  %v3966_v10 = vmul.f32 %v8503_v52, %v3788_v49  ;;  %v4367_v36 = vmul.f32 %v8602_v57, %v3788_v49 }
 0x2bf   : > { %v3789_v19 = vsel %vm3699_vm6, %v3589_v30, 0.0  ;;  %v4404_v32 = vmul.f32 %v8606_v48, %v3788_v49  ;;  %v4528_v56 = vmul.f32 %v8614_v4, %v3788_v49  ;;  %v4085_v27 = vmul.f32 %v8542_v51, %v3788_v49 }
 0x2c0   : > { %v3843_v28 = vmul.f32 %v8499_v14, %v3789_v19  ;;  %v3896_v35 = vrot.slane %v3842_v8, 1  ;;  %v3967_v22 = vmul.f32 %v8503_v52, %v3789_v19  ;;  %v4020_v34 = vrot.slane %v3966_v10, 2 }
 0x2c1   : > { %v4124_v47 = vmul.f32 %v8552_v43, %v3789_v19  ;;  %v4248_v55 = vmul.f32 %v8556_v20, %v3789_v19  ;;  %v4405_v39 = vmul.f32 %v8606_v48, %v3789_v19  ;;  %v4529_v63 = vmul.f32 %v8614_v4, %v3789_v19 }
 0x2c2   : > { %v3898_v23 = vrot.slane %v3843_v28, 1  ;;  %v4022_v61 = vrot.slane %v3967_v22, 2  ;;  %v4383_v33 = vadd.f32 %v4367_v36, %v4347_v3  ;;  %v4454_v26 = vrot.slane %v4404_v32, 1 }
 0x2c3   : > { %v4177_v2 = vrot.slane %v4124_v47, 1  ;;  %v4301_v0 = vrot.slane %v4248_v55, 2  ;;  %v4456_v25 = vrot.slane %v4405_v39, 1  ;;  %v4580_v5 = vrot.slane %v4529_v63, 2 }
 0x2c4   : > { %v3899_v60 = vsel %vm2205_vm15, %v3896_v35, %v3898_v23  ;;  %v4023_v54 = vsel %vm2380_vm0, %v4020_v34, %v4022_v61  ;;  %v4455_v9 = vsel %vm2205_vm15, %v4453_v42, %v4454_v26  ;;  %v4578_v46 = vrot.slane %v4528_v56, 2 }
 0x2c5   : > { %v3943_v38 = vadd.f32 %v3899_v60, %v3819_v21  ;;  %v4457_v62 = vsel %vm2205_vm15, %v4454_v26, %v4456_v25  ;;  %v4506_v44 = vadd.f32 %v4455_v9, %v4382_v37  ;;  %v4101_v40 = vadd.f32 %v4085_v27, %v8690_v58 }
 0x2c6   : > { %v4507_v53 = vadd.f32 %v4457_v62, %v4383_v33  ;;  %v4579_v18 = vsel %vm2380_vm0, %v4577_v17, %v4578_v46  ;;  %v4581_v45 = vsel %vm2380_vm0, %v4578_v46, %v4580_v5  ;;  %v4123_v1 = vmul.f32 %v8552_v43, %v3788_v49 }
 0x2c7   : > { %v3471_v41 = vpop.f32.mrb[24].mxu1  ;;  %v4630_v42 = vadd.f32 %v4579_v18, %v4506_v44  ;;  %v4247_v30 = vmul.f32 %v8556_v20, %v3788_v49  ;;  %v3897_v37 = vsel %vm2205_vm15, %v3895_v29, %v3896_v35  ;;  %v4021_v58 = vsel %vm2380_vm0, %v4019_v16, %v4020_v34 }
 0x2c8   : > { %v3560_v12 = vadd.f32 %v9811_v59, %v3471_v41  ;;  %v5279_v21 = vpop.f32.mrb[25].mxu1  ;;  %v4631_v8 = vadd.f32 %v4581_v45, %v4507_v53  ;;  %v4175_v10 = vrot.slane %v4123_v1, 1  ;;  %v3942_v36 = vadd.f32 %v3897_v37, %v3818_v24 }
 0x2c9   : > { %v3474_v17 = vpop.f32.mrb[26].mxu1  ;;  %v4298_v19 = vrot.slane %v8715_v7, 2  ;;  %v4299_v32 = vrot.slane %v4247_v30, 2  ;;  %v4067_v49 = vadd.f32 %v4023_v54, %v3943_v38  ;;  %v3614_v23 = vadd.s32 5, %v8474_v15 }
 0x2ca   : > { %v3590_v56 = vmax.f32 %v3560_v12, 0.0  ;;  %v3561_v29 = vadd.f32 %v9811_v59, %v3474_v17  ;;  %v5280_v16 = vpop.f32.mrb[27].mxu1  ;;  %v4645_v27 = vpack.c.bf16 %v4631_v8, %v4630_v42  ;;  %v4176_v28 = vsel %vm2205_vm15, %v4174_v6, %v4175_v10 }
 0x2cb   : > { %v4178_v35 = vsel %vm2205_vm15, %v4175_v10, %v4177_v2  ;;  %v4224_v24 = vadd.f32 %v4176_v28, %v8693_v11  ;;  %v4300_v22 = vsel %vm2380_vm0, %v4298_v19, %v4299_v32  ;;  %v4302_v34 = vsel %vm2380_vm0, %v4299_v32, %v4301_v0 }
 0x2cc   : > { %v3790_v47 = vsel %vm3667_vm8, %v3590_v56, 0.0  ;;  %v3591_v55 = vmax.f32 %v3561_v29, 0.0  ;;  %5330 = vmatmul.mubr.bf16.vlgmr.msra.gmra.mrb[36].mxu0 %v4645_v27  ;;  %v4225_v7 = vadd.f32 %v4178_v35, %v4101_v40  ;;  %v4066_v39 = vadd.f32 %v4021_v58, %v3942_v36 }
 0x2cd   : > { %v3844_v63 = vmul.f32 %v8499_v14, %v3790_v47  ;;  %v4348_v61 = vadd.f32 %v4300_v22, %v4224_v24  ;;  %v4368_v6 = vmul.f32 %v8602_v57, %v3790_v47  ;;  %v4406_v26 = vmul.f32 %v8606_v48, %v3790_v47 }
 0x2ce   : > { %v8769_v33 = vsel %vm8742_vm7, %v3591_v55, 0.0  ;;  %v4349_v11 = vadd.f32 %v4302_v34, %v4225_v7  ;;  %v4530_v2 = vmul.f32 %v8614_v4, %v3790_v47  ;;  %v3968_v25 = vmul.f32 %v8503_v52, %v3790_v47 }
 0x2cf   : > { %v3900_v0 = vrot.slane %v3844_v63, 1  ;;  %v8776_v5 = vmul.f32 %v8499_v14, %v8769_v33  ;;  %v8780_v60 = vmul.f32 %v8503_v52, %v8769_v33  ;;  %v4369_v54 = vmul.f32 %v8602_v57, %v8769_v33 }
 0x2d0   : > { %v4384_v9 = vadd.f32 %v4368_v6, %v4348_v61  ;;  %v8786_v46 = vmul.f32 %v8606_v48, %v8769_v33  ;;  %v4458_v38 = vrot.slane %v4406_v26, 1  ;;  %v8792_v40 = vmul.f32 %v8614_v4, %v8769_v33 }
 0x2d1   : > { %v3901_v62 = vrot.slane %v8776_v5, 1  ;;  %v4025_v44 = vrot.slane %v8780_v60, 2  ;;  %v4582_v53 = vrot.slane %v4530_v2, 2  ;;  %v8794_v18 = vadd.f32 %v4369_v54, %v4349_v11 }
 0x2d2   : > { %v4459_v45 = vrot.slane %v8786_v46, 1  ;;  %v4086_v1 = vmul.f32 %v8542_v51, %v3790_v47  ;;  %v4087_v41 = vmul.f32 %v8542_v51, %v8769_v33  ;;  %v4583_v42 = vrot.slane %v8792_v40, 2 }
 0x2d3   : > { %v4125_v30 = vmul.f32 %v8552_v43, %v3790_v47  ;;  %v4126_v37 = vmul.f32 %v8552_v43, %v8769_v33  ;;  %v4249_v58 = vmul.f32 %v8556_v20, %v3790_v47  ;;  %v4250_v10 = vmul.f32 %v8556_v20, %v8769_v33 }
 0x2d4   : > { %v4460_v12 = vsel %vm2205_vm15, %v4458_v38, %v4459_v45  ;;  %v4102_v21 = vadd.f32 %v4086_v1, %v4066_v39  ;;  %v4103_v8 = vadd.f32 %v4087_v41, %v4067_v49  ;;  %v4584_v17 = vsel %vm2380_vm0, %v4582_v53, %v4583_v42 }
 0x2d5   : > { %v4508_v36 = vadd.f32 %v4460_v12, %v4384_v9  ;;  %v4179_v19 = vrot.slane %v4125_v30, 1  ;;  %v4180_v32 = vrot.slane %v4126_v37, 1  ;;  %v4303_v56 = vrot.slane %v4249_v58, 2 }
 0x2d6   : > { %v4304_v29 = vrot.slane %v4250_v10, 2  ;;  %v3820_v16 = vmul.f32 %v8511_v50, %v3790_v47  ;;  %v3902_v27 = vsel %vm2205_vm15, %v3900_v0, %v3901_v62  ;;  %vm3627_vm4 = vcmp.ge.s32.totalorder %v3614_v23, 0 }
 0x2d7   : > { %v4632_v28 = vadd.f32 %v4584_v17, %v4508_v36  ;;  %v4181_v35 = vsel %vm2205_vm15, %v4179_v19, %v4180_v32  ;;  %v4024_v24 = vrot.slane %v3968_v25, 2  ;;  %vm3637_vm9 = vcmp.lt.s32.totalorder %v3614_v23, 16 }
 0x2d8   : > { %v3479_v49 = vpop.f32.mrb[28].mxu1  ;;  %v4226_v22 = vadd.f32 %v4181_v35, %v4102_v21  ;;  %v4305_v34 = vsel %vm2380_vm0, %v4303_v56, %v4304_v29  ;;  %v3944_v55 = vadd.f32 %v3902_v27, %v3820_v16  ;;  %vm8821_vm12 = vmand %vm3627_vm4, %vm3637_vm9  ;;  %v3821_v41 = vmul.f32 %v8511_v50, %v8769_v33 }
 0x2d9   : > { %v3562_v7 = vadd.f32 %v9811_v59, %v3479_v49  ;;  %v5283_v39 = vpop.f32.mrb[29].mxu1  ;;  %v4026_v63 = vsel %vm2380_vm0, %v4024_v24, %v4025_v44  ;;  %vm3670_vm13 = vmand %vm8821_vm12, %vm3652_vm11 }
 0x2da   : > { %v3482_v47 = vpop.f32.mrb[30].mxu1  ;;  %v4350_v61 = vadd.f32 %v4305_v34, %v4226_v22  ;;  %v4068_v6 = vadd.f32 %v4026_v63, %v3944_v55  ;;  %vm3705_vm3 = vmand %vm8821_vm12, %vm3687_vm2 }
 0x2db   : > { %v3592_v11 = vmax.f32 %v3562_v7, 0.0  ;;  %v3563_v26 = vadd.f32 %v9811_v59, %v3482_v47  ;;  %v5284_v0 = vpop.f32.mrb[31].mxu1  ;;  %v8869_v47 = vadd.s32 7, %v8474_v15 }
 0x2dd   : > { %v3792_v25 = vsel %vm3702_vm10, %v3592_v11, 0.0  ;;  %v3593_v5 = vmax.f32 %v3563_v26, 0.0  ;;  %vm3629_vm7 = vcmp.ge.s32.totalorder %v8869_v47, 0  ;;  %vm3639_vm8 = vcmp.lt.s32.totalorder %v8869_v47, 16 }
 0x2de   : > { %v3846_v60 = vmul.f32 %v8499_v14, %v3792_v25  ;;  %v3970_v54 = vmul.f32 %v8503_v52, %v3792_v25  ;;  %v4127_v3 = vmul.f32 %v8552_v43, %v3792_v25  ;;  %v4251_v9 = vmul.f32 %v8556_v20, %v3792_v25  ;;  %vm8976_vm4 = vmand %vm3629_vm7, %vm3639_vm8 }
 0x2df   : > { %v4408_v23 = vmul.f32 %v8606_v48, %v3792_v25  ;;  %v4532_v46 = vmul.f32 %v8614_v4, %v3792_v25  ;;  %v3793_v37 = vsel %vm3670_vm13, %v3593_v5, 0.0  ;;  %v8877_v25 = vadd.s32 9, %v8474_v15  ;;  %vm3676_vm10 = vmand %vm8976_vm4, %vm3652_vm11 }
 0x2e0   : > { %v3903_v38 = vrot.slane %v3846_v60, 1  ;;  %v4027_v40 = vrot.slane %v3970_v54, 2  ;;  %v4182_v53 = vrot.slane %v4127_v3, 1  ;;  %v4306_v1 = vrot.slane %v4251_v9, 2 }
 0x2e1   : > { %v4461_v30 = vrot.slane %v4408_v23, 1  ;;  %v4585_v58 = vrot.slane %v4532_v46, 2  ;;  %v4370_v33 = vmul.f32 %v8602_v57, %v3793_v37  ;;  %v4533_v22 = vmul.f32 %v8614_v4, %v3793_v37 }
 0x2e2   : > { %v3904_v12 = vsel %vm2205_vm15, %v3901_v62, %v3903_v38  ;;  %v4028_v21 = vsel %vm2380_vm0, %v4025_v44, %v4027_v40  ;;  %v4183_v10 = vsel %vm2205_vm15, %v4180_v32, %v4182_v53  ;;  %v4307_v36 = vsel %vm2380_vm0, %v4304_v29, %v4306_v1 }
 0x2e3   : > { %v3945_v17 = vadd.f32 %v3904_v12, %v3821_v41  ;;  %v4462_v19 = vsel %vm2205_vm15, %v4459_v45, %v4461_v30  ;;  %v4586_v56 = vsel %vm2380_vm0, %v4583_v42, %v4585_v58  ;;  %v4227_v27 = vadd.f32 %v4183_v10, %v4103_v8 }
 0x2e4   : > { %v4509_v16 = vadd.f32 %v4462_v19, %v8794_v18  ;;  %v4088_v62 = vmul.f32 %v8542_v51, %v3793_v37  ;;  %v8848_v49 = vadd.f32 %v4370_v33, %v4350_v61  ;;  %v3615_v45 = vadd.s32 6, %v8474_v15 }
 0x2e5   : > { %v8845_v35 = vadd.f32 %v4028_v21, %v3945_v17  ;;  %v4351_v44 = vadd.f32 %v4307_v36, %v4227_v27  ;;  %v8854_v42 = vmul.f32 %v8499_v14, %v3793_v37  ;;  %v4409_v8 = vmul.f32 %v8606_v48, %v3793_v37 }
 0x2e6   : > { %v4633_v24 = vadd.f32 %v4586_v56, %v4509_v16  ;;  %v8850_v32 = vadd.f32 %v4088_v62, %v4068_v6  ;;  %v8859_v34 = vmul.f32 %v8552_v43, %v3793_v37  ;;  %v8862_v55 = vmul.f32 %v8503_v52, %v3793_v37 }
 0x2e7   : > { %v8866_v39 = vmul.f32 %v8556_v20, %v3793_v37  ;;  %vm3628_vm14 = vcmp.ge.s32.totalorder %v3615_v45, 0  ;;  %vm3638_vm1 = vcmp.lt.s32.totalorder %v3615_v45, 16  ;;  %v8872_v61 = vadd.s32 8, %v8474_v15 }
 0x2e8   : > { %v4646_v29 = vpack.c.bf16 %v4633_v24, %v4632_v28  ;;  %v3905_v6 = vrot.slane %v8854_v42, 1  ;;  %v4463_v5 = vrot.slane %v4409_v8, 1  ;;  %v4587_v60 = vrot.slane %v4533_v22, 2  ;;  %vm8906_vm5 = vmand %vm3628_vm14, %vm3638_vm1 }
 0x2e9   : > { %v4184_v54 = vrot.slane %v8859_v34, 1  ;;  %v3822_v3 = vmul.f32 %v8511_v50, %v3793_v37  ;;  %v4308_v46 = vrot.slane %v8866_v39, 2  ;;  %v4029_v15 = vrot.slane %v8862_v55, 2  ;;  %vm8921_vm6 = vmand %vm8906_vm5, %vm3652_vm11 }
 0x2ea   : > { %5333 = vmatprep.mubr.bf16.mxu0 %v4646_v29  ;;  %vm8984_vm9 = vmand %vm8906_vm5, %vm3687_vm2  ;;  %vm3640_vm13 = vcmp.lt.s32.totalorder %v8872_v61, 16 }
 0x2eb   : > { %vm3711_vm14 = vmand %vm8976_vm4, %vm3687_vm2 }
 0x2f7   : > { %v3487_v18 = vpop.f32.mrb[32].mxu1 }
 0x2f8   : > { %v3564_v7 = vadd.f32 %v9811_v59, %v3487_v18  ;;  %v5287_v28 = vpop.f32.mrb[33].mxu1 }
 0x2f9   : > { %v3490_v63 = vpop.f32.mrb[34].mxu1 }
 0x2fa   : > { %v3594_v11 = vmax.f32 %v3564_v7, 0.0  ;;  %v3565_v26 = vadd.f32 %v9811_v59, %v3490_v63  ;;  %v5288_v0 = vpop.f32.mrb[35].mxu1 }
 0x2fc   : > { %v3794_v9 = vsel %vm8821_vm12, %v3594_v11, 0.0  ;;  %v3595_v23 = vmax.f32 %v3565_v26, 0.0  ;;  %vm3630_vm12 = vcmp.ge.s32.totalorder %v8872_v61, 0 }
 0x2fd   : > { %v3823_v38 = vmul.f32 %v8511_v50, %v3794_v9  ;;  %v3848_v40 = vmul.f32 %v8499_v14, %v3794_v9  ;;  %v3972_v53 = vmul.f32 %v8503_v52, %v3794_v9  ;;  %v4371_v1 = vmul.f32 %v8602_v57, %v3794_v9  ;;  %vm9077_vm1 = vmand %vm3630_vm12, %vm3640_vm13 }
 0x2fe   : > { %v3795_v41 = vsel %vm3705_vm3, %v3595_v23, 0.0  ;;  %v4410_v30 = vmul.f32 %v8606_v48, %v3794_v9  ;;  %v4534_v37 = vmul.f32 %v8614_v4, %v3794_v9  ;;  %v4089_v2 = vmul.f32 %v8542_v51, %v3794_v9  ;;  %vm9136_vm7 = vmand %vm9077_vm1, %vm3687_vm2 }
 0x2ff   : > { %v3849_v58 = vmul.f32 %v8499_v14, %v3795_v41  ;;  %v3906_v12 = vrot.slane %v3848_v40, 1  ;;  %v3973_v21 = vmul.f32 %v8503_v52, %v3795_v41  ;;  %v4030_v10 = vrot.slane %v3972_v53, 2 }
 0x300   : > { %v4130_v36 = vmul.f32 %v8552_v43, %v3795_v41  ;;  %v4254_v17 = vmul.f32 %v8556_v20, %v3795_v41  ;;  %v4411_v19 = vmul.f32 %v8606_v48, %v3795_v41  ;;  %v4387_v56 = vadd.f32 %v4371_v1, %v4351_v44 }
 0x301   : > { %v3908_v16 = vrot.slane %v3849_v58, 1  ;;  %v4032_v27 = vrot.slane %v3973_v21, 2  ;;  %v4464_v33 = vrot.slane %v4410_v30, 1  ;;  %v4535_v62 = vmul.f32 %v8614_v4, %v3795_v41 }
 0x302   : > { %v4187_v24 = vrot.slane %v4130_v36, 1  ;;  %v4311_v29 = vrot.slane %v4254_v17, 2  ;;  %v4466_v42 = vrot.slane %v4411_v19, 1  ;;  %v4588_v18 = vrot.slane %v4534_v37, 2 }
 0x303   : > { %v3909_v8 = vsel %vm2205_vm15, %v3906_v12, %v3908_v16  ;;  %v4033_v22 = vsel %vm2380_vm0, %v4030_v10, %v4032_v27  ;;  %v4465_v44 = vsel %vm2205_vm15, %v4463_v5, %v4464_v33  ;;  %v4590_v7 = vrot.slane %v4535_v62, 2 }
 0x304   : > { %v3947_v28 = vadd.f32 %v3909_v8, %v3823_v38  ;;  %v4467_v11 = vsel %vm2205_vm15, %v4464_v33, %v4466_v42  ;;  %v4510_v26 = vadd.f32 %v4465_v44, %v8848_v49  ;;  %v4589_v0 = vsel %vm2380_vm0, %v4587_v60, %v4588_v18 }
 0x305   : > { %v3495_v63 = vpop.f32.mrb[36].mxu1  ;;  %v4511_v53 = vadd.f32 %v4467_v11, %v4387_v56  ;;  %v4591_v45 = vsel %vm2380_vm0, %v4588_v18, %v4590_v7  ;;  %v4105_v1 = vadd.f32 %v4089_v2, %v8845_v35  ;;  %v4129_v60 = vmul.f32 %v8552_v43, %v3794_v9 }
 0x306   : > { %v3566_v23 = vadd.f32 %v9811_v59, %v3495_v63  ;;  %v5291_v40 = vpop.f32.mrb[37].mxu1  ;;  %v4634_v49 = vadd.f32 %v4589_v0, %v4510_v26  ;;  %v4253_v41 = vmul.f32 %v8556_v20, %v3794_v9  ;;  %v3907_v35 = vsel %vm2205_vm15, %v3905_v6, %v3906_v12 }
 0x307   : > { %v3498_v38 = vpop.f32.mrb[38].mxu1  ;;  %v4635_v58 = vadd.f32 %v4591_v45, %v4511_v53  ;;  %v3946_v21 = vadd.f32 %v3907_v35, %v3822_v3  ;;  %v4185_v36 = vrot.slane %v4129_v60, 1  ;;  %v4031_v19 = vsel %vm2380_vm0, %v4029_v15, %v4030_v10 }
 0x308   : > { %v3596_v30 = vmax.f32 %v3566_v23, 0.0  ;;  %v3567_v37 = vadd.f32 %v9811_v59, %v3498_v38  ;;  %v5292_v2 = vpop.f32.mrb[39].mxu1  ;;  %v4309_v17 = vrot.slane %v4253_v41, 2  ;;  %v4071_v56 = vadd.f32 %v4033_v22, %v3947_v28 }
 0x309   : > { %v4647_v33 = vpack.c.bf16 %v4635_v58, %v4634_v49  ;;  %v4070_v62 = vadd.f32 %v4031_v19, %v3946_v21  ;;  %v4186_v3 = vsel %vm2205_vm15, %v4184_v54, %v4185_v36  ;;  %v4188_v12 = vsel %vm2205_vm15, %v4185_v36, %v4187_v24 }
 0x30a   : > { %v3796_v16 = vsel %vm8921_vm6, %v3596_v30, 0.0  ;;  %v3597_v27 = vmax.f32 %v3567_v37, 0.0  ;;  %v4228_v10 = vadd.f32 %v4186_v3, %v8850_v32  ;;  %v4229_v42 = vadd.f32 %v4188_v12, %v4105_v1  ;;  %vm3679_vm6 = vmand %vm9077_vm1, %vm3652_vm11 }
 0x30b   : > { %v8935_v9 = vmul.f32 %v8499_v14, %v3796_v16  ;;  %v8938_v6 = vmul.f32 %v8503_v52, %v3796_v16  ;;  %5334 = vmatmul.mubr.bf16.gmra.mrb[40].mxu0 %v4647_v33  ;;  %v4310_v18 = vsel %vm2380_vm0, %v4308_v46, %v4309_v17  ;;  %v4312_v24 = vsel %vm2380_vm0, %v4309_v17, %v4311_v29 }
 0x30c   : > { %v3797_v15 = vsel %vm8906_vm5, %v3597_v27, 0.0  ;;  %v4352_v44 = vadd.f32 %v4310_v18, %v4228_v10  ;;  %v4372_v32 = vmul.f32 %v8602_v57, %v3796_v16  ;;  %v4353_v28 = vadd.f32 %v4312_v24, %v4229_v42 }
 0x30d   : > { %v3910_v8 = vrot.slane %v8935_v9, 1  ;;  %v8952_v22 = vmul.f32 %v8511_v50, %v3797_v15  ;;  %v8955_v34 = vmul.f32 %v8499_v14, %v3797_v15  ;;  %v8958_v54 = vmul.f32 %v8503_v52, %v3797_v15 }
 0x30e   : > { %v4373_v39 = vmul.f32 %v8602_v57, %v3797_v15  ;;  %v4412_v63 = vmul.f32 %v8606_v48, %v3796_v16  ;;  %v4388_v11 = vadd.f32 %v4372_v32, %v4352_v44  ;;  %v4413_v26 = vmul.f32 %v8606_v48, %v3797_v15 }
 0x30f   : > { %v3911_v46 = vrot.slane %v8955_v34, 1  ;;  %v4035_v7 = vrot.slane %v8958_v54, 2  ;;  %v4536_v0 = vmul.f32 %v8614_v4, %v3796_v16  ;;  %v4537_v23 = vmul.f32 %v8614_v4, %v3797_v15 }
 0x310   : > { %v4389_v40 = vadd.f32 %v4373_v39, %v4353_v28  ;;  %v4468_v53 = vrot.slane %v4412_v63, 1  ;;  %v4090_v45 = vmul.f32 %v8542_v51, %v3796_v16  ;;  %v4091_v1 = vmul.f32 %v8542_v51, %v3797_v15 }
 0x311   : > { %v4469_v60 = vrot.slane %v4413_v26, 1  ;;  %v4592_v41 = vrot.slane %v4536_v0, 2  ;;  %v4593_v35 = vrot.slane %v4537_v23, 2  ;;  %v4131_v47 = vmul.f32 %v8552_v43, %v3796_v16 }
 0x312   : > { %v4106_v2 = vadd.f32 %v4090_v45, %v4070_v62  ;;  %v4107_v58 = vadd.f32 %v4091_v1, %v4071_v56  ;;  %v4132_v21 = vmul.f32 %v8552_v43, %v3797_v15  ;;  %v4255_v3 = vmul.f32 %v8556_v20, %v3796_v16 }
 0x313   : > { %v3503_v29 = vpop.f32.mrb[40].mxu1  ;;  %v4470_v27 = vsel %vm2205_vm15, %v4468_v53, %v4469_v60  ;;  %v4594_v33 = vsel %vm2380_vm0, %v4592_v41, %v4593_v35  ;;  %v4189_v62 = vrot.slane %v4131_v47, 1  ;;  %v4256_v42 = vmul.f32 %v8556_v20, %v3797_v15 }
 0x314   : > { %v3568_v5 = vadd.f32 %v9811_v59, %v3503_v29  ;;  %v5295_v38 = vpop.f32.mrb[41].mxu1  ;;  %v4512_v55 = vadd.f32 %v4470_v27, %v4388_v11  ;;  %v4190_v56 = vrot.slane %v4132_v21, 1  ;;  %v9002_v18 = vmul.f32 %v8511_v50, %v3796_v16 }
 0x315   : > { %v3506_v37 = vpop.f32.mrb[42].mxu1  ;;  %vm3631_vm3 = vcmp.ge.s32.totalorder %v8877_v25, 0  ;;  %vm3641_vm5 = vcmp.lt.s32.totalorder %v8877_v25, 16 }
 0x316   : > { %v3598_v36 = vmax.f32 %v3568_v5, 0.0  ;;  %v3569_v17 = vadd.f32 %v9811_v59, %v3506_v37  ;;  %v5296_v19 = vpop.f32.mrb[43].mxu1  ;;  %v4636_v26 = vadd.f32 %v4594_v33, %v4512_v55  ;;  %v4191_v37 = vsel %vm2205_vm15, %v4189_v62, %v4190_v56  ;;  %vm9145_vm8 = vmand %vm3631_vm3, %vm3641_vm5 }
 0x318   : > { %v3798_v12 = vsel %vm8984_vm9, %v3598_v36, 0.0  ;;  %v3599_v10 = vmax.f32 %v3569_v17, 0.0 }
 0x319   : > { %v3852_v24 = vmul.f32 %v8499_v14, %v3798_v12  ;;  %v3976_v44 = vmul.f32 %v8503_v52, %v3798_v12  ;;  %v4133_v32 = vmul.f32 %v8552_v43, %v3798_v12  ;;  %v4257_v39 = vmul.f32 %v8556_v20, %v3798_v12 }
 0x31a   : > { %v4414_v28 = vmul.f32 %v8606_v48, %v3798_v12  ;;  %v9009_v63 = vsel %vm3676_vm10, %v3599_v10, 0.0  ;;  %v4538_v11 = vmul.f32 %v8614_v4, %v3798_v12 }
 0x31b   : > { %v3913_v0 = vrot.slane %v3852_v24, 1  ;;  %v4037_v15 = vrot.slane %v3976_v44, 2  ;;  %v4192_v23 = vrot.slane %v4133_v32, 1  ;;  %v4316_v16 = vrot.slane %v4257_v39, 2 }
 0x31c   : > { %v4471_v29 = vrot.slane %v4414_v28, 1  ;;  %v4595_v53 = vrot.slane %v4538_v11, 2  ;;  %v3826_v45 = vmul.f32 %v8511_v50, %v9009_v63  ;;  %v3853_v1 = vmul.f32 %v8499_v14, %v9009_v63 }
 0x31d   : > { %v3914_v5 = vsel %vm2205_vm15, %v3911_v46, %v3913_v0  ;;  %v9022_v38 = vsel %vm2380_vm0, %v4035_v7, %v4037_v15  ;;  %v3977_v30 = vmul.f32 %v8503_v52, %v9009_v63  ;;  %v4193_v10 = vsel %vm2205_vm15, %v4190_v56, %v4192_v23 }
 0x31e   : > { %v3511_v41 = vpop.f32.mrb[44].mxu1  ;;  %v9030_v47 = vadd.f32 %v3914_v5, %v8952_v22  ;;  %v4472_v17 = vsel %vm2205_vm15, %v4469_v60, %v4471_v29  ;;  %v4596_v19 = vsel %vm2380_vm0, %v4593_v35, %v4595_v53  ;;  %v3915_v55 = vrot.slane %v3853_v1, 1 }
 0x31f   : > { %v3570_v21 = vadd.f32 %v9811_v59, %v3511_v41  ;;  %v5299_v36 = vpop.f32.mrb[45].mxu1  ;;  %v4513_v33 = vadd.f32 %v4472_v17, %v4389_v40  ;;  %v4039_v12 = vrot.slane %v3977_v30, 2  ;;  %v4230_v32 = vadd.f32 %v4191_v37, %v4106_v2 }
 0x320   : > { %v3514_v27 = vpop.f32.mrb[46].mxu1  ;;  %v4231_v22 = vadd.f32 %v4193_v10, %v4107_v58  ;;  %v4313_v39 = vrot.slane %v4255_v3, 2  ;;  %v4314_v35 = vrot.slane %v4256_v42, 2  ;;  %v4374_v40 = vmul.f32 %v8602_v57, %v9009_v63 }
 0x321   : > { %v3600_v24 = vmax.f32 %v3570_v21, 0.0  ;;  %v3571_v44 = vadd.f32 %v9811_v59, %v3514_v27  ;;  %v5300_v62 = vpop.f32.mrb[47].mxu1  ;;  %v4637_v60 = vadd.f32 %v4596_v19, %v4513_v33  ;;  %v4415_v2 = vmul.f32 %v8606_v48, %v9009_v63 }
 0x322   : > { %v9051_v58 = vmul.f32 %v8614_v4, %v9009_v63  ;;  %v4315_v0 = vsel %vm2380_vm0, %v4313_v39, %v4314_v35  ;;  %v4317_v15 = vsel %vm2380_vm0, %v4314_v35, %v4316_v16 }
 0x323   : > { %v9045_v56 = vsel %vm8976_vm4, %v3600_v24, 0.0  ;;  %v3601_v28 = vmax.f32 %v3571_v44, 0.0  ;;  %v4648_v3 = vpack.c.bf16 %v4637_v60, %v4636_v26  ;;  %v4354_v23 = vadd.f32 %v4315_v0, %v4230_v32  ;;  %vm3682_vm4 = vmand %vm9145_vm8, %vm3652_vm11 }
 0x324   : > { %v3854_v11 = vmul.f32 %v8499_v14, %v9045_v56  ;;  %v3978_v42 = vmul.f32 %v8503_v52, %v9045_v56  ;;  %v4375_v29 = vmul.f32 %v8602_v57, %v9045_v56  ;;  %v4355_v16 = vadd.f32 %v4317_v15, %v4231_v22  ;;  %vm3717_vm11 = vmand %vm9145_vm8, %vm3687_vm2 }
 0x325   : > { %v3801_v49 = vsel %vm3711_vm14, %v3601_v28, 0.0  ;;  %5337 = vmatprep.mubr.bf16.mxu0 %v4648_v3  ;;  %v4416_v32 = vmul.f32 %v8606_v48, %v9045_v56  ;;  %v4473_v39 = vrot.slane %v4415_v2, 1  ;;  %v4597_v28 = vrot.slane %v9051_v58, 2 }
 0x326   : > { %v3855_v53 = vmul.f32 %v8499_v14, %v3801_v49  ;;  %v3916_v1 = vrot.slane %v3854_v11, 1  ;;  %v3979_v5 = vmul.f32 %v8503_v52, %v3801_v49  ;;  %v9064_v41 = vmul.f32 %v8552_v43, %v3801_v49 }
 0x327   : > { %v9067_v26 = vmul.f32 %v8556_v20, %v3801_v49  ;;  %v4417_v30 = vmul.f32 %v8606_v48, %v3801_v49  ;;  %v4040_v37 = vrot.slane %v3978_v42, 2  ;;  %v4391_v62 = vadd.f32 %v4375_v29, %v4355_v16 }
 0x328   : > { %v3918_v21 = vrot.slane %v3855_v53, 1  ;;  %v4042_v36 = vrot.slane %v3979_v5, 2  ;;  %v4197_v17 = vrot.slane %v9064_v41, 1  ;;  %v3917_v14 = vsel %vm2205_vm15, %v3915_v55, %v3916_v1 }
 0x329   : > { %v4321_v19 = vrot.slane %v9067_v26, 2  ;;  %v4476_v52 = vrot.slane %v4417_v30, 1  ;;  %v3950_v33 = vadd.f32 %v3917_v14, %v3826_v45  ;;  %v4041_v10 = vsel %vm2380_vm0, %v4039_v12, %v4040_v37 }
 0x32a   : > { %v3919_v24 = vsel %vm2205_vm15, %v3916_v1, %v3918_v21  ;;  %v4390_v55 = vadd.f32 %v4374_v40, %v4354_v23  ;;  %v4540_v45 = vmul.f32 %v8614_v4, %v9045_v56  ;;  %v4474_v35 = vrot.slane %v4416_v32, 1 }
 0x32b   : > { %v3519_v44 = vpop.f32.mrb[48].mxu1  ;;  %v4074_v60 = vadd.f32 %v4041_v10, %v3950_v33  ;;  %v4541_v40 = vmul.f32 %v8614_v4, %v3801_v49  ;;  %v3827_v11 = vmul.f32 %v8511_v50, %v9045_v56  ;;  %v4043_v15 = vsel %vm2380_vm0, %v4040_v37, %v4042_v36 }
 0x32c   : > { %v3572_v61 = vadd.f32 %v9811_v59, %v3519_v44  ;;  %v5303_v22 = vpop.f32.mrb[49].mxu1  ;;  %v4598_v0 = vrot.slane %v4540_v45, 2  ;;  %v4475_v23 = vsel %vm2205_vm15, %v4473_v39, %v4474_v35  ;;  %v4477_v29 = vsel %vm2205_vm15, %v4474_v35, %v4476_v52 }
 0x32d   : > { %v3522_v12 = vpop.f32.mrb[50].mxu1  ;;  %v4600_v53 = vrot.slane %v4541_v40, 2  ;;  %v3951_v1 = vadd.f32 %v3919_v24, %v3827_v11  ;;  %v4514_v58 = vadd.f32 %v4475_v23, %v4390_v55  ;;  %v4515_v30 = vadd.f32 %v4477_v29, %v4391_v62 }
 0x32e   : > { %v3602_v3 = vmax.f32 %v3572_v61, 0.0  ;;  %v3573_v2 = vadd.f32 %v9811_v59, %v3522_v12  ;;  %v5304_v42 = vpop.f32.mrb[51].mxu1  ;;  %v4599_v14 = vsel %vm2380_vm0, %v4597_v28, %v4598_v0  ;;  %v4135_v27 = vmul.f32 %v8552_v43, %v9045_v56 }
 0x32f   : > { %v4601_v52 = vsel %vm2380_vm0, %v4598_v0, %v4600_v53  ;;  %v4075_v33 = vadd.f32 %v4043_v15, %v3951_v1  ;;  %v4638_v28 = vadd.f32 %v4599_v14, %v4514_v58  ;;  %v3912_v53 = vsel %vm2205_vm15, %v3910_v8, %v3911_v46 }
 0x330   : > { %v9102_v5 = vsel %vm3679_vm6, %v3602_v3, 0.0  ;;  %v3603_v49 = vmax.f32 %v3573_v2, 0.0  ;;  %v4639_v11 = vadd.f32 %v4601_v52, %v4515_v30  ;;  %v4034_v1 = vrot.slane %v8938_v6, 2 }
 0x331   : > { %v4094_v50 = vmul.f32 %v8542_v51, %v9102_v5  ;;  %v4137_v16 = vmul.f32 %v8552_v43, %v9102_v5  ;;  %v4261_v37 = vmul.f32 %v8556_v20, %v9102_v5  ;;  %v9112_v21 = vmul.f32 %v8606_v48, %v9102_v5 }
 0x332   : > { %v9116_v36 = vsel %vm9077_vm1, %v3603_v49, 0.0  ;;  %v3948_v30 = vadd.f32 %v3912_v53, %v9002_v18  ;;  %v4036_v46 = vsel %vm2380_vm0, %v4034_v1, %v4035_v7  ;;  %v4073_v18 = vadd.f32 %v9022_v38, %v9030_v47 }
 0x333   : > { %v4199_v10 = vrot.slane %v4137_v16, 1  ;;  %v4323_v24 = vrot.slane %v4261_v37, 2  ;;  %v4478_v44 = vrot.slane %v9112_v21, 1  ;;  %v4095_v55 = vmul.f32 %v8542_v51, %v9116_v36 }
 0x334   : > { %v4138_v32 = vmul.f32 %v8552_v43, %v9116_v36  ;;  %v4262_v61 = vmul.f32 %v8556_v20, %v9116_v36  ;;  %v9129_v22 = vmul.f32 %v8606_v48, %v9116_v36  ;;  %v4110_v40 = vadd.f32 %v4094_v50, %v4074_v60 }
 0x335   : > { %v3527_v62 = vpop.f32.mrb[52].mxu1  ;;  %v4111_v3 = vadd.f32 %v4095_v55, %v4075_v33  ;;  %v4649_v60 = vpack.c.bf16 %v4639_v11, %v4638_v28  ;;  %v4543_v41 = vmul.f32 %v8614_v4, %v9116_v36 }
 0x336   : > { %v3574_v39 = vadd.f32 %v9811_v59, %v3527_v62  ;;  %v5307_v45 = vpop.f32.mrb[53].mxu1  ;;  %v4200_v2 = vrot.slane %v4138_v32, 1  ;;  %v4324_v42 = vrot.slane %v4262_v61, 2  ;;  %v4479_v0 = vrot.slane %v9129_v22, 1 }
 0x337   : > { %v3530_v35 = vpop.f32.mrb[54].mxu1  ;;  %5338 = vmatmul.mubr.bf16.gmra.mrb[44].mxu0 %v4649_v60  ;;  %v4072_v32 = vadd.f32 %v4036_v46, %v3948_v30 }
 0x338   : > { %v3604_v15 = vmax.f32 %v3574_v39, 0.0  ;;  %v5308_v23 = vpop.f32.mrb[55].mxu1  ;;  %v3575_v29 = vadd.f32 %v9811_v59, %v3530_v35  ;;  %v4201_v25 = vsel %vm2205_vm15, %v4199_v10, %v4200_v2  ;;  %v4325_v58 = vsel %vm2380_vm0, %v4323_v24, %v4324_v42 }
 0x339   : > { %v4234_v8 = vadd.f32 %v4201_v25, %v4110_v40  ;;  %v4134_v25 = vmul.f32 %v8552_v43, %v9009_v63 }
 0x33a   : > { %v3804_v49 = vsel %vm9136_vm7, %v3604_v15, 0.0  ;;  %v3605_v6 = vmax.f32 %v3575_v29, 0.0 }
 0x33b   : > { %v4139_v50 = vmul.f32 %v8552_v43, %v3804_v49  ;;  %v4263_v16 = vmul.f32 %v8556_v20, %v3804_v49  ;;  %v9164_v34 = vmul.f32 %v8606_v48, %v3804_v49  ;;  %v9167_v9 = vmul.f32 %v8614_v4, %v3804_v49 }
 0x33c   : > { %v3805_v10 = vsel %vm3682_vm4, %v3605_v6, 0.0  ;;  %v4358_v24 = vadd.f32 %v4325_v58, %v4234_v8  ;;  %v4195_v6 = vrot.slane %v4135_v27, 1  ;;  %v4258_v8 = vmul.f32 %v8556_v20, %v9009_v63 }
 0x33d   : > { %v4202_v37 = vrot.slane %v4139_v50, 1  ;;  %v4326_v14 = vrot.slane %v4263_v16, 2  ;;  %v4481_v52 = vrot.slane %v9164_v34, 1  ;;  %v4605_v33 = vrot.slane %v9167_v9, 2  ;;  %v3535_v31 = vpop.f32.mrb[56].mxu1 }
 0x33e   : > { %v3576_v55 = vadd.f32 %v9811_v59, %v3535_v31  ;;  %v5311_v62 = vpop.f32.mrb[57].mxu1  ;;  %v4378_v7 = vmul.f32 %v8602_v57, %v3805_v10  ;;  %v4421_v61 = vmul.f32 %v8606_v48, %v3805_v10  ;;  %v4545_v38 = vmul.f32 %v8614_v4, %v3805_v10 }
 0x33f   : > { %v4203_v54 = vsel %vm2205_vm15, %v4200_v2, %v4202_v37  ;;  %v3538_v47 = vpop.f32.mrb[58].mxu1  ;;  %v4327_v12 = vsel %vm2380_vm0, %v4324_v42, %v4326_v14  ;;  %v4092_v2 = vmul.f32 %v8542_v51, %v9009_v63  ;;  %v4194_v34 = vrot.slane %v4134_v25, 1 }
 0x340   : > { %v3606_v39 = vmax.f32 %v3576_v55, 0.0  ;;  %v4235_v45 = vadd.f32 %v4203_v54, %v4111_v3  ;;  %v3577_v35 = vadd.f32 %v9811_v59, %v3538_v47  ;;  %v5312_v40 = vpop.f32.mrb[59].mxu1  ;;  %v4394_v28 = vadd.f32 %v4378_v7, %v4358_v24 }
 0x341   : > { %v4483_v11 = vrot.slane %v4421_v61, 1  ;;  %v4607_v15 = vrot.slane %v4545_v38, 2  ;;  %v4093_v59 = vmul.f32 %v8542_v51, %v9045_v56  ;;  %v4108_v53 = vadd.f32 %v4092_v2, %v4072_v32  ;;  %v9845_v2 = vld [vmem:[#allocation44_spill] sm:$0xff] }
 0x342   : > { %v3806_v23 = vsel %vm9145_vm8, %v3606_v39, 0.0  ;;  %v4359_v3 = vadd.f32 %v4327_v12, %v4235_v45  ;;  %v3607_v29 = vmax.f32 %v3577_v35, 0.0  ;;  %v4376_v37 = vmul.f32 %v8602_v57, %v9102_v5 }
 0x343   : > { %v4379_v42 = vmul.f32 %v8602_v57, %v3806_v23  ;;  %v4422_v60 = vmul.f32 %v8606_v48, %v3806_v23  ;;  %v4546_v13 = vmul.f32 %v8614_v4, %v3806_v23  ;;  %v4109_v49 = vadd.f32 %v4093_v59, %v4073_v18  ;;  %v4823_v59 = vld [vmem:[#allocation2 + $0x6b] sm:$0xff] }
 0x344   : > { %v3807_v1 = vsel %vm3717_vm11, %v3607_v29, 0.0  ;;  %v4259_v18 = vmul.f32 %v8556_v20, %v9045_v56  ;;  %v4377_v43 = vmul.f32 %v8602_v57, %v9116_v36  ;;  %v4198_v31 = vsel %vm2205_vm15, %v4195_v6, %v4197_v17  ;;  %v4820_v29 = vld [vmem:[#allocation2 + $0x4b] sm:$0xff] }
 0x345   : > { %v4395_v58 = vadd.f32 %v4379_v42, %v4359_v3  ;;  %v4484_v30 = vrot.slane %v4422_v60, 1  ;;  %v4608_v50 = vrot.slane %v4546_v13, 2  ;;  %v4423_v51 = vmul.f32 %v8606_v48, %v3807_v1 }
 0x346   : > { %v4547_v16 = vmul.f32 %v8614_v4, %v3807_v1  ;;  %v4196_v48 = vsel %vm2205_vm15, %v4194_v34, %v4195_v6  ;;  %v4318_v10 = vrot.slane %v4258_v8, 2  ;;  %v4233_v63 = vadd.f32 %v4198_v31, %v4109_v49  ;;  %v4826_v34 = vld [vmem:[#allocation2 + $0x93] sm:$0xff] }
 0x347   : > { %v4486_v46 = vrot.slane %v4423_v51, 1  ;;  %v4232_v24 = vadd.f32 %v4196_v48, %v4108_v53  ;;  %v4319_v55 = vrot.slane %v4259_v18, 2  ;;  %v4480_v20 = vsel %vm2205_vm15, %v4478_v44, %v4479_v0  ;;  %v4821_v53 = vld [vmem:[#allocation2 + $0x53] sm:$0xff] }
 0x348   : > { %v4610_v14 = vrot.slane %v4547_v16, 2  ;;  %v4482_v57 = vsel %vm2205_vm15, %v4479_v0, %v4481_v52  ;;  %v4542_v56 = vmul.f32 %v8614_v4, %v9102_v5  ;;  %v4485_v17 = vsel %vm2205_vm15, %v4483_v11, %v4484_v30 }
 0x349   : > { %v4320_v62 = vsel %vm2380_vm0, %v4318_v10, %v4319_v55  ;;  %v4322_v21 = vsel %vm2380_vm0, %v4319_v55, %v4321_v19  ;;  %v4487_v44 = vsel %vm2205_vm15, %v4484_v30, %v4486_v46  ;;  %v4518_v32 = vadd.f32 %v4485_v17, %v4394_v28  ;;  %v4824_v46 = vld [vmem:[#allocation2 + $0x7b] sm:$0xff]  ;;  %v4825_v10 = vld [vmem:[#allocation2 + $0x83] sm:$0xff] }
 0x34a   : > { %v4356_v22 = vadd.f32 %v4320_v62, %v4232_v24  ;;  %v4357_v54 = vadd.f32 %v4322_v21, %v4233_v63  ;;  %v4602_v0 = vrot.slane %v4542_v56, 2  ;;  %v4603_v52 = vrot.slane %v4543_v41, 2  ;;  %v4830_v21 = vld [vmem:[#allocation2 + $0xc3] sm:$0xff] }
 0x34b   : > { %v4519_v7 = vadd.f32 %v4487_v44, %v4395_v58  ;;  %v4609_v5 = vsel %vm2380_vm0, %v4607_v15, %v4608_v50  ;;  %v4611_v4 = vsel %vm2380_vm0, %v4608_v50, %v4610_v14  ;;  %v4822_v15 = vld [vmem:[#allocation2 + $0x63] sm:$0xff] }
 0x34c   : > { %v4392_v36 = vadd.f32 %v4376_v37, %v4356_v22  ;;  %v4393_v61 = vadd.f32 %v4377_v43, %v4357_v54  ;;  %v4604_v38 = vsel %vm2380_vm0, %v4602_v0, %v4603_v52  ;;  %v4606_v26 = vsel %vm2380_vm0, %v4603_v52, %v4605_v33  ;;  %v4827_v43 = vld [vmem:[#allocation2 + $0x9b] sm:$0xff]  ;;  %v4828_v22 = vld [vmem:[#allocation2 + $0xab] sm:$0xff] }
 0x34d   : > { %v4642_v19 = vadd.f32 %v4609_v5, %v4518_v32  ;;  %v4643_v47 = vadd.f32 %v4611_v4, %v4519_v7  ;;  %v4831_v52 = vld [vmem:[#allocation2 + $0xcb] sm:$0xff] }
 0x34e   : > { %v4516_v39 = vadd.f32 %v4480_v20, %v4392_v36  ;;  %v4517_v45 = vadd.f32 %v4482_v57, %v4393_v61  ;;  %v4829_v36 = vld [vmem:[#allocation2 + $0xb3] sm:$0xff] }
 0x34f   : > { %v4651_v12 = vpack.c.bf16 %v4643_v47, %v4642_v19 }
 0x350   : > { %v4640_v35 = vadd.f32 %v4604_v38, %v4516_v39  ;;  %v4641_v40 = vadd.f32 %v4606_v26, %v4517_v45 }
 0x352   : > { %v4650_v28 = vpack.c.bf16 %v4641_v40, %v4640_v35  ;;  %v4834_v40 = vld [vmem:[#allocation2 + $0xf3] sm:$0xff] }
 0x354   : > { %5341 = vmatprep.mubr.bf16.mxu0 %v4650_v28 }
 0x355   : > { %5342 = vmatmul.mubr.bf16.gmra.mrb[48].mxu0 %v4651_v12 }
 0x39f   : > { %v5331_v11 = vpop.f32.mrb[36].mxu0 }
 0x3a0   : > { %v4805_v23 = vadd.f32 %v5331_v11, %v9845_v2  ;;  %v4734_v3 = vpop.f32.mrb[37].mxu0 }
 0x3a1   : > { %v4803_v9 = vadd.f32 %v9845_v2, %v4734_v3  ;;  %v5332_v33 = vpop.f32.mrb[38].mxu0 }
 0x3a2   : > { %v4838_v42 = vadd.f32 %v4822_v15, %v4805_v23  ;;  %v4806_v60 = vadd.f32 %v5332_v33, %v9845_v2  ;;  %v4737_v13 = vpop.f32.mrb[39].mxu0  ;;  %v4832_v15 = vld [vmem:[#allocation2 + $0xdb] sm:$0xff] }
 0x3a3   : > { %v4836_v1 = vadd.f32 %v4820_v29, %v4803_v9  ;;  %v4804_v49 = vadd.f32 %v9845_v2, %v4737_v13  ;;  %v4835_v29 = vld [vmem:[#allocation2 + $0xfb] sm:$0xff] }
 0x3a4   : > { %v4854_v25 = vmax.f32 %v4838_v42, 0.0  ;;  %v4839_v27 = vadd.f32 %v4823_v59, %v4806_v60  ;;  %v4833_v42 = vld [vmem:[#allocation2 + $0xe3] sm:$0xff] }
 0x3a5   : > { %v4852_v58 = vmax.f32 %v4836_v1, 0.0  ;;  %v4837_v30 = vadd.f32 %v4821_v53, %v4804_v49 }
 0x3a6   : > { %4870 = vst [vmem:[%s5707_s18 + $0x10] sm:$0xff] %v4854_v25  ;;  %v4855_v50 = vmax.f32 %v4839_v27, 0.0 }
 0x3a7   : > { %4868 = vst [vmem:[%s5707_s18] sm:$0xff] %v4852_v58  ;;  %v4853_v51 = vmax.f32 %v4837_v30, 0.0 }
 0x3a8   : > { %4871 = vst [vmem:[%s5707_s18 + $0x18] sm:$0xff] %v4855_v50 }
 0x3a9   : > { %4869 = vst [vmem:[%s5707_s18 + $0x8] sm:$0xff] %v4853_v51 }
 0x3de   : > { %v5335_v16 = vpop.f32.mrb[40].mxu0 }
 0x3df   : > { %v4809_v6 = vadd.f32 %v5335_v16, %v9845_v2  ;;  %v4750_v8 = vpop.f32.mrb[41].mxu0 }
 0x3e0   : > { %v4807_v18 = vadd.f32 %v9845_v2, %v4750_v8  ;;  %v5336_v37 = vpop.f32.mrb[42].mxu0 }
 0x3e1   : > { %v4842_v14 = vadd.f32 %v4826_v34, %v4809_v6  ;;  %v4810_v48 = vadd.f32 %v5336_v37, %v9845_v2  ;;  %v4753_v31 = vpop.f32.mrb[43].mxu0 }
 0x3e2   : > { %v4840_v24 = vadd.f32 %v4824_v46, %v4807_v18  ;;  %v4808_v63 = vadd.f32 %v9845_v2, %v4753_v31 }
 0x3e3   : > { %v4858_v55 = vmax.f32 %v4842_v14, 0.0  ;;  %v4843_v20 = vadd.f32 %v4827_v43, %v4810_v48 }
 0x3e4   : > { %v4856_v57 = vmax.f32 %v4840_v24, 0.0  ;;  %v4841_v56 = vadd.f32 %v4825_v10, %v4808_v63 }
 0x3e5   : > { %4874 = vst [vmem:[%s5707_s18 + $0x30] sm:$0xff] %v4858_v55  ;;  %v4859_v41 = vmax.f32 %v4843_v20, 0.0 }
 0x3e6   : > { %4872 = vst [vmem:[%s5707_s18 + $0x20] sm:$0xff] %v4856_v57  ;;  %v4857_v17 = vmax.f32 %v4841_v56, 0.0 }
 0x3e7   : > { %4875 = vst [vmem:[%s5707_s18 + $0x38] sm:$0xff] %v4859_v41 }
 0x3e8   : > { %4873 = vst [vmem:[%s5707_s18 + $0x28] sm:$0xff] %v4857_v17 }
 0x40a   : > { %v5339_v62 = vpop.f32.mrb[44].mxu0 }
 0x40b   : > { %v4813_v44 = vadd.f32 %v5339_v62, %v9845_v2  ;;  %v4766_v32 = vpop.f32.mrb[45].mxu0 }
 0x40c   : > { %v4811_v54 = vadd.f32 %v9845_v2, %v4766_v32  ;;  %v5340_v0 = vpop.f32.mrb[46].mxu0 }
 0x40d   : > { %v4846_v7 = vadd.f32 %v4830_v21, %v4813_v44  ;;  %v4814_v5 = vadd.f32 %v5340_v0, %v9845_v2  ;;  %v4769_v4 = vpop.f32.mrb[47].mxu0 }
 0x40e   : > { %v4844_v61 = vadd.f32 %v4828_v22, %v4811_v54  ;;  %v4812_v38 = vadd.f32 %v9845_v2, %v4769_v4 }
 0x40f   : > { %v4862_v26 = vmax.f32 %v4846_v7, 0.0  ;;  %v4847_v19 = vadd.f32 %v4831_v52, %v4814_v5 }
 0x410   : > { %v4860_v47 = vmax.f32 %v4844_v61, 0.0  ;;  %v4845_v39 = vadd.f32 %v4829_v36, %v4812_v38 }
 0x411   : > { %4878 = vst [vmem:[%s5707_s18 + $0x50] sm:$0xff] %v4862_v26  ;;  %v4863_v45 = vmax.f32 %v4847_v19, 0.0 }
 0x412   : > { %4876 = vst [vmem:[%s5707_s18 + $0x40] sm:$0xff] %v4860_v47  ;;  %v4861_v12 = vmax.f32 %v4845_v39, 0.0 }
 0x413   : > { %4879 = vst [vmem:[%s5707_s18 + $0x58] sm:$0xff] %v4863_v45 }
 0x414   : > { %4877 = vst [vmem:[%s5707_s18 + $0x48] sm:$0xff] %v4861_v12 }
 0x428   : > { %v5343_v35 = vpop.f32.mrb[48].mxu0 }
 0x429   : > { %v4817_v28 = vadd.f32 %v5343_v35, %v9845_v2  ;;  %v4782_v11 = vpop.f32.mrb[49].mxu0 }
 0x42a   : > { %v4815_v23 = vadd.f32 %v9845_v2, %v4782_v11  ;;  %v5344_v3 = vpop.f32.mrb[50].mxu0 }
 0x42b   : > { %v4850_v9 = vadd.f32 %v4834_v40, %v4817_v28  ;;  %v4818_v33 = vadd.f32 %v5344_v3, %v9845_v2  ;;  %v4785_v59 = vpop.f32.mrb[51].mxu0 }
 0x42c   : > { %v4848_v60 = vadd.f32 %v4832_v15, %v4815_v23  ;;  %v4816_v13 = vadd.f32 %v9845_v2, %v4785_v59 }
 0x42d   : > { %v4866_v53 = vmax.f32 %v4850_v9, 0.0  ;;  %v4851_v1 = vadd.f32 %v4835_v29, %v4818_v33 }
 0x42e   : > { %v4864_v49 = vmax.f32 %v4848_v60, 0.0  ;;  %v4849_v25 = vadd.f32 %v4833_v42, %v4816_v13 }
 0x42f   : > { %4882 = vst [vmem:[%s5707_s18 + $0x70] sm:$0xff] %v4866_v53  ;;  %v4867_v27 = vmax.f32 %v4851_v1, 0.0 }
 0x430   : > { %4880 = vst [vmem:[%s5707_s18 + $0x60] sm:$0xff] %v4864_v49  ;;  %v4865_v58 = vmax.f32 %v4849_v25, 0.0 }
 0x431   : > { %4883 = vst [vmem:[%s5707_s18 + $0x78] sm:$0xff] %v4867_v27 }
 0x432   : > { %4881 = vst [vmem:[%s5707_s18 + $0x68] sm:$0xff] %v4865_v58 }
 0x433   : > { %5434 = shalt.err (!%p5431_p5)
}
 0x434   : > { %s5435_s18 = scalar_lea.hbm %s9280_s23, 2048  ;;  %s5439_s21 = scalar_lea.hbm %s9348_s10, 8192 }
 0x435   : > { %p5436_p6 = scmp.ne.s32.totalorder %s9280_s23, %s5435_s18  ;;  %p5440_p10 = scmp.lt.u32.totalorder %s9280_s23, %s9348_s10 }
 0x436   : > { %p5441_p11 = scmp.lt.u32.totalorder %s5439_s21, %s5435_s18  ;;  %p5443_p13 = scmp.lt.u32.totalorder %s5435_s18, %s9280_s23 }
 0x437   : > { %p5437_p7 = pnand %p5436_p6, %p5631_p3 }
 0x438   : > { %p5442_p12 = por %p5441_p11, %p5440_p10 }
 0x439   : > { %p5438_p9 = pneg %p5437_p7 }
 0x43a   : > { %p5444_p0 = por %p5443_p13, %p5442_p12 }
 0x43c   : > { %p5445_p1 = pnand %p5444_p0, %p5438_p9 }
 0x43e   : > { %5448 = shalt.err (!%p5445_p1)
}
 0x43f   : > { %s5523_s19 = smov 128   ;;  %s5524_s24 = smov 8  }
 0x440   : > { %5345 = dma.vmem_to_hbm [thread:$0]  (%p5631_p3), %s9274_s16, 2048, %s9280_s23, %s9286_s29, %s5523_s19, %s5523_s19, %s5524_s24  }
 0x441 PF: > { %p5351_p2 = scmp.ge.s32.totalorder %s5517_s20, 2  ;;  %s4916_s30 = sand.u32 1, %s5489_s13  }
 0x442   : > { %s4917_s25 = scalar_lea.sflag [#allocation5], %s4916_s30 }
 0x443   : > { %p5348_p4 = pnand %p5351_p2, %p5640_p8 }
 0x445   : > { %5484 = dma.done.wait (!%p5348_p4), %s4917_s25, 2048  }
 0x446   : > { %5486 = vsyncadd (!%p5348_p4), %s4917_s25, 4294965248  ;;  %s23_s20 = sadd.s32 1, %s5517_s20   ;;  %s9847_s16 = sld [smem:[#allocation9_spill]] }
 0x447   : > { %p20_p5 = scmp.ge.s32.totalorder %s23_s20, 6   ;;  %s9848_s17 = sld [smem:[#allocation10_spill]] }
 0x448   : > { %s9849_s18 = sld [smem:[#allocation11_spill]]  ;;  %s9850_s19 = sld [smem:[#allocation12_spill]] }
 0x449   : > { %s9851_s13 = smov %s5493_s14  ;;  %s9852_s14 = smov %s5497_s15 }
 0x44a   : > { %s9853_s15 = smov %s5649_s11  ;;  %22 = sbr.rel (!%p20_p5) target bundleno = 8 (0x8), region = 143 }
 0x451   :  { %4922 = vsyncpa [#allocation5], 1 }
 0x452   :  { %4924 = vsyncpa [#allocation5 + $0x1], 1 }
 0x453   :  { %4925 = vsyncmov [#allocation3] }
 0x456   :  { %s4926_s26 = vpop.sfrf %4925 }
 0x457   :  { %p5118_p3 = scmp.ne.s32.totalorder %s4926_s26, 0 }
 0x459   :  { %4930 = shalt.err (%p5118_p3)  }

</bundles_post_ra>
